<compile_context>
chip_gen: v5e
topology: v5e:2x2
jax: 0.10.0
libtpu: 0.0.40
codegen_flags: <defaults>
</compile_context>

<pallas_src>
import functools

import jax
import jax.numpy as jnp
from jax import lax
from jax.experimental import pallas as pl
from jax.experimental.pallas import tpu as pltpu

EPS = 1e-5                 # BatchNorm2d eps
DILATIONS = (1, 2)         # dsdc_scales = 2  ->  dilations (1, 2)


def _gelu(x):
    # TODO(synk): PyTorch nn.GELU defaults to the exact erf form; the tanh
    # approximation is used for a guaranteed EUP lowering (the difference is
    # far below the bf16-matmul tolerance used in the self-check).
    return jax.nn.gelu(x, approximate=True)


def _tensorcores_per_chip():
    """v7x packs 2 TensorCores per chip; v5e / v6e have 1."""
    try:
        kind = jax.devices()[0].device_kind.lower()
    except Exception:
        return 1
    return 2 if ("v7" in kind or "tpu7" in kind) else 1


# ----------------------------------------------------------------------------
# Kernel: full EFAM forward for one block of `spb` samples (grid over blocks).
# Everything is channels-first: channels on sublanes, pixels on lanes.
# ----------------------------------------------------------------------------
def efam_kernel(x_ref, pix_ref, w_ref, c_ref, o_ref, *, img_h, img_w, spb, cr):
    """
    x_ref  : (C, L)         f32   input slab, L = spb*HW (lane-dense)
    pix_ref: (2, L)         i32   per-pixel (row, col) index, tiled per sample
    w_ref  : (4, C, C)      bf16  [w_in (BN folded), w_pw, w_m1, w_m2]
    c_ref  : (C, 22+3*Cr)   f32   dw taps | biases | BFSA weights (see wrapper)
    o_ref  : (C, L)               x + mlp(bfsa(dsdc(res) + res))
    """
    C, L = x_ref.shape
    H, W, HW = img_h, img_w, img_h * img_w
    NDW = 1 + 8 * len(DILATIONS)                     # fused centre + 8 taps/scale
    B_IN, B_PW, B_M1, B_M2, B_B2 = NDW, NDW + 1, NDW + 2, NDW + 3, NDW + 4
    WB1, WB2, BB1 = NDW + 5, NDW + 5 + cr, NDW + 5 + 2 * cr

    x = x_ref[...]                                   # (C, L) f32
    cst = c_ref[...]                                 # (C, K) f32, loaded once

    def col(j):                                      # (C, 1) constants column
        return cst[:, j:j + 1]

    def mm(i, rhs):
        # bf16 MXU operands, f32 accumulation: one MXU pass per tile.
        return jnp.dot(w_ref[i], rhs.astype(jnp.bfloat16),
                       preferred_element_type=jnp.float32)

    # ---- norm + input_proj: BatchNorm (batch stats + affine) is folded into
    #      w_in / b_in in the wrapper, so this is a single MXU matmul. ----
    res = mm(0, x) + col(B_IN)

    # ---- DSDC: sum of depthwise dilated 3x3 convs via XLU lane-rolls of the
    #      (C, L) value + border masks (masks also zero roll wrap across the
    #      sample boundaries inside the folded lane axis). ----
    pix = pix_ref[...]
    py, px = pix[0:1, :], pix[1:2, :]                # (1, L) row / col index
    ymask, xmask = {}, {}
    for d in DILATIONS:                              # hoisted single-compare masks
        for o in (-d, d):
            ymask[o] = (py < H - o) if o > 0 else (py >= -o)
            xmask[o] = (px < W - o) if o > 0 else (px >= -o)

    acc = res * col(0)                               # fused centre taps (all scales)
    t = 1
    for d in DILATIONS:
        for ky in (-1, 0, 1):
            dy = ky * d
            for kx in (-1, 0, 1):
                dx = kx * d
                if dy == 0 and dx == 0:
                    continue                         # centre folded into col(0)
                # tap[c, p] = res[c, p + dy*W + dx]  (wrap zeroed by mask)
                tap = pltpu.roll(res, shift=(-(dy * W + dx)) % L, axis=1)
                if dy != 0 and dx != 0:
                    m = ymask[dy] & xmask[dx]
                elif dy != 0:
                    m = ymask[dy]                    # xmask[0] is all-true: skip
                else:
                    m = xmask[dx]                    # ymask[0] is all-true: skip
                acc = acc + jnp.where(m, tap, 0.0) * col(t)
                t += 1
    # TODO(synk): on v6e/v7x the tap values could be held in bf16 (f32 acc) to
    # halve VPU cost once HW grows; kept f32 so v5e (f32-only VPU) is served.

    # pointwise 1x1 -> GELU, plus residual
    res = _gelu(mm(1, acc) + col(B_PW)) + res

    # ---- BFSA: squeeze-excite channel attention, MXU-free (the two
    #      single-column matmuls become (C, Cr) VPU multiplies + XLU reduces).
    w_b1t = cst[:, WB1:WB1 + cr]                     # (C, Cr)
    w_b2t = cst[:, WB2:WB2 + cr]                     # (C, Cr)
    b_b1 = cst[0:1, BB1:BB1 + cr]                    # (1, Cr)  (values in row 0)
    b_b2 = col(B_B2)                                 # (C, 1)
    segs = []
    for s in range(spb):                             # per-sample GAP / attention
        seg = res[:, s * HW:(s + 1) * HW]            # vreg-aligned lane slice
        pooled = jnp.mean(seg, axis=1, keepdims=True)                    # (C, 1)
        hid = jnp.maximum(
            jnp.sum(w_b1t * pooled, axis=0, keepdims=True) + b_b1, 0.0)  # (1, Cr)
        attn = jax.nn.sigmoid(
            jnp.sum(w_b2t * hid, axis=1, keepdims=True) + b_b2)          # (C, 1)
        segs.append(seg * attn)
    res = segs[0] if spb == 1 else jnp.concatenate(segs, axis=1)

    # ---- mlp: conv1x1 -> GELU -> conv1x1, plus outer residual ----
    h1 = _gelu(mm(2, res) + col(B_M1))
    o_ref[...] = (x + mm(3, h1) + col(B_M2)).astype(o_ref.dtype)  # lane-dense store


# ----------------------------------------------------------------------------
# Wrapper
# ----------------------------------------------------------------------------
def efam_forward(x_nchw, p, samples_per_block=None):
    N, C, H, W = x_nchw.shape
    HW = H * W
    if samples_per_block is None:
        tc = _tensorcores_per_chip()
        # single-TC chips: whole batch in one grid step; v7x: one block per core
        samples_per_block = N // tc if (tc > 1 and N % tc == 0) else N
    spb = samples_per_block
    assert N % spb == 0 and (spb == N or (spb * HW) % 128 == 0)
    nblk = N // spb
    L = spb * HW

    # Channels-first lane-dense layout: samples concatenated on the lane axis
    # (tiny wrapper-side transpose; gives a (C, N*HW) MXU RHS in the kernel).
    xcf = jnp.transpose(x_nchw.reshape(N, C, HW), (1, 0, 2)).reshape(C, N * HW)

    # Train-mode BatchNorm2d batch statistics: tiny wrapper-side XLA reduction,
    # folded into the input_proj weights (no normalisation stage in-kernel).
    mean = jnp.mean(x_nchw, axis=(0, 2, 3))
    var = jnp.mean(jnp.square(x_nchw - mean[None, :, None, None]), axis=(0, 2, 3))
    scale = p['gamma'][0] * lax.rsqrt(var + EPS)              # (C,)
    shift = p['beta'][0] - mean * scale                       # (C,)

    f32 = jnp.float32
    # Packed weight stack (4, C, C): BN-folded w_in, w_pw, w_m1, w_m2 stored as
    # (C_out, C_in), cast to bf16 for single-pass MXU matmuls.
    w_in = (p['w_in'] * scale[:, None]).T
    wstack = jnp.stack([w_in, p['w_pw'].T, p['w_m1'].T, p['w_m2'].T]
                       ).astype(jnp.bfloat16)

    # Packed constants block (C, 22 + 3*Cr), all f32:
    #   col  [0]       fused centre depthwise tap (summed over dilations)
    #   cols [1..16]   the 16 non-centre depthwise taps (scale-major, ky, kx)
    #   cols [17..21]  b_in (BN folded), b_pw, b_m1, b_m2, b_b2
    #   cols [22.. ]   w_b1 (C, Cr) | w_b2^T (C, Cr) | b_b1 in row 0 (C, Cr)
    dw = p['dw']                                              # (S, 3, 3, C)
    cols = [jnp.sum(dw[:, 1, 1, :], axis=0)]
    for s in range(dw.shape[0]):
        for ky in range(3):
            for kx in range(3):
                if ky == 1 and kx == 1:
                    continue
                cols.append(dw[s, ky, kx, :])
    b_in = shift @ p['w_in'] + p['b_in'][0]
    cols += [b_in, p['b_pw'][0], p['b_m1'][0], p['b_m2'][0], p['b_b2'][0]]
    cr = p['w_b1'].shape[1]
    bb1 = jnp.zeros((C, cr), f32).at[0].set(p['b_b1'][0])
    consts = jnp.concatenate(
        [jnp.stack(cols, axis=1), p['w_b1'], p['w_b2'].T, bb1],
        axis=1).astype(f32)

    # (2, L) map of pixel (row, col) indices, tiled per sample in the block,
    # for the DSDC border masks (no in-kernel integer div/mod).
    pix = jnp.arange(HW, dtype=jnp.int32)
    pix_yx = jnp.tile(jnp.stack([pix // W, pix % W]), (1, spb)).astype(jnp.int32)

    # TODO(synk): pipeline_mode=pl.Buffered(1) on the replicated operands would
    # drop their second pipeline buffer; negligible at these sizes, so skipped.
    def rep(a):
        return pl.BlockSpec(a.shape, lambda *_, nd=a.ndim: (0,) * nd)

    out = pl.pallas_call(
        functools.partial(efam_kernel, img_h=H, img_w=W, spb=spb, cr=cr),
        out_shape=jax.ShapeDtypeStruct((C, N * HW), x_nchw.dtype),
        grid=(nblk,),
        in_specs=[pl.BlockSpec((C, L), lambda b: (0, b)),     # input slab / block
                  rep(pix_yx), rep(wstack), rep(consts)],
        out_specs=pl.BlockSpec((C, L), lambda b: (0, b)),
        compiler_params=pltpu.CompilerParams(
            dimension_semantics=("parallel",)),   # blocks shard across v7x cores
    )(xcf, pix_yx, wstack, consts)
    return jnp.transpose(out.reshape(C, N, HW), (1, 0, 2)).reshape(N, C, H, W)


# ----------------------------------------------------------------------------
# Deterministic parameter init (kaiming-normal weights, zero biases).
# Weights are stored as (C_in, C_out); the wrapper transposes for the kernel.
# ----------------------------------------------------------------------------
def init_params(key, C, reduction=4, scales=2):
    Cr = C // reduction
    ks = jax.random.split(key, 7)

    def kaiming(k, shape, fan_in):
        return (jnp.sqrt(2.0 / fan_in) * jax.random.normal(k, shape)).astype(jnp.float32)

    return dict(
        gamma=jnp.ones((1, C), jnp.float32),
        beta=jnp.zeros((1, C), jnp.float32),
        w_in=kaiming(ks[0], (C, C), C),          b_in=jnp.zeros((1, C), jnp.float32),
        dw=kaiming(ks[1], (scales, 3, 3, C), 9),                       # depthwise 3x3
        w_pw=kaiming(ks[2], (C, C), C),          b_pw=jnp.zeros((1, C), jnp.float32),
        w_b1=kaiming(ks[3], (C, Cr), C),         b_b1=jnp.zeros((1, Cr), jnp.float32),
        w_b2=kaiming(ks[4], (Cr, C), Cr),        b_b2=jnp.zeros((1, C), jnp.float32),
        w_m1=kaiming(ks[5], (C, C), C),          b_m1=jnp.zeros((1, C), jnp.float32),
        w_m2=kaiming(ks[6], (C, C), C),          b_m2=jnp.zeros((1, C), jnp.float32),
    )


# ----------------------------------------------------------------------------
# Pure-JAX f32 reference (exact module math, NHWC) for the correctness check.
# ----------------------------------------------------------------------------
def efam_reference(x_nchw, p):
    x = jnp.transpose(x_nchw, (0, 2, 3, 1))
    N, H, W, C = x.shape
    mean = jnp.mean(x, axis=(0, 1, 2))
    var = jnp.mean(jnp.square(x - mean), axis=(0, 1, 2))
    xn = (x - mean) * lax.rsqrt(var + EPS) * p['gamma'][0] + p['beta'][0]
    res = jnp.einsum('nhwc,cd->nhwd', xn, p['w_in']) + p['b_in'][0]
    acc = jnp.zeros_like(res)
    for s, d in enumerate(DILATIONS):
        k = p['dw'][s].reshape(3, 3, 1, C)
        acc = acc + lax.conv_general_dilated(
            res, k, window_strides=(1, 1), padding=((d, d), (d, d)),
            rhs_dilation=(d, d), dimension_numbers=('NHWC', 'HWIO', 'NHWC'),
            feature_group_count=C)
    dsdc = _gelu(jnp.einsum('nhwc,cd->nhwd', acc, p['w_pw']) + p['b_pw'][0])
    res = dsdc + res
    pooled = jnp.mean(res, axis=(1, 2))
    hid = jnp.maximum(pooled @ p['w_b1'] + p['b_b1'][0], 0.0)
    attn = jax.nn.sigmoid(hid @ p['w_b2'] + p['b_b2'][0])
    res = res * attn[:, None, None, :]
    h1 = _gelu(jnp.einsum('nhwc,cd->nhwd', res, p['w_m1']) + p['b_m1'][0])
    h2 = jnp.einsum('nhwc,cd->nhwd', h1, p['w_m2']) + p['b_m2'][0]
    return jnp.transpose(x + h2, (0, 3, 1, 2))


if __name__ == "__main__":
    key = jax.random.PRNGKey(0)
    kx, kp = jax.random.split(key)
    N, C, H, W = 2, 32, 16, 16                   # small shapes; C % reduction == 0
    x = jax.random.normal(kx, (N, C, H, W), jnp.float32)     # PyTorch-style NCHW
    params = init_params(kp, C, reduction=4, scales=len(DILATIONS))

    out = jax.block_until_ready(jax.jit(efam_forward)(x, params))
    ref = efam_reference(x, params)
    assert out.shape == (N, C, H, W)
    err = float(jnp.max(jnp.abs(out - ref)))
    # bf16 MXU operands (f32 accumulation) vs. the exact-f32 reference: the
    # expected deviation is ~0.3% of the output range; 1% is a safe bound.
    # (With f32 matmul operands the kernel matches at 1e-3 / 1e-3.)
    tol = 1e-2 * max(1.0, float(jnp.max(jnp.abs(ref))))
    assert err <= tol, f"max abs err {err} > tol {tol}"
    print("KERNEL_OK")
</pallas_src>

<mosaic_0001>
module attributes {stable_mosaic.version = 11 : i64} {
  func.func @efam_kernel(%arg0: i32, %arg1: memref<32x512xf32, #tpu.memory_space<vmem>>, %arg2: memref<2x512xi32, #tpu.memory_space<vmem>>, %arg3: memref<4x32x32xbf16, #tpu.memory_space<vmem>>, %arg4: memref<32x46xf32, #tpu.memory_space<vmem>>, %arg5: memref<32x512xf32, #tpu.memory_space<vmem>>) attributes {dimension_semantics = [#tpu.dimension_semantics<parallel>], iteration_bounds = array<i64: 1>, scalar_prefetch = 0 : i64, scratch_operands = 0 : i64, tpu.core_type = #tpu.core_type<tc>, window_params = [{transform_indices = @transform_0, window_bounds = array<i64: 32, 512>}, {pipeline_mode = #tpu.pipeline_mode<synchronous>, transform_indices = @transform_1, window_bounds = array<i64: 2, 512>}, {pipeline_mode = #tpu.pipeline_mode<synchronous>, transform_indices = @transform_2, window_bounds = array<i64: 4, 32, 32>}, {pipeline_mode = #tpu.pipeline_mode<synchronous>, transform_indices = @transform_3, window_bounds = array<i64: 32, 46>}, {transform_indices = @transform_4, window_bounds = array<i64: 32, 512>}]} {
    %c0 = arith.constant 0 : index
    %c0_0 = arith.constant 0 : index
    %0 = vector.load %arg1[%c0, %c0_0] : memref<32x512xf32, #tpu.memory_space<vmem>>, vector<32x512xf32>
    %c0_1 = arith.constant 0 : index
    %c0_2 = arith.constant 0 : index
    %1 = vector.load %arg4[%c0_1, %c0_2] : memref<32x46xf32, #tpu.memory_space<vmem>>, vector<32x46xf32>
    %c0_3 = arith.constant 0 : index
    %c0_4 = arith.constant 0 : index
    %c0_5 = arith.constant 0 : index
    %2 = vector.load %arg3[%c0_3, %c0_4, %c0_5] : memref<4x32x32xbf16, #tpu.memory_space<vmem>>, vector<1x32x32xbf16>
    %3 = vector.shape_cast %2 : vector<1x32x32xbf16> to vector<32x32xbf16>
    %4 = arith.truncf %0 : vector<32x512xf32> to vector<32x512xbf16>
    %cst = arith.constant dense<0.000000e+00> : vector<32x512xf32>
    %5 = tpu.matmul %3, %4, %cst {dimension_numbers = #tpu.dot_dimension_numbers<[1], [0], [0], [1], [0, 0, 1, 1], [], []>} : vector<32x32xbf16>, vector<32x512xbf16>, vector<32x512xf32> -> vector<32x512xf32>
    %6 = vector.extract_strided_slice %1 {offsets = [0, 17], sizes = [32, 1], strides = [1, 1]} : vector<32x46xf32> to vector<32x1xf32>
    %7 = vector.broadcast %6 : vector<32x1xf32> to vector<32x512xf32>
    %8 = arith.addf %5, %7 : vector<32x512xf32>
    %c0_6 = arith.constant 0 : index
    %c0_7 = arith.constant 0 : index
    %9 = vector.load %arg2[%c0_6, %c0_7] : memref<2x512xi32, #tpu.memory_space<vmem>>, vector<2x512xi32>
    %10 = vector.extract_strided_slice %9 {offsets = [0, 0], sizes = [1, 512], strides = [1, 1]} : vector<2x512xi32> to vector<1x512xi32>
    %11 = vector.extract_strided_slice %9 {offsets = [1, 0], sizes = [1, 512], strides = [1, 1]} : vector<2x512xi32> to vector<1x512xi32>
    %c1_i32 = arith.constant 1 : i32
    %12 = vector.broadcast %c1_i32 : i32 to vector<1x512xi32>
    %13 = arith.cmpi sge, %10, %12 : vector<1x512xi32>
    %c1_i32_8 = arith.constant 1 : i32
    %14 = vector.broadcast %c1_i32_8 : i32 to vector<1x512xi32>
    %15 = arith.cmpi sge, %11, %14 : vector<1x512xi32>
    %c15_i32 = arith.constant 15 : i32
    %16 = vector.broadcast %c15_i32 : i32 to vector<1x512xi32>
    %17 = arith.cmpi slt, %10, %16 : vector<1x512xi32>
    %c15_i32_9 = arith.constant 15 : i32
    %18 = vector.broadcast %c15_i32_9 : i32 to vector<1x512xi32>
    %19 = arith.cmpi slt, %11, %18 : vector<1x512xi32>
    %c2_i32 = arith.constant 2 : i32
    %20 = vector.broadcast %c2_i32 : i32 to vector<1x512xi32>
    %21 = arith.cmpi sge, %10, %20 : vector<1x512xi32>
    %c2_i32_10 = arith.constant 2 : i32
    %22 = vector.broadcast %c2_i32_10 : i32 to vector<1x512xi32>
    %23 = arith.cmpi sge, %11, %22 : vector<1x512xi32>
    %c14_i32 = arith.constant 14 : i32
    %24 = vector.broadcast %c14_i32 : i32 to vector<1x512xi32>
    %25 = arith.cmpi slt, %10, %24 : vector<1x512xi32>
    %c14_i32_11 = arith.constant 14 : i32
    %26 = vector.broadcast %c14_i32_11 : i32 to vector<1x512xi32>
    %27 = arith.cmpi slt, %11, %26 : vector<1x512xi32>
    %28 = vector.extract_strided_slice %1 {offsets = [0, 0], sizes = [32, 1], strides = [1, 1]} : vector<32x46xf32> to vector<32x1xf32>
    %29 = vector.broadcast %28 : vector<32x1xf32> to vector<32x512xf32>
    %30 = arith.mulf %8, %29 : vector<32x512xf32>
    %c17_i32 = arith.constant 17 : i32
    %31 = tpu.dynamic_rotate %8 by %c17_i32 dim 1 : vector<32x512xf32>, i32 -> vector<32x512xf32>
    %32 = arith.andi %13, %15 : vector<1x512xi1>
    %cst_12 = arith.constant 0.000000e+00 : f32
    %33 = vector.shape_cast %32 : vector<1x512xi1> to vector<1x512xi1>
    %34 = vector.broadcast %33 : vector<1x512xi1> to vector<32x512xi1>
    %35 = vector.broadcast %cst_12 : f32 to vector<32x512xf32>
    %36 = arith.select %34, %31, %35 : vector<32x512xi1>, vector<32x512xf32>
    %37 = vector.extract_strided_slice %1 {offsets = [0, 1], sizes = [32, 1], strides = [1, 1]} : vector<32x46xf32> to vector<32x1xf32>
    %38 = vector.broadcast %37 : vector<32x1xf32> to vector<32x512xf32>
    %39 = arith.mulf %36, %38 : vector<32x512xf32>
    %40 = arith.addf %30, %39 : vector<32x512xf32>
    %c16_i32 = arith.constant 16 : i32
    %41 = tpu.dynamic_rotate %8 by %c16_i32 dim 1 : vector<32x512xf32>, i32 -> vector<32x512xf32>
    %cst_13 = arith.constant 0.000000e+00 : f32
    %42 = vector.shape_cast %13 : vector<1x512xi1> to vector<1x512xi1>
    %43 = vector.broadcast %42 : vector<1x512xi1> to vector<32x512xi1>
    %44 = vector.broadcast %cst_13 : f32 to vector<32x512xf32>
    %45 = arith.select %43, %41, %44 : vector<32x512xi1>, vector<32x512xf32>
    %46 = vector.extract_strided_slice %1 {offsets = [0, 2], sizes = [32, 1], strides = [1, 1]} : vector<32x46xf32> to vector<32x1xf32>
    %47 = vector.broadcast %46 : vector<32x1xf32> to vector<32x512xf32>
    %48 = arith.mulf %45, %47 : vector<32x512xf32>
    %49 = arith.addf %40, %48 : vector<32x512xf32>
    %c15_i32_14 = arith.constant 15 : i32
    %50 = tpu.dynamic_rotate %8 by %c15_i32_14 dim 1 : vector<32x512xf32>, i32 -> vector<32x512xf32>
    %51 = arith.andi %13, %19 : vector<1x512xi1>
    %cst_15 = arith.constant 0.000000e+00 : f32
    %52 = vector.shape_cast %51 : vector<1x512xi1> to vector<1x512xi1>
    %53 = vector.broadcast %52 : vector<1x512xi1> to vector<32x512xi1>
    %54 = vector.broadcast %cst_15 : f32 to vector<32x512xf32>
    %55 = arith.select %53, %50, %54 : vector<32x512xi1>, vector<32x512xf32>
    %56 = vector.extract_strided_slice %1 {offsets = [0, 3], sizes = [32, 1], strides = [1, 1]} : vector<32x46xf32> to vector<32x1xf32>
    %57 = vector.broadcast %56 : vector<32x1xf32> to vector<32x512xf32>
    %58 = arith.mulf %55, %57 : vector<32x512xf32>
    %59 = arith.addf %49, %58 : vector<32x512xf32>
    %c1_i32_16 = arith.constant 1 : i32
    %60 = tpu.dynamic_rotate %8 by %c1_i32_16 dim 1 : vector<32x512xf32>, i32 -> vector<32x512xf32>
    %cst_17 = arith.constant 0.000000e+00 : f32
    %61 = vector.shape_cast %15 : vector<1x512xi1> to vector<1x512xi1>
    %62 = vector.broadcast %61 : vector<1x512xi1> to vector<32x512xi1>
    %63 = vector.broadcast %cst_17 : f32 to vector<32x512xf32>
    %64 = arith.select %62, %60, %63 : vector<32x512xi1>, vector<32x512xf32>
    %65 = vector.extract_strided_slice %1 {offsets = [0, 4], sizes = [32, 1], strides = [1, 1]} : vector<32x46xf32> to vector<32x1xf32>
    %66 = vector.broadcast %65 : vector<32x1xf32> to vector<32x512xf32>
    %67 = arith.mulf %64, %66 : vector<32x512xf32>
    %68 = arith.addf %59, %67 : vector<32x512xf32>
    %c511_i32 = arith.constant 511 : i32
    %69 = tpu.dynamic_rotate %8 by %c511_i32 dim 1 : vector<32x512xf32>, i32 -> vector<32x512xf32>
    %cst_18 = arith.constant 0.000000e+00 : f32
    %70 = vector.shape_cast %19 : vector<1x512xi1> to vector<1x512xi1>
    %71 = vector.broadcast %70 : vector<1x512xi1> to vector<32x512xi1>
    %72 = vector.broadcast %cst_18 : f32 to vector<32x512xf32>
    %73 = arith.select %71, %69, %72 : vector<32x512xi1>, vector<32x512xf32>
    %74 = vector.extract_strided_slice %1 {offsets = [0, 5], sizes = [32, 1], strides = [1, 1]} : vector<32x46xf32> to vector<32x1xf32>
    %75 = vector.broadcast %74 : vector<32x1xf32> to vector<32x512xf32>
    %76 = arith.mulf %73, %75 : vector<32x512xf32>
    %77 = arith.addf %68, %76 : vector<32x512xf32>
    %c497_i32 = arith.constant 497 : i32
    %78 = tpu.dynamic_rotate %8 by %c497_i32 dim 1 : vector<32x512xf32>, i32 -> vector<32x512xf32>
    %79 = arith.andi %17, %15 : vector<1x512xi1>
    %cst_19 = arith.constant 0.000000e+00 : f32
    %80 = vector.shape_cast %79 : vector<1x512xi1> to vector<1x512xi1>
    %81 = vector.broadcast %80 : vector<1x512xi1> to vector<32x512xi1>
    %82 = vector.broadcast %cst_19 : f32 to vector<32x512xf32>
    %83 = arith.select %81, %78, %82 : vector<32x512xi1>, vector<32x512xf32>
    %84 = vector.extract_strided_slice %1 {offsets = [0, 6], sizes = [32, 1], strides = [1, 1]} : vector<32x46xf32> to vector<32x1xf32>
    %85 = vector.broadcast %84 : vector<32x1xf32> to vector<32x512xf32>
    %86 = arith.mulf %83, %85 : vector<32x512xf32>
    %87 = arith.addf %77, %86 : vector<32x512xf32>
    %c496_i32 = arith.constant 496 : i32
    %88 = tpu.dynamic_rotate %8 by %c496_i32 dim 1 : vector<32x512xf32>, i32 -> vector<32x512xf32>
    %cst_20 = arith.constant 0.000000e+00 : f32
    %89 = vector.shape_cast %17 : vector<1x512xi1> to vector<1x512xi1>
    %90 = vector.broadcast %89 : vector<1x512xi1> to vector<32x512xi1>
    %91 = vector.broadcast %cst_20 : f32 to vector<32x512xf32>
    %92 = arith.select %90, %88, %91 : vector<32x512xi1>, vector<32x512xf32>
    %93 = vector.extract_strided_slice %1 {offsets = [0, 7], sizes = [32, 1], strides = [1, 1]} : vector<32x46xf32> to vector<32x1xf32>
    %94 = vector.broadcast %93 : vector<32x1xf32> to vector<32x512xf32>
    %95 = arith.mulf %92, %94 : vector<32x512xf32>
    %96 = arith.addf %87, %95 : vector<32x512xf32>
    %c495_i32 = arith.constant 495 : i32
    %97 = tpu.dynamic_rotate %8 by %c495_i32 dim 1 : vector<32x512xf32>, i32 -> vector<32x512xf32>
    %98 = arith.andi %17, %19 : vector<1x512xi1>
    %cst_21 = arith.constant 0.000000e+00 : f32
    %99 = vector.shape_cast %98 : vector<1x512xi1> to vector<1x512xi1>
    %100 = vector.broadcast %99 : vector<1x512xi1> to vector<32x512xi1>
    %101 = vector.broadcast %cst_21 : f32 to vector<32x512xf32>
    %102 = arith.select %100, %97, %101 : vector<32x512xi1>, vector<32x512xf32>
    %103 = vector.extract_strided_slice %1 {offsets = [0, 8], sizes = [32, 1], strides = [1, 1]} : vector<32x46xf32> to vector<32x1xf32>
    %104 = vector.broadcast %103 : vector<32x1xf32> to vector<32x512xf32>
    %105 = arith.mulf %102, %104 : vector<32x512xf32>
    %106 = arith.addf %96, %105 : vector<32x512xf32>
    %c34_i32 = arith.constant 34 : i32
    %107 = tpu.dynamic_rotate %8 by %c34_i32 dim 1 : vector<32x512xf32>, i32 -> vector<32x512xf32>
    %108 = arith.andi %21, %23 : vector<1x512xi1>
    %cst_22 = arith.constant 0.000000e+00 : f32
    %109 = vector.shape_cast %108 : vector<1x512xi1> to vector<1x512xi1>
    %110 = vector.broadcast %109 : vector<1x512xi1> to vector<32x512xi1>
    %111 = vector.broadcast %cst_22 : f32 to vector<32x512xf32>
    %112 = arith.select %110, %107, %111 : vector<32x512xi1>, vector<32x512xf32>
    %113 = vector.extract_strided_slice %1 {offsets = [0, 9], sizes = [32, 1], strides = [1, 1]} : vector<32x46xf32> to vector<32x1xf32>
    %114 = vector.broadcast %113 : vector<32x1xf32> to vector<32x512xf32>
    %115 = arith.mulf %112, %114 : vector<32x512xf32>
    %116 = arith.addf %106, %115 : vector<32x512xf32>
    %c32_i32 = arith.constant 32 : i32
    %117 = tpu.dynamic_rotate %8 by %c32_i32 dim 1 : vector<32x512xf32>, i32 -> vector<32x512xf32>
    %cst_23 = arith.constant 0.000000e+00 : f32
    %118 = vector.shape_cast %21 : vector<1x512xi1> to vector<1x512xi1>
    %119 = vector.broadcast %118 : vector<1x512xi1> to vector<32x512xi1>
    %120 = vector.broadcast %cst_23 : f32 to vector<32x512xf32>
    %121 = arith.select %119, %117, %120 : vector<32x512xi1>, vector<32x512xf32>
    %122 = vector.extract_strided_slice %1 {offsets = [0, 10], sizes = [32, 1], strides = [1, 1]} : vector<32x46xf32> to vector<32x1xf32>
    %123 = vector.broadcast %122 : vector<32x1xf32> to vector<32x512xf32>
    %124 = arith.mulf %121, %123 : vector<32x512xf32>
    %125 = arith.addf %116, %124 : vector<32x512xf32>
    %c30_i32 = arith.constant 30 : i32
    %126 = tpu.dynamic_rotate %8 by %c30_i32 dim 1 : vector<32x512xf32>, i32 -> vector<32x512xf32>
    %127 = arith.andi %21, %27 : vector<1x512xi1>
    %cst_24 = arith.constant 0.000000e+00 : f32
    %128 = vector.shape_cast %127 : vector<1x512xi1> to vector<1x512xi1>
    %129 = vector.broadcast %128 : vector<1x512xi1> to vector<32x512xi1>
    %130 = vector.broadcast %cst_24 : f32 to vector<32x512xf32>
    %131 = arith.select %129, %126, %130 : vector<32x512xi1>, vector<32x512xf32>
    %132 = vector.extract_strided_slice %1 {offsets = [0, 11], sizes = [32, 1], strides = [1, 1]} : vector<32x46xf32> to vector<32x1xf32>
    %133 = vector.broadcast %132 : vector<32x1xf32> to vector<32x512xf32>
    %134 = arith.mulf %131, %133 : vector<32x512xf32>
    %135 = arith.addf %125, %134 : vector<32x512xf32>
    %c2_i32_25 = arith.constant 2 : i32
    %136 = tpu.dynamic_rotate %8 by %c2_i32_25 dim 1 : vector<32x512xf32>, i32 -> vector<32x512xf32>
    %cst_26 = arith.constant 0.000000e+00 : f32
    %137 = vector.shape_cast %23 : vector<1x512xi1> to vector<1x512xi1>
    %138 = vector.broadcast %137 : vector<1x512xi1> to vector<32x512xi1>
    %139 = vector.broadcast %cst_26 : f32 to vector<32x512xf32>
    %140 = arith.select %138, %136, %139 : vector<32x512xi1>, vector<32x512xf32>
    %141 = vector.extract_strided_slice %1 {offsets = [0, 12], sizes = [32, 1], strides = [1, 1]} : vector<32x46xf32> to vector<32x1xf32>
    %142 = vector.broadcast %141 : vector<32x1xf32> to vector<32x512xf32>
    %143 = arith.mulf %140, %142 : vector<32x512xf32>
    %144 = arith.addf %135, %143 : vector<32x512xf32>
    %c510_i32 = arith.constant 510 : i32
    %145 = tpu.dynamic_rotate %8 by %c510_i32 dim 1 : vector<32x512xf32>, i32 -> vector<32x512xf32>
    %cst_27 = arith.constant 0.000000e+00 : f32
    %146 = vector.shape_cast %27 : vector<1x512xi1> to vector<1x512xi1>
    %147 = vector.broadcast %146 : vector<1x512xi1> to vector<32x512xi1>
    %148 = vector.broadcast %cst_27 : f32 to vector<32x512xf32>
    %149 = arith.select %147, %145, %148 : vector<32x512xi1>, vector<32x512xf32>
    %150 = vector.extract_strided_slice %1 {offsets = [0, 13], sizes = [32, 1], strides = [1, 1]} : vector<32x46xf32> to vector<32x1xf32>
    %151 = vector.broadcast %150 : vector<32x1xf32> to vector<32x512xf32>
    %152 = arith.mulf %149, %151 : vector<32x512xf32>
    %153 = arith.addf %144, %152 : vector<32x512xf32>
    %c482_i32 = arith.constant 482 : i32
    %154 = tpu.dynamic_rotate %8 by %c482_i32 dim 1 : vector<32x512xf32>, i32 -> vector<32x512xf32>
    %155 = arith.andi %25, %23 : vector<1x512xi1>
    %cst_28 = arith.constant 0.000000e+00 : f32
    %156 = vector.shape_cast %155 : vector<1x512xi1> to vector<1x512xi1>
    %157 = vector.broadcast %156 : vector<1x512xi1> to vector<32x512xi1>
    %158 = vector.broadcast %cst_28 : f32 to vector<32x512xf32>
    %159 = arith.select %157, %154, %158 : vector<32x512xi1>, vector<32x512xf32>
    %160 = vector.extract_strided_slice %1 {offsets = [0, 14], sizes = [32, 1], strides = [1, 1]} : vector<32x46xf32> to vector<32x1xf32>
    %161 = vector.broadcast %160 : vector<32x1xf32> to vector<32x512xf32>
    %162 = arith.mulf %159, %161 : vector<32x512xf32>
    %163 = arith.addf %153, %162 : vector<32x512xf32>
    %c480_i32 = arith.constant 480 : i32
    %164 = tpu.dynamic_rotate %8 by %c480_i32 dim 1 : vector<32x512xf32>, i32 -> vector<32x512xf32>
    %cst_29 = arith.constant 0.000000e+00 : f32
    %165 = vector.shape_cast %25 : vector<1x512xi1> to vector<1x512xi1>
    %166 = vector.broadcast %165 : vector<1x512xi1> to vector<32x512xi1>
    %167 = vector.broadcast %cst_29 : f32 to vector<32x512xf32>
    %168 = arith.select %166, %164, %167 : vector<32x512xi1>, vector<32x512xf32>
    %169 = vector.extract_strided_slice %1 {offsets = [0, 15], sizes = [32, 1], strides = [1, 1]} : vector<32x46xf32> to vector<32x1xf32>
    %170 = vector.broadcast %169 : vector<32x1xf32> to vector<32x512xf32>
    %171 = arith.mulf %168, %170 : vector<32x512xf32>
    %172 = arith.addf %163, %171 : vector<32x512xf32>
    %c478_i32 = arith.constant 478 : i32
    %173 = tpu.dynamic_rotate %8 by %c478_i32 dim 1 : vector<32x512xf32>, i32 -> vector<32x512xf32>
    %174 = arith.andi %25, %27 : vector<1x512xi1>
    %cst_30 = arith.constant 0.000000e+00 : f32
    %175 = vector.shape_cast %174 : vector<1x512xi1> to vector<1x512xi1>
    %176 = vector.broadcast %175 : vector<1x512xi1> to vector<32x512xi1>
    %177 = vector.broadcast %cst_30 : f32 to vector<32x512xf32>
    %178 = arith.select %176, %173, %177 : vector<32x512xi1>, vector<32x512xf32>
    %179 = vector.extract_strided_slice %1 {offsets = [0, 16], sizes = [32, 1], strides = [1, 1]} : vector<32x46xf32> to vector<32x1xf32>
    %180 = vector.broadcast %179 : vector<32x1xf32> to vector<32x512xf32>
    %181 = arith.mulf %178, %180 : vector<32x512xf32>
    %182 = arith.addf %172, %181 : vector<32x512xf32>
    %c1 = arith.constant 1 : index
    %c0_31 = arith.constant 0 : index
    %c0_32 = arith.constant 0 : index
    %183 = vector.load %arg3[%c1, %c0_31, %c0_32] : memref<4x32x32xbf16, #tpu.memory_space<vmem>>, vector<1x32x32xbf16>
    %184 = vector.shape_cast %183 : vector<1x32x32xbf16> to vector<32x32xbf16>
    %185 = arith.truncf %182 : vector<32x512xf32> to vector<32x512xbf16>
    %cst_33 = arith.constant dense<0.000000e+00> : vector<32x512xf32>
    %186 = tpu.matmul %184, %185, %cst_33 {dimension_numbers = #tpu.dot_dimension_numbers<[1], [0], [0], [1], [0, 0, 1, 1], [], []>} : vector<32x32xbf16>, vector<32x512xbf16>, vector<32x512xf32> -> vector<32x512xf32>
    %187 = vector.extract_strided_slice %1 {offsets = [0, 18], sizes = [32, 1], strides = [1, 1]} : vector<32x46xf32> to vector<32x1xf32>
    %188 = vector.broadcast %187 : vector<32x1xf32> to vector<32x512xf32>
    %189 = arith.addf %186, %188 : vector<32x512xf32>
    %190 = arith.mulf %189, %189 : vector<32x512xf32>
    %191 = arith.mulf %189, %190 : vector<32x512xf32>
    %cst_34 = arith.constant 4.471500e-02 : f32
    %192 = vector.broadcast %cst_34 : f32 to vector<32x512xf32>
    %193 = arith.mulf %192, %191 : vector<32x512xf32>
    %194 = arith.addf %189, %193 : vector<32x512xf32>
    %cst_35 = arith.constant 0.797884583 : f32
    %195 = vector.broadcast %cst_35 : f32 to vector<32x512xf32>
    %196 = arith.mulf %195, %194 : vector<32x512xf32>
    %197 = math.tanh %196 : vector<32x512xf32>
    %cst_36 = arith.constant 1.000000e+00 : f32
    %198 = vector.broadcast %cst_36 : f32 to vector<32x512xf32>
    %199 = arith.addf %198, %197 : vector<32x512xf32>
    %cst_37 = arith.constant 5.000000e-01 : f32
    %200 = vector.broadcast %cst_37 : f32 to vector<32x512xf32>
    %201 = arith.mulf %200, %199 : vector<32x512xf32>
    %202 = arith.mulf %189, %201 : vector<32x512xf32>
    %203 = arith.addf %202, %8 : vector<32x512xf32>
    %204 = vector.extract_strided_slice %1 {offsets = [0, 22], sizes = [32, 8], strides = [1, 1]} : vector<32x46xf32> to vector<32x8xf32>
    %205 = vector.extract_strided_slice %1 {offsets = [0, 30], sizes = [32, 8], strides = [1, 1]} : vector<32x46xf32> to vector<32x8xf32>
    %206 = vector.extract_strided_slice %1 {offsets = [0, 38], sizes = [1, 8], strides = [1, 1]} : vector<32x46xf32> to vector<1x8xf32>
    %207 = vector.extract_strided_slice %1 {offsets = [0, 21], sizes = [32, 1], strides = [1, 1]} : vector<32x46xf32> to vector<32x1xf32>
    %208 = vector.extract_strided_slice %203 {offsets = [0, 0], sizes = [32, 256], strides = [1, 1]} : vector<32x512xf32> to vector<32x256xf32>
    %cst_38 = arith.constant dense<0.000000e+00> : vector<32xf32>
    %209 = vector.multi_reduction <add>, %208, %cst_38 [1] : vector<32x256xf32> to vector<32xf32>
    %210 = vector.shape_cast %209 : vector<32xf32> to vector<32x1xf32>
    %cst_39 = arith.constant 2.560000e+02 : f32
    %211 = vector.broadcast %cst_39 : f32 to vector<32x1xf32>
    %212 = arith.divf %210, %211 : vector<32x1xf32>
    %213 = vector.broadcast %212 : vector<32x1xf32> to vector<32x8xf32>
    %214 = arith.mulf %204, %213 : vector<32x8xf32>
    %cst_40 = arith.constant dense<0.000000e+00> : vector<8xf32>
    %215 = vector.multi_reduction <add>, %214, %cst_40 [0] : vector<32x8xf32> to vector<8xf32>
    %216 = vector.shape_cast %215 : vector<8xf32> to vector<1x8xf32>
    %217 = arith.addf %216, %206 : vector<1x8xf32>
    %cst_41 = arith.constant 0.000000e+00 : f32
    %218 = vector.broadcast %cst_41 : f32 to vector<1x8xf32>
    %219 = arith.maximumf %217, %218 : vector<1x8xf32>
    %220 = vector.broadcast %219 : vector<1x8xf32> to vector<32x8xf32>
    %221 = arith.mulf %205, %220 : vector<32x8xf32>
    %cst_42 = arith.constant dense<0.000000e+00> : vector<32xf32>
    %222 = vector.multi_reduction <add>, %221, %cst_42 [1] : vector<32x8xf32> to vector<32xf32>
    %223 = vector.shape_cast %222 : vector<32xf32> to vector<32x1xf32>
    %224 = arith.addf %223, %207 : vector<32x1xf32>
    %225 = arith.negf %224 : vector<32x1xf32>
    %226 = math.exp %225 : vector<32x1xf32>
    %cst_43 = arith.constant 1.000000e+00 : f32
    %227 = vector.broadcast %cst_43 : f32 to vector<32x1xf32>
    %228 = arith.addf %227, %226 : vector<32x1xf32>
    %229 = arith.divf %227, %228 : vector<32x1xf32>
    %230 = vector.broadcast %229 : vector<32x1xf32> to vector<32x256xf32>
    %231 = arith.mulf %208, %230 : vector<32x256xf32>
    %232 = vector.extract_strided_slice %203 {offsets = [0, 256], sizes = [32, 256], strides = [1, 1]} : vector<32x512xf32> to vector<32x256xf32>
    %cst_44 = arith.constant dense<0.000000e+00> : vector<32xf32>
    %233 = vector.multi_reduction <add>, %232, %cst_44 [1] : vector<32x256xf32> to vector<32xf32>
    %234 = vector.shape_cast %233 : vector<32xf32> to vector<32x1xf32>
    %cst_45 = arith.constant 2.560000e+02 : f32
    %235 = vector.broadcast %cst_45 : f32 to vector<32x1xf32>
    %236 = arith.divf %234, %235 : vector<32x1xf32>
    %237 = vector.broadcast %236 : vector<32x1xf32> to vector<32x8xf32>
    %238 = arith.mulf %204, %237 : vector<32x8xf32>
    %cst_46 = arith.constant dense<0.000000e+00> : vector<8xf32>
    %239 = vector.multi_reduction <add>, %238, %cst_46 [0] : vector<32x8xf32> to vector<8xf32>
    %240 = vector.shape_cast %239 : vector<8xf32> to vector<1x8xf32>
    %241 = arith.addf %240, %206 : vector<1x8xf32>
    %cst_47 = arith.constant 0.000000e+00 : f32
    %242 = vector.broadcast %cst_47 : f32 to vector<1x8xf32>
    %243 = arith.maximumf %241, %242 : vector<1x8xf32>
    %244 = vector.broadcast %243 : vector<1x8xf32> to vector<32x8xf32>
    %245 = arith.mulf %205, %244 : vector<32x8xf32>
    %cst_48 = arith.constant dense<0.000000e+00> : vector<32xf32>
    %246 = vector.multi_reduction <add>, %245, %cst_48 [1] : vector<32x8xf32> to vector<32xf32>
    %247 = vector.shape_cast %246 : vector<32xf32> to vector<32x1xf32>
    %248 = arith.addf %247, %207 : vector<32x1xf32>
    %249 = arith.negf %248 : vector<32x1xf32>
    %250 = math.exp %249 : vector<32x1xf32>
    %cst_49 = arith.constant 1.000000e+00 : f32
    %251 = vector.broadcast %cst_49 : f32 to vector<32x1xf32>
    %252 = arith.addf %251, %250 : vector<32x1xf32>
    %253 = arith.divf %251, %252 : vector<32x1xf32>
    %254 = vector.broadcast %253 : vector<32x1xf32> to vector<32x256xf32>
    %255 = arith.mulf %232, %254 : vector<32x256xf32>
    %256 = tpu.concatenate %231, %255 in 1 : vector<32x256xf32>, vector<32x256xf32> -> vector<32x512xf32>
    %c2 = arith.constant 2 : index
    %c0_50 = arith.constant 0 : index
    %c0_51 = arith.constant 0 : index
    %257 = vector.load %arg3[%c2, %c0_50, %c0_51] : memref<4x32x32xbf16, #tpu.memory_space<vmem>>, vector<1x32x32xbf16>
    %258 = vector.shape_cast %257 : vector<1x32x32xbf16> to vector<32x32xbf16>
    %259 = arith.truncf %256 : vector<32x512xf32> to vector<32x512xbf16>
    %cst_52 = arith.constant dense<0.000000e+00> : vector<32x512xf32>
    %260 = tpu.matmul %258, %259, %cst_52 {dimension_numbers = #tpu.dot_dimension_numbers<[1], [0], [0], [1], [0, 0, 1, 1], [], []>} : vector<32x32xbf16>, vector<32x512xbf16>, vector<32x512xf32> -> vector<32x512xf32>
    %261 = vector.extract_strided_slice %1 {offsets = [0, 19], sizes = [32, 1], strides = [1, 1]} : vector<32x46xf32> to vector<32x1xf32>
    %262 = vector.broadcast %261 : vector<32x1xf32> to vector<32x512xf32>
    %263 = arith.addf %260, %262 : vector<32x512xf32>
    %264 = arith.mulf %263, %263 : vector<32x512xf32>
    %265 = arith.mulf %263, %264 : vector<32x512xf32>
    %cst_53 = arith.constant 4.471500e-02 : f32
    %266 = vector.broadcast %cst_53 : f32 to vector<32x512xf32>
    %267 = arith.mulf %266, %265 : vector<32x512xf32>
    %268 = arith.addf %263, %267 : vector<32x512xf32>
    %cst_54 = arith.constant 0.797884583 : f32
    %269 = vector.broadcast %cst_54 : f32 to vector<32x512xf32>
    %270 = arith.mulf %269, %268 : vector<32x512xf32>
    %271 = math.tanh %270 : vector<32x512xf32>
    %cst_55 = arith.constant 1.000000e+00 : f32
    %272 = vector.broadcast %cst_55 : f32 to vector<32x512xf32>
    %273 = arith.addf %272, %271 : vector<32x512xf32>
    %cst_56 = arith.constant 5.000000e-01 : f32
    %274 = vector.broadcast %cst_56 : f32 to vector<32x512xf32>
    %275 = arith.mulf %274, %273 : vector<32x512xf32>
    %276 = arith.mulf %263, %275 : vector<32x512xf32>
    %c3 = arith.constant 3 : index
    %c0_57 = arith.constant 0 : index
    %c0_58 = arith.constant 0 : index
    %277 = vector.load %arg3[%c3, %c0_57, %c0_58] : memref<4x32x32xbf16, #tpu.memory_space<vmem>>, vector<1x32x32xbf16>
    %278 = vector.shape_cast %277 : vector<1x32x32xbf16> to vector<32x32xbf16>
    %279 = arith.truncf %276 : vector<32x512xf32> to vector<32x512xbf16>
    %cst_59 = arith.constant dense<0.000000e+00> : vector<32x512xf32>
    %280 = tpu.matmul %278, %279, %cst_59 {dimension_numbers = #tpu.dot_dimension_numbers<[1], [0], [0], [1], [0, 0, 1, 1], [], []>} : vector<32x32xbf16>, vector<32x512xbf16>, vector<32x512xf32> -> vector<32x512xf32>
    %281 = arith.addf %0, %280 : vector<32x512xf32>
    %282 = vector.extract_strided_slice %1 {offsets = [0, 20], sizes = [32, 1], strides = [1, 1]} : vector<32x46xf32> to vector<32x1xf32>
    %283 = vector.broadcast %282 : vector<32x1xf32> to vector<32x512xf32>
    %284 = arith.addf %281, %283 : vector<32x512xf32>
    %c0_60 = arith.constant 0 : index
    %c0_61 = arith.constant 0 : index
    %285 = vector.load %arg5[%c0_60, %c0_61] : memref<32x512xf32, #tpu.memory_space<vmem>>, vector<32x512xf32>
    tpu.vector_store %arg5[%c0_60, %c0_61], %284 {strides = array<i32>} : memref<32x512xf32, #tpu.memory_space<vmem>>, vector<32x512xf32>,
    return
  }
  func.func @transform_0(%arg0: i32) -> (i32, i32) {
    %c0_i32 = arith.constant 0 : i32
    %c0_i32_0 = arith.constant 0 : i32
    return %c0_i32, %arg0 : i32, i32
  }
  func.func @transform_1(%arg0: i32) -> (i32, i32) {
    %c0_i32 = arith.constant 0 : i32
    %c0_i32_0 = arith.constant 0 : i32
    %c0_i32_1 = arith.constant 0 : i32
    return %c0_i32, %c0_i32_0 : i32, i32
  }
  func.func @transform_2(%arg0: i32) -> (i32, i32, i32) {
    %c0_i32 = arith.constant 0 : i32
    %c0_i32_0 = arith.constant 0 : i32
    %c0_i32_1 = arith.constant 0 : i32
    %c0_i32_2 = arith.constant 0 : i32
    return %c0_i32, %c0_i32_0, %c0_i32_1 : i32, i32, i32
  }
  func.func @transform_3(%arg0: i32) -> (i32, i32) {
    %c0_i32 = arith.constant 0 : i32
    %c0_i32_0 = arith.constant 0 : i32
    %c0_i32_1 = arith.constant 0 : i32
    return %c0_i32, %c0_i32_0 : i32, i32
  }
  func.func @transform_4(%arg0: i32) -> (i32, i32) {
    %c0_i32 = arith.constant 0 : i32
    %c0_i32_0 = arith.constant 0 : i32
    return %c0_i32, %arg0 : i32, i32
  }
}

</mosaic_0001>

<bundles_post_ra>
// kernel: efam_forward.1
= control target key start
LH: loop header
LB: loop body
LE: loop exit
PB: predicated region body
PF: predicated region fallthrough
CT: control target
= control target key end

     0   :  { %v3659_v3 = vmov 17   ;;  %v7930_v4 = vmov 0   ;;  %vm8247_vm0 = vcmask 261120   ;;  %v3661_v31 = vmov 1   ;;  %s3663_s7 = smov 17   ;;  %s3664_s8 = smov 16   ;;  %s7925_s0 = inlined_call_operand.vmem [shape: f32[32,512], index: 0, kind: input, shape index: {}]   ;;  %s7926_s3 = inlined_call_operand.vmem [shape: f32[32,46], index: 3, kind: input, shape index: {}]   ;;  %s7927_s2 = inlined_call_operand.vmem [shape: bf16[4,32,32], index: 2, kind: input, shape index: {}]   ;;  %s7928_s1 = inlined_call_operand.vmem [shape: s32[2,512], index: 1, kind: input, shape index: {}]   ;;  %s7929_s4 = inlined_call_operand.vmem [shape: f32[32,512], index: 4, kind: output, shape index: {}]  }
   0x1   :  { %v26_v0 = vld [vmem:[%s7925_s0 + $0x40] sm:$0xff]  ;;  %v27_v2 = vld [vmem:[%s7925_s0 + $0x48] sm:$0xff]  ;;  %3461 = vset.pattern.permute.xlu0 %v3659_v3  ;;  %3463 = vset.pattern.permute.xlu2 %v7930_v4  ;;  %v28_v7 = vld [vmem:[%s7925_s0 + $0x50] sm:$0xff]  ;;  %v3662_v33 = vmov 2   ;;  %s3665_s9 = smov 15   ;;  %s3667_s10 = smov 1  }
   0x2   :  { %v30_v1 = vld [vmem:[%s7925_s0 + $0x60] sm:$0xff]  ;;  %v31_v6 = vld [vmem:[%s7925_s0 + $0x68] sm:$0xff]  ;;  %v32_v8 = vld [vmem:[%s7925_s0 + $0x70] sm:$0xff]  ;;  %3462 = vset.pattern.permute.xlu1 %v3659_v3  ;;  %s3669_s11 = smov 127   ;;  %s3671_s14 = smov 113  }
   0x3   :  { %v46_v5 = vpack.c.bf16 %v30_v1, %v26_v0  ;;  %v47_v9 = vpack.c.bf16 %v31_v6, %v27_v2  ;;  %v48_v10 = vpack.c.bf16 %v32_v8, %v28_v7  ;;  %v29_v11 = vld [vmem:[%s7925_s0 + $0x58] sm:$0xff]  ;;  %v18_v13 = vld [vmem:[%s7925_s0] sm:$0xff]  ;;  %v19_v16 = vld [vmem:[%s7925_s0 + $0x8] sm:$0xff]  ;;  %s3673_s15 = smov 112   ;;  %s3675_s16 = smov 111  }
   0x4   :  { %v33_v12 = vld [vmem:[%s7925_s0 + $0x78] sm:$0xff]  ;;  %v22_v15 = vld [vmem:[%s7925_s0 + $0x20] sm:$0xff]  ;;  %v23_v17 = vld [vmem:[%s7925_s0 + $0x28] sm:$0xff]  ;;  %s3677_s21 = smov 34   ;;  %s3678_s24 = smov 32  }
   0x5   :  { %93 = vmatpush.bf16.msra.mxu0 %v46_v5  ;;  %v49_v14 = vpack.c.bf16 %v33_v12, %v29_v11  ;;  %112 = vmatpush.bf16.msra.mxu1 %v47_v9  ;;  %v42_v18 = vpack.c.bf16 %v22_v15, %v18_v13  ;;  %v43_v19 = vpack.c.bf16 %v23_v17, %v19_v16  ;;  %v20_v20 = vld [vmem:[%s7925_s0 + $0x10] sm:$0xff]  ;;  %v21_v22 = vld [vmem:[%s7925_s0 + $0x18] sm:$0xff]  ;;  %v3776_v25 = vld [vmem:[%s7926_s3] sm:$0xff]  ;;  %v3666_v9 = vmov 3   ;;  %s3680_s27 = smov 30   ;;  %s3682_s28 = smov 2  }
   0x6   :  { %131 = vmatpush.bf16.msra.mxu2 %v48_v10  ;;  %v24_v21 = vld [vmem:[%s7925_s0 + $0x30] sm:$0xff]  ;;  %v25_v24 = vld [vmem:[%s7925_s0 + $0x38] sm:$0xff]  ;;  %v3413_v27 = vld [vmem:[%s7927_s2] sm:$0xff]  ;;  %52 = vperm.xlu0 %3461, %v3776_v25   ;;  %s3684_s29 = smov 126   ;;  %s3686_s30 = smov 98  }
   0x7   :  { %150 = vmatpush.bf16.msra.mxu3 %v49_v14  ;;  %v44_v23 = vpack.c.bf16 %v24_v21, %v20_v20  ;;  %v45_v26 = vpack.c.bf16 %v25_v24, %v21_v22  ;;  %169 = vperm.xlu2 %3463, %v3776_v25   ;;  %v3786_v28 = vld [vmem:[%s7926_s3 + $0x10] sm:$0xff]  ;;  %v3795_v29 = vld [vmem:[%s7926_s3 + $0x8] sm:$0xff]  ;;  %v3801_v30 = vld [vmem:[%s7926_s3 + $0x18] sm:$0xff]  ;;  %s3688_s5 = smov 96   ;;  %s3690_s6 = smov 94  }
   0x8   :  { %62 = vperm.xlu1 %3462, %v3786_v28   ;;  %8325 = vst [vmem:[#allocation2_spill] sm:$0xff] %v3795_v29  ;;  %v3414_v32 = vld [vmem:[%s7927_s2 + $0x8] sm:$0xff] }
   0x9   :  { %94 = vmatpush.bf16.msra.mxu0 %v42_v18  ;;  %113 = vmatpush.bf16.msra.mxu1 %v43_v19  ;;  %8326 = vst [vmem:[#allocation3_spill] sm:$0xff] %v3801_v30 }
   0xa   :  { %132 = vmatpush.bf16.msra.mxu2 %v44_v23 }
   0xb   :  { %151 = vmatpush.bf16.msra.mxu3 %v45_v26 }
   0xc   :  { %3333 = vmatmul.msk.bf16.vlgmr.msra.gmra.mxu0 %vm8247_vm0, %v3413_v27  ;;  %3335 = vmatmul.msk.bf16.vlgmr.msra.gmra.mxu1 %vm8247_vm0, %v3413_v27 }
   0xd   :  { %3337 = vmatmul.msk.bf16.vlgmr.msra.gmra.mxu2 %vm8247_vm0, %v3413_v27 }
   0xe   :  { %3339 = vmatmul.msk.bf16.vlgmr.msra.gmra.mxu3 %vm8247_vm0, %v3413_v27  ;;  %57 = vperm.xlu0 %3461, %v3795_v29  }
   0xf   :  { %173 = vperm.xlu2 %3463, %v3795_v29  }
  0x10   :  { %67 = vperm.xlu1 %3462, %v3801_v30  }
  0x16   :  { %3464 = vset.pattern.permute.xlu0 %v7930_v4 }
  0x17   :  { %3467 = vset.pattern.permute.xlu2 %v3661_v31  ;;  %177 = vperm.xlu0 %3464, %v3786_v28  }
  0x18   :  { %3465 = vset.pattern.permute.xlu1 %v7930_v4  ;;  %290 = vperm.xlu2 %3467, %v3795_v29  }
  0x19   :  { %181 = vperm.xlu1 %3465, %v3801_v30  }
  0x1c   :  { %3334 = vmatmul.msk.bf16.gmra.mxu0 %vm8247_vm0, %v3414_v32  ;;  %3336 = vmatmul.msk.bf16.gmra.mxu1 %vm8247_vm0, %v3414_v32 }
  0x1d   :  { %3338 = vmatmul.msk.bf16.gmra.mxu2 %vm8247_vm0, %v3414_v32 }
  0x1e   :  { %3340 = vmatmul.msk.bf16.gmra.mxu3 %vm8247_vm0, %v3414_v32 }
  0x1f   :  { %3468 = vset.pattern.permute.xlu0 %v3661_v31 }
  0x20   :  { %294 = vperm.xlu0 %3468, %v3786_v28   ;;  %3470 = vset.pattern.permute.xlu2 %v3662_v33 }
  0x21   :  { %3466 = vset.pattern.permute.xlu1 %v3661_v31  ;;  %415 = vperm.xlu2 %3470, %v3795_v29  }
  0x22   :  { %286 = vperm.xlu1 %3466, %v3776_v25  }
  0x28   :  { %3471 = vset.pattern.permute.xlu0 %v3662_v33 }
  0x29   :  { %419 = vperm.xlu0 %3471, %v3786_v28   ;;  %3473 = vset.pattern.permute.xlu2 %v3666_v9 }
  0x2a   :  { %298 = vperm.xlu1 %3466, %v3801_v30  }
  0x31   :  { %3474 = vset.pattern.permute.xlu0 %v3666_v9 }
  0x32   :  { %3469 = vset.pattern.permute.xlu1 %v3662_v33 }
  0x33   :  { %411 = vperm.xlu1 %3469, %v3776_v25  }
  0x3b   :  { %423 = vperm.xlu1 %3469, %v3801_v30  }
  0x43   :  { %3472 = vset.pattern.permute.xlu1 %v3666_v9 }
  0x61   :  { %v3881_v54 = vpop.permute.xlu2 %169 }
  0x62   :  { %8335 = vst [vmem:[#allocation12_spill] sm:$0xff] %v3881_v54 }
  0x69   :  { %v3891_v57 = vpop.permute.xlu2 %173 }
  0x6a   :  { %8337 = vst [vmem:[#allocation14_spill] sm:$0xff] %v3891_v57 }
  0x72   :  { %v3905_v63 = vpop.permute.xlu2 %290 }
  0x78   :  { %v53_v34 = vpop.permute.xlu0 %52 }
  0x7a   :  { %v63_v52 = vpop.permute.xlu1 %62 }
  0x7b   :  { %v3921_v3 = vpop.permute.xlu2 %415 }
  0x7c   :  { %8343 = vst [vmem:[#allocation20_spill] sm:$0xff] %v3921_v3 }
  0x80   :  { %v58_v43 = vpop.permute.xlu0 %57 }
  0x82   :  { %v68_v56 = vpop.permute.xlu1 %67 }
  0x89   :  { %v96_v35 = vpop.f32.mrf.mxu0  ;;  %v115_v37 = vpop.f32.mrf.mxu1 }
  0x8a   :  { %v3825_v36 = vadd.f32 %v96_v35, %v53_v34  ;;  %v3827_v38 = vadd.f32 %v115_v37, %v53_v34  ;;  %v3939_v12 = vpop.permute.xlu0 %177 }
  0x8b   :  { %v3901_v61 = vpop.permute.xlu1 %181 }
  0x8c   :  { %8327 = vst [vmem:[#allocation4_spill] sm:$0xff] %v3825_v36  ;;  %200 = vrot.lane.b32.xlu2 %v3825_v36, %s3663_s7  ;;  %208 = vrot.lane.b32.xlu1 %v3827_v38, %s3663_s7 }
  0x8d   :  { %8328 = vst [vmem:[#allocation5_spill] sm:$0xff] %v3827_v38 }
  0x8e   :  { %8339 = vst [vmem:[#allocation16_spill] sm:$0xff] %v3901_v61 }
  0x90   :  { %v134_v41 = vpop.f32.mrf.mxu2 }
  0x91   :  { %v153_v39 = vpop.f32.mrf.mxu3  ;;  %v98_v42 = vpop.f32.mrf.mxu0  ;;  %v3847_v44 = vadd.f32 %v134_v41, %v53_v34  ;;  %v3668_v41 = vmov 4  }
  0x92   :  { %v3833_v40 = vadd.f32 %v153_v39, %v53_v34  ;;  %v3849_v45 = vadd.f32 %v98_v42, %v58_v43  ;;  %v117_v48 = vpop.f32.mrf.mxu1  ;;  %v3953_v17 = vpop.permute.xlu0 %294 }
  0x93   :  { %8330 = vst [vmem:[#allocation7_spill] sm:$0xff] %v3847_v44  ;;  %v3871_v50 = vadd.f32 %v117_v48, %v58_v43 }
  0x94   :  { %8329 = vst [vmem:[#allocation6_spill] sm:$0xff] %v3833_v40  ;;  %224 = vrot.lane.b32.xlu0 %v3833_v40, %s3663_s7  ;;  %333 = vrot.lane.b32.xlu2 %v3825_v36, %s3664_s8  ;;  %v3913_v1 = vpop.permute.xlu1 %286 }
  0x95   :  { %341 = vrot.lane.b32.xlu1 %v3827_v38, %s3664_s8  ;;  %8331 = vst [vmem:[#allocation8_spill] sm:$0xff] %v3849_v45 }
  0x96   :  { %8333 = vst [vmem:[#allocation10_spill] sm:$0xff] %v3871_v50 }
  0x97   :  { %8341 = vst [vmem:[#allocation18_spill] sm:$0xff] %v3913_v1 }
  0x98   :  { %v136_v46 = vpop.f32.mrf.mxu2  ;;  %8349 = vst [vmem:[#allocation26_spill] sm:$0xff] %v3953_v17 }
  0x99   :  { %v3857_v47 = vadd.f32 %v136_v46, %v58_v43  ;;  %v155_v49 = vpop.f32.mrf.mxu3  ;;  %v101_v60 = vpop.f32.mrf.mxu0 }
  0x9a   :  { %v3873_v51 = vadd.f32 %v155_v49, %v58_v43  ;;  %v120_v53 = vpop.f32.mrf.mxu1  ;;  %v3903_v62 = vadd.f32 %v101_v60, %v63_v52 }
  0x9b   :  { %8332 = vst [vmem:[#allocation9_spill] sm:$0xff] %v3857_v47  ;;  %v3883_v55 = vadd.f32 %v120_v53, %v63_v52  ;;  %v3967_v20 = vpop.permute.xlu0 %419 }
  0x9c   :  { %357 = vrot.lane.b32.xlu0 %v3833_v40, %s3664_s8  ;;  %458 = vrot.lane.b32.xlu2 %v3825_v36, %s3665_s9  ;;  %8334 = vst [vmem:[#allocation11_spill] sm:$0xff] %v3873_v51  ;;  %v3927_v7 = vpop.permute.xlu1 %298 }
  0x9d   :  { %466 = vrot.lane.b32.xlu1 %v3827_v38, %s3665_s9  ;;  %8336 = vst [vmem:[#allocation13_spill] sm:$0xff] %v3883_v55 }
  0x9e   :  { %8340 = vst [vmem:[#allocation17_spill] sm:$0xff] %v3903_v62 }
  0x9f   :  { %8345 = vst [vmem:[#allocation22_spill] sm:$0xff] %v3927_v7 }
  0xa0   :  { %v139_v58 = vpop.f32.mrf.mxu2  ;;  %8351 = vst [vmem:[#allocation28_spill] sm:$0xff] %v3967_v20 }
  0xa1   :  { %v3893_v59 = vadd.f32 %v139_v58, %v63_v52  ;;  %v103_v0 = vpop.f32.mrf.mxu0  ;;  %v158_v8 = vpop.f32.mrf.mxu3 }
  0xa2   :  { %v3915_v2 = vadd.f32 %v103_v0, %v68_v56  ;;  %v122_v5 = vpop.f32.mrf.mxu1  ;;  %v3937_v11 = vadd.f32 %v158_v8, %v63_v52 }
  0xa3   :  { %8338 = vst [vmem:[#allocation15_spill] sm:$0xff] %v3893_v59  ;;  %v3925_v6 = vadd.f32 %v122_v5, %v68_v56 }
  0xa4   :  { %482 = vrot.lane.b32.xlu0 %v3833_v40, %s3665_s9  ;;  %216 = vrot.lane.b32.xlu2 %v3847_v44, %s3663_s7  ;;  %8342 = vst [vmem:[#allocation19_spill] sm:$0xff] %v3915_v2 }
  0xa5   :  { %202 = vrot.lane.b32.xlu1 %v3849_v45, %s3663_s7  ;;  %8344 = vst [vmem:[#allocation21_spill] sm:$0xff] %v3925_v6  ;;  %v3945_v13 = vpop.permute.xlu1 %411 }
  0xa6   :  { %8346 = vst [vmem:[#allocation23_spill] sm:$0xff] %v3937_v11 }
  0xa7   :  { %8347 = vst [vmem:[#allocation24_spill] sm:$0xff] %v3945_v13 }
  0xa8   :  { %v141_v22 = vpop.f32.mrf.mxu2 }
  0xa9   :  { %v160_v15 = vpop.f32.mrf.mxu3  ;;  %v3977_v24 = vadd.f32 %v141_v22, %v68_v56  ;;  %v4077_v22 = vld [vmem:[%s7928_s1] sm:$0xff] }
  0xaa   :  { %v3951_v16 = vadd.f32 %v160_v15, %v68_v56  ;;  %8370 = vst [vmem:[#allocation47_spill] sm:$0xff] %v4077_v22  ;;  %vm164_vm1 = vcmp.ge.s32.totalorder %v4077_v22, 1  ;;  %vm165_vm2 = vcmp.lt.s32.totalorder %v4077_v22, 15 }
  0xab   :  { %8354 = vst [vmem:[#allocation31_spill] sm:$0xff] %v3977_v24 }
  0xac   :  { %218 = vrot.lane.b32.xlu0 %v3857_v47, %s3663_s7  ;;  %349 = vrot.lane.b32.xlu2 %v3847_v44, %s3664_s8  ;;  %8348 = vst [vmem:[#allocation25_spill] sm:$0xff] %v3951_v16 }
  0xad   :  { %335 = vrot.lane.b32.xlu1 %v3849_v45, %s3664_s8  ;;  %v3963_v19 = vpop.permute.xlu1 %423 }
  0xae   :  { %8350 = vst [vmem:[#allocation27_spill] sm:$0xff] %v3963_v19 }
  0xb4   :  { %351 = vrot.lane.b32.xlu0 %v3857_v47, %s3664_s8  ;;  %474 = vrot.lane.b32.xlu2 %v3847_v44, %s3665_s9 }
  0xb5   :  { %460 = vrot.lane.b32.xlu1 %v3849_v45, %s3665_s9 }
  0xbc   :  { %476 = vrot.lane.b32.xlu0 %v3857_v47, %s3665_s9  ;;  %210 = vrot.lane.b32.xlu2 %v3871_v50, %s3663_s7 }
  0xbd   :  { %226 = vrot.lane.b32.xlu1 %v3873_v51, %s3663_s7 }
  0xc4   :  { %212 = vrot.lane.b32.xlu0 %v3883_v55, %s3663_s7  ;;  %343 = vrot.lane.b32.xlu2 %v3871_v50, %s3664_s8 }
  0xc5   :  { %359 = vrot.lane.b32.xlu1 %v3873_v51, %s3664_s8 }
  0xcc   :  { %345 = vrot.lane.b32.xlu0 %v3883_v55, %s3664_s8  ;;  %468 = vrot.lane.b32.xlu2 %v3871_v50, %s3665_s9 }
  0xcd   :  { %220 = vrot.lane.b32.xlu1 %v3893_v59, %s3663_s7 }
  0xd4   :  { %470 = vrot.lane.b32.xlu0 %v3883_v55, %s3665_s9  ;;  %204 = vrot.lane.b32.xlu2 %v3903_v62, %s3663_s7 }
  0xd5   :  { %353 = vrot.lane.b32.xlu1 %v3893_v59, %s3664_s8 }
  0xdc   :  { %206 = vrot.lane.b32.xlu0 %v3915_v2, %s3663_s7  ;;  %337 = vrot.lane.b32.xlu2 %v3903_v62, %s3664_s8 }
  0xdd   :  { %478 = vrot.lane.b32.xlu1 %v3893_v59, %s3665_s9 }
  0xe4   :  { %339 = vrot.lane.b32.xlu0 %v3915_v2, %s3664_s8  ;;  %462 = vrot.lane.b32.xlu2 %v3903_v62, %s3665_s9 }
  0xe5   :  { %214 = vrot.lane.b32.xlu1 %v3925_v6, %s3663_s7 }
  0xe6   :  { %v3935_v10 = vpop.permute.xlu2 %200 }
  0xec   :  { %464 = vrot.lane.b32.xlu0 %v3915_v2, %s3665_s9  ;;  %228 = vrot.lane.b32.xlu2 %v3937_v11, %s3663_s7 }
  0xed   :  { %347 = vrot.lane.b32.xlu1 %v3925_v6, %s3664_s8 }
  0xee   :  { %v3949_v14 = vpop.permute.xlu2 %333 }
  0xf4   :  { %230 = vrot.lane.b32.xlu0 %v3951_v16, %s3663_s7  ;;  %361 = vrot.lane.b32.xlu2 %v3937_v11, %s3664_s8 }
  0xf5   :  { %472 = vrot.lane.b32.xlu1 %v3925_v6, %s3665_s9 }
  0xf6   :  { %v3961_v18 = vpop.permute.xlu2 %458 }
  0xfc   :  { %363 = vrot.lane.b32.xlu0 %v3951_v16, %s3664_s8  ;;  %486 = vrot.lane.b32.xlu2 %v3937_v11, %s3665_s9 }
  0xfd   :  { %484 = vrot.lane.b32.xlu1 %v3873_v51, %s3665_s9 }
  0xfe   :  { %v3973_v21 = vpop.permute.xlu2 %216  ;;  %v3975_v23 = vpop.permute.xlu1 %208 }
  0xff   :  { %8352 = vst [vmem:[#allocation29_spill] sm:$0xff] %v3973_v21 }
 0x100   :  { %8353 = vst [vmem:[#allocation30_spill] sm:$0xff] %v3975_v23 }
 0x104   :  { %488 = vrot.lane.b32.xlu0 %v3951_v16, %s3665_s9  ;;  %222 = vrot.lane.b32.xlu2 %v3977_v24, %s3663_s7  ;;  %s3695_s7 = smov 8  }
 0x105   :  { %542 = vperm.xlu1 %3472, %v3776_v25  }
 0x106   :  { %v3984_v26 = vpop.permute.xlu0 %224  ;;  %v3986_v27 = vpop.permute.xlu2 %349 }
 0x107   :  { %8355 = vst [vmem:[#allocation32_spill] sm:$0xff] %v3984_v26  ;;  %v3988_v31 = vpop.permute.xlu1 %341 }
 0x108   :  { %8356 = vst [vmem:[#allocation33_spill] sm:$0xff] %v3986_v27 }
 0x109   :  { %8357 = vst [vmem:[#allocation34_spill] sm:$0xff] %v3988_v31 }
 0x10c   :  { %550 = vperm.xlu0 %3474, %v3786_v28   ;;  %355 = vrot.lane.b32.xlu2 %v3977_v24, %s3664_s8 }
 0x10d   :  { %554 = vperm.xlu1 %3472, %v3801_v30  }
 0x10e   :  { %v3994_v32 = vpop.permute.xlu0 %357  ;;  %v3996_v33 = vpop.permute.xlu2 %474 }
 0x10f   :  { %8358 = vst [vmem:[#allocation35_spill] sm:$0xff] %v3994_v32  ;;  %v3998_v34 = vpop.permute.xlu1 %466 }
 0x110   :  { %8359 = vst [vmem:[#allocation36_spill] sm:$0xff] %v3996_v33  ;;  %v8373_v33 = vmov 0  }
 0x111   :  { %8360 = vst [vmem:[#allocation37_spill] sm:$0xff] %v3998_v34 }
 0x114   :  { %595 = vrot.lane.b32.xlu0 %v3915_v2, %s3667_s10  ;;  %480 = vrot.lane.b32.xlu2 %v3977_v24, %s3665_s9 }
 0x115   :  { %591 = vrot.lane.b32.xlu1 %v3849_v45, %s3667_s10  ;;  %3477 = vset.pattern.permute.xlu0 %v3668_v41 }
 0x116   :  { %v4006_v35 = vpop.permute.xlu0 %482  ;;  %v4008_v37 = vpop.permute.xlu2 %210  ;;  %3475 = vset.pattern.permute.xlu1 %v3668_v41 }
 0x117   :  { %v4010_v39 = vpop.permute.xlu1 %202 }
 0x11c   :  { %601 = vrot.lane.b32.xlu0 %v3883_v55, %s3667_s10  ;;  %546 = vperm.xlu2 %3473, %v3795_v29  }
 0x11d   :  { %597 = vrot.lane.b32.xlu1 %v3827_v38, %s3667_s10 }
 0x11e   :  { %v4017_v42 = vpop.permute.xlu0 %218  ;;  %v4019_v43 = vpop.permute.xlu2 %343 }
 0x11f   :  { %8361 = vst [vmem:[#allocation38_spill] sm:$0xff] %v4017_v42  ;;  %v4021_v46 = vpop.permute.xlu1 %335 }
 0x120   :  { %8362 = vst [vmem:[#allocation39_spill] sm:$0xff] %v4019_v43 }
 0x124   :  { %607 = vrot.lane.b32.xlu0 %v3857_v47, %s3667_s10  ;;  %589 = vrot.lane.b32.xlu2 %v3825_v36, %s3667_s10 }
 0x125   :  { %603 = vrot.lane.b32.xlu1 %v3925_v6, %s3667_s10  ;;  %3476 = vset.pattern.permute.xlu2 %v3668_v41 }
 0x126   :  { %v4029_v48 = vpop.permute.xlu0 %351  ;;  %v4031_v49 = vpop.permute.xlu2 %468 }
 0x127   :  { %8363 = vst [vmem:[#allocation40_spill] sm:$0xff] %v4029_v48  ;;  %v4033_v52 = vpop.permute.xlu1 %460  ;;  %v4089_v48 = vsel %vm164_vm1, 1, %v8373_v33 }
 0x128   :  { %8364 = vst [vmem:[#allocation41_spill] sm:$0xff] %v4031_v49  ;;  %v3341_v27 = vrot.slane %v4089_v48, 9 }
 0x129   :  { %8374 = vst [vmem:[#allocation50_spill] sm:$0xff] %v4089_v48 }
 0x12a   :  { %vm4105_vm3 = vcmp.ne.s32.totalorder %v3341_v27, 0 }
 0x12b   :  { %vm255_vm4 = vmand %vm164_vm1, %vm4105_vm3 }
 0x12c   :  { %613 = vrot.lane.b32.xlu0 %v3833_v40, %s3667_s10  ;;  %593 = vrot.lane.b32.xlu2 %v3903_v62, %s3667_s10  ;;  %v4131_v19 = vsel %vm255_vm4, 1, %v8373_v33 }
 0x12d   :  { %609 = vrot.lane.b32.xlu1 %v3893_v59, %s3667_s10  ;;  %8382 = vst [vmem:[#allocation56_spill] sm:$0xff] %v4131_v19  ;;  %v258_v7 = vperm.slane %v4131_v19, 2 }
 0x12e   :  { %v4041_v53 = vpop.permute.xlu0 %476  ;;  %v4043_v56 = vpop.permute.xlu2 %204 }
 0x12f   :  { %8365 = vst [vmem:[#allocation42_spill] sm:$0xff] %v4041_v53  ;;  %v4045_v58 = vpop.permute.xlu1 %226 }
 0x130   :  { %8366 = vst [vmem:[#allocation43_spill] sm:$0xff] %v4045_v58 }
 0x134   :  { %619 = vrot.lane.b32.xlu0 %v3951_v16, %s3667_s10  ;;  %599 = vrot.lane.b32.xlu2 %v3871_v50, %s3667_s10 }
 0x135   :  { %615 = vrot.lane.b32.xlu1 %v3873_v51, %s3667_s10 }
 0x136   :  { %v4053_v60 = vpop.permute.xlu0 %212  ;;  %v4055_v0 = vpop.permute.xlu2 %337 }
 0x137   :  { %v4057_v5 = vpop.permute.xlu1 %359 }
 0x138   :  { %8367 = vst [vmem:[#allocation44_spill] sm:$0xff] %v4057_v5 }
 0x13c   :  { %675 = vperm.xlu0 %3477, %v3786_v28   ;;  %605 = vrot.lane.b32.xlu2 %v3847_v44, %s3667_s10 }
 0x13d   :  { %667 = vperm.xlu1 %3475, %v3776_v25  }
 0x13e   :  { %v4063_v8 = vpop.permute.xlu0 %345  ;;  %v4065_v9 = vpop.permute.xlu2 %462 }
 0x13f   :  { %8368 = vst [vmem:[#allocation45_spill] sm:$0xff] %v4065_v9  ;;  %v4067_v15 = vpop.permute.xlu1 %220  ;;  %v257_v9 = vperm.slane %v4131_v19, 0  ;;  %v382_v19 = vperm.slane %v4089_v48, 0 }
 0x140   :  { %8369 = vst [vmem:[#allocation46_spill] sm:$0xff] %v4067_v15  ;;  %v3670_v15 = vmov 5  }
 0x141   :  { %v4161_v20 = vperm.slane %v257_v9, 0 }
 0x143   :  { %vm265_vm10 = vcmp.eq.s32.totalorder %v4161_v20, 1 }
 0x144   :  { %720 = vrot.lane.b32.xlu0 %v3915_v2, %s3669_s11  ;;  %611 = vrot.lane.b32.xlu2 %v3977_v24, %s3667_s10  ;;  %v232_v24 = vlaneseq }
 0x145   :  { %679 = vperm.xlu1 %3475, %v3801_v30   ;;  %3480 = vset.pattern.permute.xlu0 %v3670_v15  ;;  %v8377_v30 = vmov 0 }
 0x146   :  { %v4079_v41 = vpop.permute.xlu0 %470  ;;  %v4081_v4 = vpop.permute.xlu2 %228  ;;  %v8378_v30 = vsel %vm4105_vm3, 4294967295, %v8377_v30 }
 0x147   :  { %8371 = vst [vmem:[#allocation48_spill] sm:$0xff] %v4079_v41  ;;  %v4083_v53 = vpop.permute.xlu1 %353 }
 0x148   :  { %8372 = vst [vmem:[#allocation49_spill] sm:$0xff] %v4083_v53 }
 0x149   :  { %8379 = vst [vmem:[#allocation53_spill] sm:$0xff] %v8378_v30  ;;  %v8383_v30 = vmov 0 }
 0x14c   :  { %726 = vrot.lane.b32.xlu0 %v3883_v55, %s3669_s11  ;;  %617 = vrot.lane.b32.xlu2 %v3937_v11, %s3667_s10  ;;  %v4115_v11 = vsel %vm165_vm2, 1, %v8373_v33 }
 0x14d   :  { %716 = vrot.lane.b32.xlu1 %v3849_v45, %s3669_s11  ;;  %8380 = vst [vmem:[#allocation54_spill] sm:$0xff] %v4115_v11 }
 0x14e   :  { %v4097_v42 = vpop.permute.xlu0 %206  ;;  %v4099_v53 = vpop.permute.xlu2 %361  ;;  %3478 = vset.pattern.permute.xlu1 %v3670_v15 }
 0x14f   :  { %8375 = vst [vmem:[#allocation51_spill] sm:$0xff] %v4099_v53  ;;  %v4102_v21 = vpop.permute.xlu1 %478 }
 0x150   :  { %8376 = vst [vmem:[#allocation52_spill] sm:$0xff] %v4102_v21 }
 0x154   :  { %732 = vrot.lane.b32.xlu0 %v3857_v47, %s3669_s11  ;;  %671 = vperm.xlu2 %3476, %v3795_v29   ;;  %v3342_v29 = vrot.slane %v4115_v11, 9  ;;  %v383_v11 = vperm.slane %v4089_v48, 2  ;;  %v4166_v48 = vperm.slane %v382_v19, 0  ;;  %v184_v19 = vmul.f32 %v3881_v54, %v3825_v36 }
 0x155   :  { %722 = vrot.lane.b32.xlu1 %v3827_v38, %s3669_s11 }
 0x156   :  { %v4123_v27 = vpop.permute.xlu0 %339  ;;  %v4125_v21 = vpop.permute.xlu2 %486  ;;  %vm4135_vm5 = vcmp.ne.s32.totalorder %v3342_v29, 0  ;;  %vm390_vm12 = vcmp.eq.s32.totalorder %v4166_v48, 1 }
 0x157   :  { %8381 = vst [vmem:[#allocation55_spill] sm:$0xff] %v4125_v21  ;;  %v4127_v47 = vpop.permute.xlu1 %214  ;;  %v8384_v30 = vsel %vm4135_vm5, 4294967295, %v8383_v30  ;;  %v4143_v21 = vand.u32 127, %v232_v24  ;;  %vm511_vm6 = vmand %vm164_vm1, %vm4135_vm5  ;;  %v4159_v24 = vperm.slane %v258_v7, 0 }
 0x158   :  { %8385 = vst [vmem:[#allocation57_spill] sm:$0xff] %v8384_v30  ;;  %v185_v30 = vmul.f32 %v3881_v54, %v3827_v38 }
 0x159   :  { %vm234_vm7 = vcmp.lt.s32.totalorder %v4143_v21, 17  ;;  %vm365_vm8 = vcmp.lt.s32.totalorder %v4143_v21, 16  ;;  %vm266_vm9 = vcmp.eq.s32.totalorder %v4159_v24, 1  ;;  %vm490_vm13 = vcmp.lt.s32.totalorder %v4143_v21, 15 }
 0x15a   :  { %v243_v7 = vsel %vm234_vm7, %v3935_v10, %v3975_v23  ;;  %vm621_vm1 = vcmp.lt.s32.totalorder %v4143_v21, 1 }
 0x15c   :  { %738 = vrot.lane.b32.xlu0 %v3833_v40, %s3669_s11  ;;  %714 = vrot.lane.b32.xlu2 %v3825_v36, %s3669_s11 }
 0x15d   :  { %728 = vrot.lane.b32.xlu1 %v3925_v6, %s3669_s11  ;;  %3479 = vset.pattern.permute.xlu2 %v3670_v15  ;;  %v4164_v15 = vperm.slane %v383_v11, 0  ;;  %v247_v11 = vsel %vm234_vm7, %v3984_v26, %v3935_v10  ;;  %v374_v10 = vsel %vm365_vm8, %v3949_v14, %v3988_v31 }
 0x15e   :  { %v4149_v29 = vpop.permute.xlu0 %464  ;;  %v4151_v41 = vpop.permute.xlu2 %222  ;;  %v269_v31 = vsel %vm265_vm10, %v247_v11, 0.0 }
 0x15f   :  { %8386 = vst [vmem:[#allocation58_spill] sm:$0xff] %v4149_v29  ;;  %v4157_v40 = vpop.permute.xlu1 %347  ;;  %v4169_v29 = vsel %vm511_vm6, 1, %v8373_v33  ;;  %vm391_vm11 = vcmp.eq.s32.totalorder %v4164_v15, 1  ;;  %v270_v33 = vsel %vm266_vm9, %v243_v7, 0.0  ;;  %v244_v7 = vsel %vm234_vm7, %v4010_v39, %v4008_v37 }
 0x160   :  { %8387 = vst [vmem:[#allocation59_spill] sm:$0xff] %v4151_v41  ;;  %v514_v9 = vperm.slane %v4169_v29, 2  ;;  %v378_v41 = vsel %vm365_vm8, %v3994_v32, %v3949_v14  ;;  %v513_v22 = vperm.slane %v4169_v29, 0  ;;  %v188_v14 = vmul.f32 %v3891_v57, %v3849_v45 }
 0x161   :  { %8388 = vst [vmem:[#allocation60_spill] sm:$0xff] %v4157_v40  ;;  %v189_v32 = vmul.f32 %v3891_v57, %v3871_v50  ;;  %v395_v11 = vsel %vm391_vm11, %v374_v10, 0.0  ;;  %v394_v54 = vsel %vm390_vm12, %v378_v41, 0.0  ;;  %v248_v57 = vsel %vm234_vm7, %v4045_v58, %v4010_v39 }
 0x162   :  { %8389 = vst [vmem:[#allocation61_spill] sm:$0xff] %v4169_v29  ;;  %v4230_v29 = vperm.slane %v514_v9, 0  ;;  %v301_v36 = vmul.f32 %v3913_v1, %v269_v31  ;;  %v375_v10 = vsel %vm365_vm8, %v4021_v46, %v4019_v43  ;;  %v4245_v41 = vmul.f32 %v3939_v12, %v3883_v55 }
 0x163   :  { %v4247_v9 = vperm.slane %v513_v22, 0  ;;  %v274_v39 = vsel %vm266_vm9, %v244_v7, 0.0  ;;  %v379_v31 = vsel %vm365_vm8, %v4057_v5, %v4021_v46  ;;  %v427_v58 = vmul.f32 %v3945_v13, %v395_v11 }
 0x164   :  { %744 = vrot.lane.b32.xlu0 %v3951_v16, %s3669_s11  ;;  %718 = vrot.lane.b32.xlu2 %v3903_v62, %s3669_s11  ;;  %v426_v43 = vmul.f32 %v3945_v13, %v394_v54  ;;  %v273_v22 = vsel %vm265_vm10, %v248_v57, 0.0  ;;  %v4268_v7 = vmul.f32 %v3901_v61, %v3925_v6  ;;  %vm522_vm14 = vcmp.eq.s32.totalorder %v4230_v29, 1 }
 0x165   :  { %734 = vrot.lane.b32.xlu1 %v3893_v59, %s3669_s11  ;;  %v499_v46 = vsel %vm490_vm13, %v3961_v18, %v3998_v34  ;;  %v399_v54 = vsel %vm391_vm11, %v375_v10, 0.0  ;;  %v317_v11 = vadd.f32 %v301_v36, %v184_v19  ;;  %v306_v5 = vmul.f32 %v3905_v63, %v274_v39 }
 0x166   :  { %v4201_v26 = vpop.permute.xlu0 %230  ;;  %v4203_v23 = vpop.permute.xlu2 %355  ;;  %v398_v13 = vsel %vm390_vm12, %v379_v31, 0.0  ;;  %vm521_vm15 = vcmp.eq.s32.totalorder %v4247_v9, 1  ;;  %v503_v10 = vsel %vm490_vm13, %v4006_v35, %v3961_v18  ;;  %v305_v34 = vmul.f32 %v3905_v63, %v273_v22 }
 0x167   :  { %8390 = vst [vmem:[#allocation62_spill] sm:$0xff] %v4201_v26  ;;  %v4212_v59 = vpop.permute.xlu1 %472  ;;  %v442_v19 = vadd.f32 %v426_v43, %v317_v11  ;;  %v526_v39 = vsel %vm522_vm14, %v499_v46, 0.0  ;;  %v431_v31 = vmul.f32 %v3921_v3, %v399_v54  ;;  %v500_v18 = vsel %vm490_vm13, %v4033_v52, %v4031_v49 }
 0x168   :  { %8391 = vst [vmem:[#allocation63_spill] sm:$0xff] %v4203_v23  ;;  %v4220_v23 = vmul.f32 %v3939_v12, %v3903_v62  ;;  %v302_v62 = vmul.f32 %v3913_v1, %v270_v33  ;;  %v4257_v33 = vmul.f32 %v3901_v61, %v3915_v2  ;;  %v430_v22 = vmul.f32 %v3921_v3, %v398_v13 }
 0x169   :  { %8392 = vst [vmem:[#allocation64_spill] sm:$0xff] %v4212_v59  ;;  %v249_v43 = vsel %vm234_vm7, %v4081_v4, %v4043_v56  ;;  %v322_v46 = vadd.f32 %v306_v5, %v189_v32  ;;  %v380_v13 = vsel %vm365_vm8, %v4099_v53, %v4055_v0  ;;  %v246_v11 = vsel %vm234_vm7, %v4097_v42, %v4127_v47 }
 0x16a   :  { %v318_v57 = vadd.f32 %v302_v62, %v185_v30  ;;  %v245_v30 = vsel %vm234_vm7, %v4043_v56, %v4053_v60  ;;  %v250_v56 = vsel %vm234_vm7, %v4201_v26, %v4097_v42 }
 0x16b   :  { %v278_v54 = vsel %vm266_vm9, %v245_v30, 0.0  ;;  %v447_v5 = vadd.f32 %v431_v31, %v322_v46  ;;  %v282_v30 = vsel %vm266_vm9, %v246_v11, 0.0  ;;  %v281_v31 = vsel %vm265_vm10, %v250_v56, 0.0  ;;  %v8400_v56 = vld [vmem:[#allocation48_spill] sm:$0xff] }
 0x16c   :  { %800 = vperm.xlu0 %3480, %v3786_v28   ;;  %724 = vrot.lane.b32.xlu2 %v3871_v50, %s3669_s11  ;;  %v443_v62 = vadd.f32 %v427_v58, %v318_v57  ;;  %v525_v58 = vsel %vm521_vm15, %v503_v10, 0.0  ;;  %v321_v57 = vadd.f32 %v305_v34, %v188_v14  ;;  %v277_v14 = vsel %vm265_vm10, %v249_v43, 0.0 }
 0x16d   :  { %740 = vrot.lane.b32.xlu1 %v3873_v51, %s3669_s11  ;;  %v310_v42 = vmul.f32 %v3953_v17, %v278_v54  ;;  %v402_v10 = vsel %vm390_vm12, %v380_v13, 0.0  ;;  %v8398_v54 = vld [vmem:[#allocation28_spill] sm:$0xff]  ;;  %v309_v24 = vmul.f32 %v3953_v17, %v277_v14  ;;  %vm746_vm9 = vcmp.lt.s32.totalorder %v4143_v21, 127 }
 0x16e   :  { %v4282_v61 = vpop.permute.xlu0 %363  ;;  %v4284_v1 = vpop.permute.xlu2 %480  ;;  %v434_v14 = vmul.f32 %v8398_v54, %v402_v10  ;;  %v8403_v10 = vld [vmem:[#allocation55_spill] sm:$0xff] }
 0x16f   :  { %8393 = vst [vmem:[#allocation65_spill] sm:$0xff] %v4282_v61  ;;  %v4296_v36 = vpop.permute.xlu1 %484 }
 0x170   :  { %8394 = vst [vmem:[#allocation66_spill] sm:$0xff] %v4284_v1  ;;  %v376_v1 = vsel %vm365_vm8, %v4055_v0, %v4063_v8  ;;  %v504_v32 = vsel %vm490_vm13, %v4296_v36, %v4033_v52  ;;  %v530_v0 = vsel %vm522_vm14, %v500_v18, 0.0  ;;  %v446_v52 = vadd.f32 %v430_v22, %v321_v57 }
 0x171   :  { %8395 = vst [vmem:[#allocation67_spill] sm:$0xff] %v4296_v36  ;;  %v403_v34 = vsel %vm391_vm11, %v376_v1, 0.0  ;;  %v377_v1 = vsel %vm365_vm8, %v4123_v27, %v4157_v40  ;;  %v381_v18 = vsel %vm365_vm8, %v4282_v61, %v4123_v27  ;;  %v529_v22 = vsel %vm521_vm15, %v504_v32, 0.0  ;;  %v8401_v36 = vld [vmem:[#allocation45_spill] sm:$0xff]  ;;  %v8402_v40 = vld [vmem:[#allocation22_spill] sm:$0xff] }
 0x172   :  { %v435_v13 = vmul.f32 %v8398_v54, %v403_v34  ;;  %v501_v27 = vsel %vm490_vm13, %v8401_v36, %v8400_v56  ;;  %v407_v32 = vsel %vm391_vm11, %v377_v1, 0.0  ;;  %v314_v53 = vmul.f32 %v8402_v40, %v282_v30  ;;  %v8404_v30 = vld [vmem:[#allocation27_spill] sm:$0xff] }
 0x173   :  { %v505_v1 = vsel %vm490_vm13, %v8403_v10, %v8401_v36  ;;  %v439_v48 = vmul.f32 %v8404_v30, %v407_v32 }
 0x174   :  { %845 = vrot.lane.b32.xlu0 %v3915_v2, %s3671_s14  ;;  %730 = vrot.lane.b32.xlu2 %v3847_v44, %s3669_s11 }
 0x175   :  { %792 = vperm.xlu1 %3478, %v3776_v25  }
 0x176   :  { %v4362_v43 = vpop.permute.xlu0 %488  ;;  %v4364_v46 = vpop.permute.xlu2 %546 }
 0x177   :  { %8396 = vst [vmem:[#allocation68_spill] sm:$0xff] %v4362_v43  ;;  %v4368_v57 = vpop.permute.xlu1 %542  ;;  %v561_v20 = vmul.f32 %v4364_v46, %v529_v22  ;;  %v562_v11 = vmul.f32 %v4364_v46, %v530_v0  ;;  %v313_v22 = vmul.f32 %v8402_v40, %v281_v31  ;;  %v406_v0 = vsel %vm390_vm12, %v381_v18, 0.0  ;;  %vm888_vm12 = vmand %vm165_vm2, %vm4105_vm3 }
 0x178   :  { %8397 = vst [vmem:[#allocation69_spill] sm:$0xff] %v4364_v46  ;;  %v557_v61 = vmul.f32 %v4368_v57, %v525_v58  ;;  %v558_v34 = vmul.f32 %v4368_v57, %v526_v39  ;;  %v326_v58 = vadd.f32 %v310_v42, %v4245_v41  ;;  %v325_v39 = vadd.f32 %v309_v24, %v4220_v23  ;;  %v8406_v23 = vld [vmem:[#allocation31_spill] sm:$0xff] }
 0x179   :  { %8399 = vst [vmem:[#allocation70_spill] sm:$0xff] %v4368_v57  ;;  %v4389_v56 = vadd.f32 %v561_v20, %v446_v52  ;;  %v4391_v15 = vadd.f32 %v562_v11, %v447_v5  ;;  %v534_v5 = vsel %vm522_vm14, %v501_v27, 0.0  ;;  %v8407_v42 = vld [vmem:[#allocation3_spill] sm:$0xff]  ;;  %v3672_v52 = vmov 6  }
 0x17a   :  { %v4385_v46 = vadd.f32 %v557_v61, %v442_v19  ;;  %v4387_v26 = vadd.f32 %v558_v34, %v443_v62  ;;  %v8405_v61 = vld [vmem:[#allocation58_spill] sm:$0xff]  ;;  %v438_v19 = vmul.f32 %v8404_v30, %v406_v0  ;;  %v451_v36 = vadd.f32 %v435_v13, %v326_v58  ;;  %3483 = vset.pattern.permute.xlu0 %v3672_v52 }
 0x17b   :  { %v502_v62 = vsel %vm490_vm13, %v8405_v61, %v4212_v59  ;;  %v506_v41 = vsel %vm490_vm13, %v4362_v43, %v8405_v61  ;;  %v450_v31 = vadd.f32 %v434_v14, %v325_v39  ;;  %v330_v18 = vadd.f32 %v314_v53, %v4268_v7  ;;  %v8411_v61 = vld [vmem:[#allocation23_spill] sm:$0xff] }
 0x17c   :  { %851 = vrot.lane.b32.xlu0 %v3883_v55, %s3671_s14  ;;  %736 = vrot.lane.b32.xlu2 %v8406_v23, %s3669_s11  ;;  %v533_v24 = vsel %vm521_vm15, %v505_v1, 0.0  ;;  %v329_v20 = vadd.f32 %v313_v22, %v4257_v33  ;;  %v538_v13 = vsel %vm522_vm14, %v502_v62, 0.0  ;;  %v537_v27 = vsel %vm521_vm15, %v506_v41, 0.0  ;;  %v8410_v1 = vld [vmem:[#allocation9_spill] sm:$0xff]  ;;  %v8412_v41 = vld [vmem:[#allocation6_spill] sm:$0xff] }
 0x17d   :  { %804 = vperm.xlu1 %3478, %v8407_v42   ;;  %v455_v53 = vadd.f32 %v439_v48, %v330_v18  ;;  %v3674_v59 = vmov 7   ;;  %vm871_vm3 = vcmp.lt.s32.totalorder %v4143_v21, 113 }
 0x17e   :  { %v4420_v11 = vpop.permute.xlu0 %550  ;;  %v590_v32 = vpop.permute.xlu2 %589  ;;  %v454_v7 = vadd.f32 %v438_v19, %v329_v20 }
 0x17f   :  { %8408 = vst [vmem:[#allocation45_spill] sm:$0xff] %v4420_v11  ;;  %v565_v34 = vmul.f32 %v4420_v11, %v533_v24  ;;  %v566_v14 = vmul.f32 %v4420_v11, %v534_v5  ;;  %v4428_v0 = vpop.permute.xlu1 %554  ;;  %v8417_v24 = vld [vmem:[#allocation4_spill] sm:$0xff] }
 0x180   :  { %8409 = vst [vmem:[#allocation58_spill] sm:$0xff] %v4428_v0  ;;  %v569_v58 = vmul.f32 %v4428_v0, %v537_v27  ;;  %v570_v33 = vmul.f32 %v4428_v0, %v538_v13 }
 0x181   :  { %v4432_v22 = vadd.f32 %v565_v34, %v450_v31  ;;  %v4434_v39 = vadd.f32 %v566_v14, %v451_v36  ;;  %v8413_v36 = vld [vmem:[#allocation2_spill] sm:$0xff]  ;;  %v8421_v34 = vld [vmem:[#allocation17_spill] sm:$0xff]  ;;  %v8422_v14 = vld [vmem:[#allocation15_spill] sm:$0xff] }
 0x182   :  { %v4436_v29 = vadd.f32 %v569_v58, %v454_v7  ;;  %v4438_v9 = vadd.f32 %v570_v33, %v455_v53 }
 0x184   :  { %857 = vrot.lane.b32.xlu0 %v8410_v1, %s3671_s14  ;;  %742 = vrot.lane.b32.xlu2 %v8411_v61, %s3669_s11 }
 0x185   :  { %841 = vrot.lane.b32.xlu1 %v3849_v45, %s3671_s14 }
 0x186   :  { %v4446_v48 = vpop.permute.xlu0 %595  ;;  %v594_v62 = vpop.permute.xlu2 %593  ;;  %3481 = vset.pattern.permute.xlu1 %v3672_v52 }
 0x187   :  { %v592_v19 = vpop.permute.xlu1 %591 }
 0x18c   :  { %863 = vrot.lane.b32.xlu0 %v8412_v41, %s3671_s14  ;;  %796 = vperm.xlu2 %3479, %v8413_v36  }
 0x18d   :  { %847 = vrot.lane.b32.xlu1 %v3827_v38, %s3671_s14 }
 0x18e   :  { %v4453_v5 = vpop.permute.xlu0 %601  ;;  %v4455_v31 = vpop.permute.xlu2 %599 }
 0x18f   :  { %8414 = vst [vmem:[#allocation3_spill] sm:$0xff] %v4453_v5  ;;  %v4457_v18 = vpop.permute.xlu1 %597  ;;  %v632_v43 = vsel %vm621_vm1, %v594_v62, %v4453_v5 }
 0x190   :  { %8415 = vst [vmem:[#allocation2_spill] sm:$0xff] %v4455_v31 }
 0x191   :  { %8416 = vst [vmem:[#allocation71_spill] sm:$0xff] %v4457_v18 }
 0x194   :  { %869 = vrot.lane.b32.xlu0 %v3951_v16, %s3671_s14  ;;  %839 = vrot.lane.b32.xlu2 %v8417_v24, %s3671_s14 }
 0x195   :  { %853 = vrot.lane.b32.xlu1 %v3925_v6, %s3671_s14  ;;  %3482 = vset.pattern.permute.xlu2 %v3672_v52  ;;  %v8426_v52 = vld [vmem:[#allocation50_spill] sm:$0xff] }
 0x196   :  { %v4465_v20 = vpop.permute.xlu0 %607  ;;  %v4467_v13 = vpop.permute.xlu2 %605  ;;  %v639_v33 = vperm.slane %v8426_v52, 3 }
 0x197   :  { %8418 = vst [vmem:[#allocation72_spill] sm:$0xff] %v4465_v20  ;;  %v4469_v27 = vpop.permute.xlu1 %603  ;;  %v638_v20 = vperm.slane %v8426_v52, 1 }
 0x198   :  { %8419 = vst [vmem:[#allocation73_spill] sm:$0xff] %v4467_v13 }
 0x199   :  { %8420 = vst [vmem:[#allocation74_spill] sm:$0xff] %v4469_v27  ;;  %v642_v11 = vperm.slane %v638_v20, 1 }
 0x19b   :  { %vm646_vm6 = vcmp.eq.s32.totalorder %v642_v11, 1 }
 0x19c   :  { %927 = vperm.xlu0 %3483, %v3786_v28   ;;  %843 = vrot.lane.b32.xlu2 %v8421_v34, %s3671_s14 }
 0x19d   :  { %859 = vrot.lane.b32.xlu1 %v8422_v14, %s3671_s14 }
 0x19e   :  { %v4476_v53 = vpop.permute.xlu0 %613  ;;  %v4478_v7 = vpop.permute.xlu2 %611 }
 0x19f   :  { %8423 = vst [vmem:[#allocation75_spill] sm:$0xff] %v4476_v53  ;;  %v4480_v58 = vpop.permute.xlu1 %609  ;;  %v634_v20 = vsel %vm621_vm1, %v4476_v53, %v590_v32 }
 0x1a0   :  { %8424 = vst [vmem:[#allocation76_spill] sm:$0xff] %v4478_v7  ;;  %v643_v7 = vperm.slane %v639_v33, 1  ;;  %v630_v33 = vsel %vm621_vm1, %v590_v32, %v4457_v18  ;;  %v650_v10 = vsel %vm646_vm6, %v634_v20, 0.0 }
 0x1a1   :  { %8425 = vst [vmem:[#allocation77_spill] sm:$0xff] %v4480_v58 }
 0x1a2   :  { %vm647_vm4 = vcmp.eq.s32.totalorder %v643_v7, 1 }
 0x1a3   :  { %v659_v5 = vsel %vm647_vm4, %v632_v43, 0.0  ;;  %v651_v30 = vsel %vm647_vm4, %v630_v33, 0.0 }
 0x1a4   :  { %972 = vrot.lane.b32.xlu0 %v3915_v2, %s3673_s15  ;;  %849 = vrot.lane.b32.xlu2 %v3871_v50, %s3671_s14 }
 0x1a5   :  { %865 = vrot.lane.b32.xlu1 %v3873_v51, %s3671_s14  ;;  %3486 = vset.pattern.permute.xlu0 %v3674_v59 }
 0x1a6   :  { %v4490_v0 = vpop.permute.xlu0 %619  ;;  %v4492_v13 = vpop.permute.xlu2 %617 }
 0x1a7   :  { %8427 = vst [vmem:[#allocation50_spill] sm:$0xff] %v4490_v0  ;;  %v4494_v58 = vpop.permute.xlu1 %615  ;;  %v636_v57 = vsel %vm621_vm1, %v4492_v13, %v594_v62  ;;  %v631_v62 = vsel %vm621_vm1, %v592_v19, %v4455_v31 }
 0x1a8   :  { %8428 = vst [vmem:[#allocation78_spill] sm:$0xff] %v4492_v13  ;;  %v635_v13 = vsel %vm621_vm1, %v4494_v58, %v592_v19  ;;  %v658_v32 = vsel %vm646_vm6, %v636_v57, 0.0 }
 0x1a9   :  { %8429 = vst [vmem:[#allocation79_spill] sm:$0xff] %v4494_v58  ;;  %v654_v43 = vsel %vm646_vm6, %v635_v13, 0.0 }
 0x1ac   :  { %978 = vrot.lane.b32.xlu0 %v3883_v55, %s3673_s15  ;;  %855 = vrot.lane.b32.xlu2 %v3847_v44, %s3671_s14 }
 0x1ad   :  { %919 = vperm.xlu1 %3481, %v3776_v25   ;;  %v655_v25 = vsel %vm647_vm4, %v631_v62, 0.0 }
 0x1ae   :  { %v4522_v53 = vpop.permute.xlu0 %675  ;;  %v4524_v18 = vpop.permute.xlu2 %671 }
 0x1af   :  { %8430 = vst [vmem:[#allocation80_spill] sm:$0xff] %v4522_v53  ;;  %v690_v31 = vmul.f32 %v4522_v53, %v658_v32  ;;  %v691_v40 = vmul.f32 %v4522_v53, %v659_v5  ;;  %v4530_v54 = vpop.permute.xlu1 %667  ;;  %v686_v20 = vmul.f32 %v4524_v18, %v654_v43  ;;  %v687_v5 = vmul.f32 %v4524_v18, %v655_v25 }
 0x1b0   :  { %8431 = vst [vmem:[#allocation81_spill] sm:$0xff] %v4524_v18  ;;  %v682_v57 = vmul.f32 %v4530_v54, %v650_v10  ;;  %v683_v19 = vmul.f32 %v4530_v54, %v651_v30 }
 0x1b1   :  { %8432 = vst [vmem:[#allocation82_spill] sm:$0xff] %v4530_v54  ;;  %v4537_v58 = vadd.f32 %v690_v31, %v4432_v22  ;;  %v4540_v33 = vadd.f32 %v691_v40, %v4434_v39  ;;  %v4551_v10 = vadd.f32 %v686_v20, %v4389_v56  ;;  %v4554_v30 = vadd.f32 %v687_v5, %v4391_v15  ;;  %v8441_v20 = vld [vmem:[#allocation54_spill] sm:$0xff] }
 0x1b2   :  { %v4545_v32 = vadd.f32 %v682_v57, %v4385_v46  ;;  %v4548_v62 = vadd.f32 %v683_v19, %v4387_v26  ;;  %v633_v40 = vsel %vm621_vm1, %v4446_v48, %v4469_v27  ;;  %v637_v46 = vsel %vm621_vm1, %v4490_v0, %v4446_v48 }
 0x1b3   :  { %v663_v15 = vsel %vm647_vm4, %v633_v40, 0.0  ;;  %v662_v22 = vsel %vm646_vm6, %v637_v46, 0.0  ;;  %v763_v5 = vperm.slane %v8441_v20, 1  ;;  %vm998_vm4 = vcmp.lt.s32.totalorder %v4143_v21, 112 }
 0x1b4   :  { %984 = vrot.lane.b32.xlu0 %v8410_v1, %s3673_s15  ;;  %861 = vrot.lane.b32.xlu2 %v8406_v23, %s3671_s14 }
 0x1b5   :  { %931 = vperm.xlu1 %3481, %v8407_v42   ;;  %v767_v46 = vperm.slane %v763_v5, 1 }
 0x1b6   :  { %v4569_v26 = vpop.permute.xlu0 %720  ;;  %v4571_v56 = vpop.permute.xlu2 %714 }
 0x1b7   :  { %8433 = vst [vmem:[#allocation83_spill] sm:$0xff] %v4569_v26  ;;  %v4575_v39 = vpop.permute.xlu1 %679  ;;  %vm771_vm10 = vcmp.eq.s32.totalorder %v767_v46, 1 }
 0x1b8   :  { %8434 = vst [vmem:[#allocation84_spill] sm:$0xff] %v4571_v56  ;;  %v694_v48 = vmul.f32 %v4575_v39, %v662_v22  ;;  %v695_v31 = vmul.f32 %v4575_v39, %v663_v15 }
 0x1b9   :  { %8435 = vst [vmem:[#allocation85_spill] sm:$0xff] %v4575_v39 }
 0x1ba   :  { %v4580_v13 = vadd.f32 %v694_v48, %v4436_v29  ;;  %v4583_v25 = vadd.f32 %v695_v31, %v4438_v9 }
 0x1bc   :  { %990 = vrot.lane.b32.xlu0 %v8412_v41, %s3673_s15  ;;  %867 = vrot.lane.b32.xlu2 %v8411_v61, %s3671_s14 }
 0x1bd   :  { %968 = vrot.lane.b32.xlu1 %v3849_v45, %s3673_s15 }
 0x1be   :  { %v727_v42 = vpop.permute.xlu0 %726  ;;  %v4591_v11 = vpop.permute.xlu2 %718  ;;  %3484 = vset.pattern.permute.xlu1 %v3674_v59 }
 0x1bf   :  { %8436 = vst [vmem:[#allocation86_spill] sm:$0xff] %v4591_v11  ;;  %v4593_v7 = vpop.permute.xlu1 %716  ;;  %v757_v48 = vsel %vm746_vm9, %v4591_v11, %v727_v42 }
 0x1c0   :  { %8437 = vst [vmem:[#allocation87_spill] sm:$0xff] %v4593_v7  ;;  %v783_v5 = vsel %vm771_vm10, %v757_v48, 0.0 }
 0x1c4   :  { %996 = vrot.lane.b32.xlu0 %v3951_v16, %s3673_s15  ;;  %923 = vperm.xlu2 %3482, %v8413_v36  }
 0x1c5   :  { %974 = vrot.lane.b32.xlu1 %v3827_v38, %s3673_s15 }
 0x1c6   :  { %v4600_v29 = vpop.permute.xlu0 %732  ;;  %v725_v9 = vpop.permute.xlu2 %724 }
 0x1c7   :  { %8438 = vst [vmem:[#allocation88_spill] sm:$0xff] %v4600_v29  ;;  %v723_v43 = vpop.permute.xlu1 %722  ;;  %v752_v48 = vsel %vm746_vm9, %v725_v9, %v4600_v29 }
 0x1cc   :  { %1052 = vperm.xlu0 %3486, %v3786_v28   ;;  %966 = vrot.lane.b32.xlu2 %v8417_v24, %s3673_s15  ;;  %v764_v28 = vperm.slane %v8441_v20, 3 }
 0x1cd   :  { %980 = vrot.lane.b32.xlu1 %v3925_v6, %s3673_s15  ;;  %3485 = vset.pattern.permute.xlu2 %v3674_v59 }
 0x1ce   :  { %v4607_v57 = vpop.permute.xlu0 %738  ;;  %v4609_v19 = vpop.permute.xlu2 %730  ;;  %v768_v22 = vperm.slane %v764_v28, 1 }
 0x1cf   :  { %8439 = vst [vmem:[#allocation89_spill] sm:$0xff] %v4607_v57  ;;  %v729_v36 = vpop.permute.xlu1 %728 }
 0x1d0   :  { %8440 = vst [vmem:[#allocation90_spill] sm:$0xff] %v4609_v19  ;;  %vm772_vm11 = vcmp.eq.s32.totalorder %v768_v22, 1  ;;  %v8049_v22 = vmov 8  }
 0x1d4   :  { %1097 = vrot.lane.b32.xlu0 %v3915_v2, %s3675_s16  ;;  %970 = vrot.lane.b32.xlu2 %v8421_v34, %s3673_s15 }
 0x1d5   :  { %986 = vrot.lane.b32.xlu1 %v8422_v14, %s3673_s15  ;;  %3490 = vset.pattern.permute.xlu0 %v8049_v22 }
 0x1d6   :  { %v4619_v59 = vpop.permute.xlu0 %744  ;;  %v4621_v40 = vpop.permute.xlu2 %736 }
 0x1d7   :  { %8442 = vst [vmem:[#allocation91_spill] sm:$0xff] %v4619_v59  ;;  %v4623_v15 = vpop.permute.xlu1 %734 }
 0x1d8   :  { %8443 = vst [vmem:[#allocation92_spill] sm:$0xff] %v4621_v40  ;;  %v753_v31 = vsel %vm746_vm9, %v727_v42, %v4623_v15 }
 0x1d9   :  { %8444 = vst [vmem:[#allocation93_spill] sm:$0xff] %v4623_v15  ;;  %v784_v28 = vsel %vm772_vm11, %v753_v31, 0.0  ;;  %v756_v31 = vsel %vm746_vm9, %v4593_v7, %v725_v9 }
 0x1da   :  { %v779_v9 = vsel %vm771_vm10, %v756_v31, 0.0 }
 0x1dc   :  { %1103 = vrot.lane.b32.xlu0 %v3883_v55, %s3675_s16  ;;  %976 = vrot.lane.b32.xlu2 %v3871_v50, %s3673_s15 }
 0x1dd   :  { %992 = vrot.lane.b32.xlu1 %v3873_v51, %s3673_s15 }
 0x1de   :  { %v4640_v59 = vpop.permute.xlu0 %800  ;;  %v4642_v39 = vpop.permute.xlu2 %742 }
 0x1df   :  { %8445 = vst [vmem:[#allocation94_spill] sm:$0xff] %v4640_v59  ;;  %v815_v42 = vmul.f32 %v4640_v59, %v783_v5  ;;  %v816_v57 = vmul.f32 %v4640_v59, %v784_v28  ;;  %v4646_v18 = vpop.permute.xlu1 %740  ;;  %v755_v5 = vsel %vm746_vm9, %v4571_v56, %v723_v43 }
 0x1e0   :  { %8446 = vst [vmem:[#allocation95_spill] sm:$0xff] %v4642_v39 }
 0x1e1   :  { %8447 = vst [vmem:[#allocation96_spill] sm:$0xff] %v4646_v18  ;;  %v4649_v11 = vadd.f32 %v815_v42, %v4537_v58  ;;  %v4652_v15 = vadd.f32 %v816_v57, %v4540_v33  ;;  %v751_v58 = vsel %vm746_vm9, %v723_v43, %v4609_v19  ;;  %v4673_v33 = vld [vmem:[%s7926_s3] sm:$0xff]  ;;  %v780_v57 = vsel %vm772_vm11, %v752_v48, 0.0 }
 0x1e2   :  { %v775_v42 = vsel %vm771_vm10, %v755_v5, 0.0  ;;  %v776_v59 = vsel %vm772_vm11, %v751_v58, 0.0  ;;  %v8453_v18 = vmov 0  }
 0x1e4   :  { %1109 = vrot.lane.b32.xlu0 %v8410_v1, %s3675_s16  ;;  %982 = vrot.lane.b32.xlu2 %v3847_v44, %s3673_s15 }
 0x1e5   :  { %1044 = vperm.xlu1 %3484, %v4673_v33  }
 0x1e6   :  { %v4678_v28 = vpop.permute.xlu0 %845  ;;  %v4680_v43 = vpop.permute.xlu2 %796 }
 0x1e7   :  { %8448 = vst [vmem:[#allocation97_spill] sm:$0xff] %v4678_v28  ;;  %v4684_v56 = vpop.permute.xlu1 %792  ;;  %v811_v7 = vmul.f32 %v4680_v43, %v779_v9  ;;  %v812_v29 = vmul.f32 %v4680_v43, %v780_v57  ;;  %v4707_v57 = vsel %vm888_vm12, 1, %v8453_v18 }
 0x1e8   :  { %8449 = vst [vmem:[#allocation98_spill] sm:$0xff] %v4680_v43  ;;  %v807_v48 = vmul.f32 %v4684_v56, %v775_v42  ;;  %v808_v31 = vmul.f32 %v4684_v56, %v776_v59  ;;  %v758_v42 = vsel %vm746_vm9, %v4569_v26, %v729_v36  ;;  %v891_v46 = vperm.slane %v4707_v57, 2 }
 0x1e9   :  { %8450 = vst [vmem:[#allocation99_spill] sm:$0xff] %v4684_v56  ;;  %v4695_v39 = vadd.f32 %v811_v7, %v4551_v10  ;;  %v4698_v5 = vadd.f32 %v812_v29, %v4554_v30  ;;  %v754_v10 = vsel %vm746_vm9, %v729_v36, %v4621_v40  ;;  %v787_v29 = vsel %vm771_vm10, %v758_v42, 0.0 }
 0x1ea   :  { %v4701_v58 = vadd.f32 %v807_v48, %v4545_v32  ;;  %v4704_v9 = vadd.f32 %v808_v31, %v4548_v62  ;;  %8454 = vst [vmem:[#allocation53_spill] sm:$0xff] %v4707_v57  ;;  %v4722_v32 = vld [vmem:[%s7926_s3 + $0x18] sm:$0xff]  ;;  %v890_v62 = vperm.slane %v4707_v57, 0  ;;  %v788_v36 = vsel %vm772_vm11, %v754_v10, 0.0  ;;  %vm1140_vm11 = vmand %vm165_vm2, %vm4135_vm5 }
 0x1eb   :  { %v5026_v19 = vsel %vm1140_vm11, 1, %v8453_v18  ;;  %vm1123_vm5 = vcmp.lt.s32.totalorder %v4143_v21, 111 }
 0x1ec   :  { %1115 = vrot.lane.b32.xlu0 %v8412_v41, %s3675_s16  ;;  %988 = vrot.lane.b32.xlu2 %v8406_v23, %s3673_s15  ;;  %v894_v43 = vperm.slane %v890_v62, 0 }
 0x1ed   :  { %1056 = vperm.xlu1 %3484, %v4722_v32  }
 0x1ee   :  { %v852_v30 = vpop.permute.xlu0 %851  ;;  %v4726_v7 = vpop.permute.xlu2 %839  ;;  %vm898_vm14 = vcmp.eq.s32.totalorder %v894_v43, 1 }
 0x1ef   :  { %8455 = vst [vmem:[#allocation47_spill] sm:$0xff] %v4726_v7  ;;  %v4730_v59 = vpop.permute.xlu1 %804 }
 0x1f0   :  { %8456 = vst [vmem:[#allocation100_spill] sm:$0xff] %v4730_v59  ;;  %v819_v48 = vmul.f32 %v4730_v59, %v787_v29  ;;  %v820_v31 = vmul.f32 %v4730_v59, %v788_v36  ;;  %v895_v29 = vperm.slane %v891_v46, 0  ;;  %v4765_v36 = vld [vmem:[%s7926_s3 + $0x8] sm:$0xff] }
 0x1f2   :  { %v4735_v56 = vadd.f32 %v819_v48, %v4580_v13  ;;  %v4738_v40 = vadd.f32 %v820_v31, %v4583_v25  ;;  %vm899_vm15 = vcmp.eq.s32.totalorder %v895_v29, 1 }
 0x1f4   :  { %1121 = vrot.lane.b32.xlu0 %v3951_v16, %s3675_s16  ;;  %994 = vrot.lane.b32.xlu2 %v8411_v61, %s3673_s15 }
 0x1f5   :  { %1093 = vrot.lane.b32.xlu1 %v3849_v45, %s3675_s16 }
 0x1f6   :  { %v4749_v13 = vpop.permute.xlu0 %857  ;;  %v4751_v25 = vpop.permute.xlu2 %843  ;;  %3487 = vset.pattern.permute.xlu1 %v8049_v22 }
 0x1f7   :  { %8457 = vst [vmem:[#allocation101_spill] sm:$0xff] %v4749_v13  ;;  %v4754_v42 = vpop.permute.xlu1 %841  ;;  %v882_v10 = vsel %vm871_vm3, %v4751_v25, %v852_v30 }
 0x1f8   :  { %8458 = vst [vmem:[#allocation102_spill] sm:$0xff] %v4751_v25  ;;  %v910_v62 = vsel %vm898_vm14, %v882_v10, 0.0 }
 0x1f9   :  { %8459 = vst [vmem:[#allocation103_spill] sm:$0xff] %v4754_v42 }
 0x1fc   :  { %1230 = vrot.lane.b32.xlu0 %v3883_v55, %s3677_s21  ;;  %1048 = vperm.xlu2 %3485, %v4765_v36  }
 0x1fd   :  { %1099 = vrot.lane.b32.xlu1 %v3827_v38, %s3675_s16 }
 0x1fe   :  { %v4770_v48 = vpop.permute.xlu0 %863  ;;  %v850_v31 = vpop.permute.xlu2 %849 }
 0x1ff   :  { %8460 = vst [vmem:[#allocation104_spill] sm:$0xff] %v4770_v48  ;;  %v848_v10 = vpop.permute.xlu1 %847  ;;  %v877_v46 = vsel %vm871_vm3, %v850_v31, %v4749_v13  ;;  %v881_v22 = vsel %vm871_vm3, %v4754_v42, %v850_v31  ;;  %v8461_v31 = vmov 8  }
 0x200   :  { %v880_v25 = vsel %vm871_vm3, %v4726_v7, %v848_v10  ;;  %v906_v59 = vsel %vm898_vm14, %v881_v22, 0.0  ;;  %v907_v26 = vsel %vm899_vm15, %v877_v46, 0.0 }
 0x201   :  { %v902_v48 = vsel %vm898_vm14, %v880_v25, 0.0 }
 0x204   :  { %1240 = vrot.lane.b32.xlu0 %v8406_v23, %s3677_s21  ;;  %1091 = vrot.lane.b32.xlu2 %v8417_v24, %s3675_s16 }
 0x205   :  { %1105 = vrot.lane.b32.xlu1 %v3925_v6, %s3675_s16  ;;  %3488 = vset.pattern.permute.xlu2 %v8461_v31 }
 0x206   :  { %v4791_v42 = vpop.permute.xlu0 %869  ;;  %v4793_v13 = vpop.permute.xlu2 %855 }
 0x207   :  { %8462 = vst [vmem:[#allocation105_spill] sm:$0xff] %v4791_v42  ;;  %v854_v22 = vpop.permute.xlu1 %853  ;;  %v876_v25 = vsel %vm871_vm3, %v848_v10, %v4793_v13 }
 0x208   :  { %8463 = vst [vmem:[#allocation106_spill] sm:$0xff] %v4793_v13  ;;  %v883_v46 = vsel %vm871_vm3, %v4678_v28, %v854_v22  ;;  %v903_v7 = vsel %vm899_vm15, %v876_v25, 0.0 }
 0x209   :  { %v914_v57 = vsel %vm898_vm14, %v883_v46, 0.0 }
 0x20c   :  { %1371 = vrot.lane.b32.xlu0 %v8406_v23, %s3678_s24  ;;  %1095 = vrot.lane.b32.xlu2 %v8421_v34, %s3675_s16 }
 0x20d   :  { %1111 = vrot.lane.b32.xlu1 %v8422_v14, %s3675_s16 }
 0x20e   :  { %v4809_v42 = vpop.permute.xlu0 %927  ;;  %v4811_v10 = vpop.permute.xlu2 %861 }
 0x20f   :  { %8464 = vst [vmem:[#allocation107_spill] sm:$0xff] %v4809_v42  ;;  %v942_v28 = vmul.f32 %v4809_v42, %v910_v62  ;;  %v4814_v13 = vpop.permute.xlu1 %859  ;;  %v879_v43 = vsel %vm871_vm3, %v854_v22, %v4811_v10 }
 0x210   :  { %8465 = vst [vmem:[#allocation108_spill] sm:$0xff] %v4811_v10  ;;  %v878_v25 = vsel %vm871_vm3, %v852_v30, %v4814_v13  ;;  %v915_v46 = vsel %vm899_vm15, %v879_v43, 0.0 }
 0x211   :  { %8466 = vst [vmem:[#allocation109_spill] sm:$0xff] %v4814_v13  ;;  %v4824_v53 = vadd.f32 %v942_v28, %v4649_v11  ;;  %v911_v54 = vsel %vm899_vm15, %v878_v25, 0.0  ;;  %v8069_v28 = vmov 9  }
 0x212   :  { %v943_v0 = vmul.f32 %v4809_v42, %v911_v54  ;;  %v4848_v54 = vld [vmem:[%s7926_s3 + $0x10] sm:$0xff] }
 0x214   :  { %v4829_v62 = vadd.f32 %v943_v0, %v4652_v15  ;;  %1171 = vperm.xlu0 %3490, %v4673_v33   ;;  %1101 = vrot.lane.b32.xlu2 %v3871_v50, %s3675_s16 }
 0x215   :  { %1117 = vrot.lane.b32.xlu1 %v3873_v51, %s3675_s16 }
 0x216   :  { %v4836_v30 = vpop.permute.xlu0 %972  ;;  %v4838_v22 = vpop.permute.xlu2 %867 }
 0x217   :  { %8467 = vst [vmem:[#allocation110_spill] sm:$0xff] %v4838_v22  ;;  %v4840_v11 = vpop.permute.xlu1 %865 }
 0x218   :  { %8468 = vst [vmem:[#allocation111_spill] sm:$0xff] %v4840_v11 }
 0x21c   :  { %3491 = vset.pattern.permute.xlu0 %v8069_v28  ;;  %1107 = vrot.lane.b32.xlu2 %v3847_v44, %s3675_s16 }
 0x21d   :  { %1310 = vperm.xlu0 %3491, %v4848_v54   ;;  %1179 = vperm.xlu1 %3487, %v4848_v54  }
 0x21e   :  { %v979_v0 = vpop.permute.xlu0 %978  ;;  %v4852_v15 = vpop.permute.xlu2 %923 }
 0x21f   :  { %8469 = vst [vmem:[#allocation112_spill] sm:$0xff] %v4852_v15  ;;  %v4854_v29 = vpop.permute.xlu1 %919  ;;  %v938_v43 = vmul.f32 %v4852_v15, %v906_v59  ;;  %v939_v25 = vmul.f32 %v4852_v15, %v907_v26 }
 0x220   :  { %8470 = vst [vmem:[#allocation113_spill] sm:$0xff] %v4854_v29  ;;  %v934_v28 = vmul.f32 %v4854_v29, %v902_v48  ;;  %v935_v42 = vmul.f32 %v4854_v29, %v903_v7  ;;  %v1016_v29 = vperm.slane %v8441_v20, 2 }
 0x221   :  { %v4861_v11 = vadd.f32 %v938_v43, %v4695_v39  ;;  %v4864_v10 = vadd.f32 %v939_v25, %v4698_v5  ;;  %v8473_v5 = vmov 9  }
 0x222   :  { %v4867_v13 = vadd.f32 %v934_v28, %v4701_v58  ;;  %v4870_v22 = vadd.f32 %v935_v42, %v4704_v9  ;;  %v1020_v15 = vperm.slane %v1016_v29, 0 }
 0x224   :  { %1113 = vrot.lane.b32.xlu2 %v8406_v23, %s3675_s16  ;;  %vm1024_vm10 = vcmp.eq.s32.totalorder %v1020_v15, 1  ;;  %v1143_v15 = vperm.slane %v5026_v19, 2 }
 0x225   :  { %1236 = vrot.lane.b32.xlu0 %v8410_v1, %s3677_s21  ;;  %1232 = vrot.lane.b32.xlu1 %v3925_v6, %s3677_s21 }
 0x226   :  { %v4878_v26 = vpop.permute.xlu0 %984  ;;  %v4880_v39 = vpop.permute.xlu2 %966  ;;  %3489 = vset.pattern.permute.xlu1 %v8473_v5 }
 0x227   :  { %8471 = vst [vmem:[#allocation114_spill] sm:$0xff] %v4878_v26  ;;  %v4883_v58 = vpop.permute.xlu1 %931 }
 0x228   :  { %8472 = vst [vmem:[#allocation115_spill] sm:$0xff] %v4880_v39  ;;  %v946_v9 = vmul.f32 %v4883_v58, %v914_v57  ;;  %v947_v7 = vmul.f32 %v4883_v58, %v915_v46 }
 0x229   :  { %8474 = vst [vmem:[#allocation116_spill] sm:$0xff] %v4883_v58 }
 0x22a   :  { %v4888_v59 = vadd.f32 %v946_v9, %v4735_v56  ;;  %v4891_v42 = vadd.f32 %v947_v7, %v4738_v40  ;;  %v1015_v56 = vperm.slane %v8441_v20, 0  ;;  %v8084_v7 = vmov 10  }
 0x22c   :  { %1119 = vrot.lane.b32.xlu2 %v8411_v61, %s3675_s16  ;;  %v4911_v43 = vperm.slane %v1015_v56, 0 }
 0x22d   :  { %1496 = vrot.lane.b32.xlu0 %v8406_v23, %s3680_s27  ;;  %1246 = vrot.lane.b32.xlu1 %v8411_v61, %s3677_s21 }
 0x22e   :  { %v4899_v48 = vpop.permute.xlu0 %990  ;;  %v4901_v57 = vpop.permute.xlu2 %970  ;;  %vm1023_vm6 = vcmp.eq.s32.totalorder %v4911_v43, 1 }
 0x22f   :  { %8475 = vst [vmem:[#allocation117_spill] sm:$0xff] %v4899_v48  ;;  %v4903_v46 = vpop.permute.xlu1 %968  ;;  %v1009_v9 = vsel %vm998_vm4, %v4901_v57, %v979_v0 }
 0x230   :  { %8476 = vst [vmem:[#allocation118_spill] sm:$0xff] %v4901_v57  ;;  %v1035_v56 = vsel %vm1023_vm6, %v1009_v9, 0.0 }
 0x231   :  { %8477 = vst [vmem:[#allocation119_spill] sm:$0xff] %v4903_v46 }
 0x234   :  { %1183 = vperm.xlu2 %3488, %v4722_v32  }
 0x235   :  { %1302 = vperm.xlu0 %3491, %v4673_v33   ;;  %1314 = vperm.xlu1 %3489, %v4722_v32  }
 0x236   :  { %v4909_v40 = vpop.permute.xlu0 %996  ;;  %v977_v28 = vpop.permute.xlu2 %976 }
 0x237   :  { %8478 = vst [vmem:[#allocation120_spill] sm:$0xff] %v4909_v40  ;;  %v975_v25 = vpop.permute.xlu1 %974 }
 0x23c   :  { %1238 = vrot.lane.b32.xlu2 %v8422_v14, %s3677_s21 }
 0x23d   :  { %3494 = vset.pattern.permute.xlu0 %v8084_v7  ;;  %1363 = vrot.lane.b32.xlu1 %v3925_v6, %s3678_s24 }
 0x23e   :  { %1435 = vperm.xlu0 %3494, %v4848_v54   ;;  %v4926_v40 = vpop.permute.xlu0 %1052  ;;  %v4928_v48 = vpop.permute.xlu2 %982  ;;  %3492 = vset.pattern.permute.xlu1 %v8461_v31 }
 0x23f   :  { %8479 = vst [vmem:[#allocation121_spill] sm:$0xff] %v4926_v40  ;;  %v1067_v57 = vmul.f32 %v4926_v40, %v1035_v56  ;;  %v981_v58 = vpop.permute.xlu1 %980 }
 0x240   :  { %8480 = vst [vmem:[#allocation122_spill] sm:$0xff] %v4928_v48 }
 0x241   :  { %v4934_v7 = vadd.f32 %v1067_v57, %v4824_v53 }
 0x244   :  { %1248 = vrot.lane.b32.xlu2 %v3951_v16, %s3677_s21 }
 0x245   :  { %1377 = vrot.lane.b32.xlu1 %v8411_v61, %s3678_s24 }
 0x246   :  { %1367 = vrot.lane.b32.xlu0 %v8410_v1, %s3678_s24  ;;  %v4942_v9 = vpop.permute.xlu0 %1097  ;;  %v4944_v31 = vpop.permute.xlu2 %988 }
 0x247   :  { %8481 = vst [vmem:[#allocation123_spill] sm:$0xff] %v4942_v9  ;;  %v4946_v56 = vpop.permute.xlu1 %986  ;;  %v1006_v49 = vsel %vm998_vm4, %v981_v58, %v4944_v31 }
 0x248   :  { %8482 = vst [vmem:[#allocation124_spill] sm:$0xff] %v4946_v56  ;;  %v1005_v53 = vsel %vm998_vm4, %v979_v0, %v4946_v56 }
 0x249   :  { %v1036_v29 = vsel %vm1024_vm10, %v1005_v53, 0.0  ;;  %v1008_v53 = vsel %vm998_vm4, %v4903_v46, %v977_v28 }
 0x24a   :  { %v1068_v57 = vmul.f32 %v4926_v40, %v1036_v29  ;;  %v1007_v29 = vsel %vm998_vm4, %v4880_v39, %v975_v25  ;;  %v1031_v40 = vsel %vm1023_vm6, %v1008_v53, 0.0  ;;  %v8486_v39 = vmov 10  }
 0x24c   :  { %v4954_v27 = vadd.f32 %v1068_v57, %v4829_v62  ;;  %1361 = vrot.lane.b32.xlu2 %v3883_v55, %s3678_s24  ;;  %v1004_v62 = vsel %vm998_vm4, %v977_v28, %v4878_v26  ;;  %v1003_v57 = vsel %vm998_vm4, %v975_v25, %v4928_v48  ;;  %v1027_v25 = vsel %vm1023_vm6, %v1007_v29, 0.0 }
 0x24d   :  { %1175 = vperm.xlu1 %3492, %v4765_v36   ;;  %v1032_v26 = vsel %vm1024_vm10, %v1004_v62, 0.0  ;;  %v1028_v48 = vsel %vm1024_vm10, %v1003_v57, 0.0 }
 0x24e   :  { %1627 = vrot.lane.b32.xlu0 %v8406_v23, %s3682_s28  ;;  %v4961_v20 = vpop.permute.xlu0 %1103  ;;  %v4963_v17 = vpop.permute.xlu2 %994 }
 0x24f   :  { %8483 = vst [vmem:[#allocation125_spill] sm:$0xff] %v4963_v17  ;;  %v4965_v0 = vpop.permute.xlu1 %992 }
 0x250   :  { %8484 = vst [vmem:[#allocation126_spill] sm:$0xff] %v4965_v0 }
 0x254   :  { %1369 = vrot.lane.b32.xlu2 %v8422_v14, %s3678_s24 }
 0x255   :  { %1228 = vrot.lane.b32.xlu1 %v3871_v50, %s3677_s21 }
 0x256   :  { %1427 = vperm.xlu0 %3494, %v4673_v33   ;;  %v4987_v28 = vpop.permute.xlu0 %1109  ;;  %v4989_v46 = vpop.permute.xlu2 %1048  ;;  %3493 = vset.pattern.permute.xlu1 %v8486_v39 }
 0x257   :  { %8485 = vst [vmem:[#allocation127_spill] sm:$0xff] %v4987_v28  ;;  %v4995_v0 = vpop.permute.xlu1 %1044  ;;  %v1063_v56 = vmul.f32 %v4989_v46, %v1031_v40  ;;  %v1064_v53 = vmul.f32 %v4989_v46, %v1032_v26 }
 0x258   :  { %v1059_v62 = vmul.f32 %v4995_v0, %v1027_v25  ;;  %v1060_v17 = vmul.f32 %v4995_v0, %v1028_v48  ;;  %v1010_v48 = vsel %vm998_vm4, %v4836_v30, %v981_v58  ;;  %v1040_v58 = vsel %vm1024_vm10, %v1006_v49, 0.0 }
 0x259   :  { %v5006_v3 = vadd.f32 %v1063_v56, %v4861_v11  ;;  %v5015_v26 = vadd.f32 %v1064_v53, %v4864_v10  ;;  %v1039_v11 = vsel %vm1023_vm6, %v1010_v48, 0.0 }
 0x25a   :  { %v5009_v29 = vadd.f32 %v1059_v62, %v4867_v13  ;;  %v5012_v57 = vadd.f32 %v1060_v17, %v4870_v22  ;;  %v1142_v17 = vperm.slane %v5026_v19, 0  ;;  %v8104_v13 = vmov 11  }
 0x25c   :  { %1379 = vrot.lane.b32.xlu2 %v3951_v16, %s3678_s24  ;;  %v1146_v53 = vperm.slane %v1142_v17, 0  ;;  %v1147_v17 = vperm.slane %v1143_v15, 0 }
 0x25d   :  { %1242 = vrot.lane.b32.xlu1 %v8412_v41, %s3677_s21 }
 0x25e   :  { %3497 = vset.pattern.permute.xlu0 %v8104_v13  ;;  %v5032_v10 = vpop.permute.xlu0 %1115  ;;  %v5034_v22 = vpop.permute.xlu2 %1091  ;;  %vm1150_vm2 = vcmp.eq.s32.totalorder %v1146_v53, 1  ;;  %vm1151_vm12 = vcmp.eq.s32.totalorder %v1147_v17, 1 }
 0x25f   :  { %8488 = vst [vmem:[#allocation57_spill] sm:$0xff] %v5032_v10  ;;  %1566 = vperm.xlu0 %3497, %v4848_v54   ;;  %v5040_v40 = vpop.permute.xlu1 %1056 }
 0x260   :  { %8489 = vst [vmem:[#allocation128_spill] sm:$0xff] %v5034_v22  ;;  %v1071_v56 = vmul.f32 %v5040_v40, %v1039_v11  ;;  %v1072_v25 = vmul.f32 %v5040_v40, %v1040_v58 }
 0x262   :  { %v5045_v62 = vadd.f32 %v1071_v56, %v4888_v59  ;;  %v5048_v13 = vadd.f32 %v1072_v25, %v4891_v42 }
 0x264   :  { %1226 = vrot.lane.b32.xlu2 %v3827_v38, %s3677_s21 }
 0x265   :  { %1439 = vperm.xlu1 %3493, %v4722_v32  }
 0x266   :  { %v5055_v43 = vpop.permute.xlu0 %1121  ;;  %v5057_v48 = vpop.permute.xlu2 %1095 }
 0x267   :  { %8490 = vst [vmem:[#allocation129_spill] sm:$0xff] %v5055_v43  ;;  %1492 = vrot.lane.b32.xlu0 %v8410_v1, %s3680_s27  ;;  %v5061_v59 = vpop.permute.xlu1 %1093  ;;  %v1134_v42 = vsel %vm1123_vm5, %v5057_v48, %v4961_v20 }
 0x268   :  { %8491 = vst [vmem:[#allocation130_spill] sm:$0xff] %v5057_v48  ;;  %v1162_v49 = vsel %vm1150_vm2, %v1134_v42, 0.0 }
 0x269   :  { %8492 = vst [vmem:[#allocation131_spill] sm:$0xff] %v5061_v59 }
 0x26c   :  { %1234 = vrot.lane.b32.xlu2 %v3847_v44, %s3677_s21 }
 0x26d   :  { %1488 = vrot.lane.b32.xlu1 %v3925_v6, %s3680_s27 }
 0x26e   :  { %v5072_v11 = vpop.permute.xlu0 %1230  ;;  %v1102_v58 = vpop.permute.xlu2 %1101  ;;  %3495 = vset.pattern.permute.xlu1 %v8473_v5 }
 0x26f   :  { %8493 = vst [vmem:[#allocation132_spill] sm:$0xff] %v5072_v11  ;;  %1752 = vrot.lane.b32.xlu0 %v8406_v23, %s3684_s29  ;;  %v1100_v56 = vpop.permute.xlu1 %1099  ;;  %v1129_v25 = vsel %vm1123_vm5, %v1102_v58, %v4987_v28  ;;  %v1133_v15 = vsel %vm1123_vm5, %v5061_v59, %v1102_v58 }
 0x270   :  { %v1132_v42 = vsel %vm1123_vm5, %v5034_v22, %v1100_v56  ;;  %v5087_v48 = vsel %vm1150_vm2, %v1133_v15, 0.0  ;;  %v5090_v5 = vsel %vm1151_vm12, %v1129_v25, 0.0  ;;  %v8115_v22 = vmov 12  }
 0x271   :  { %v1154_v11 = vsel %vm1150_vm2, %v1132_v42, 0.0 }
 0x274   :  { %1244 = vrot.lane.b32.xlu2 %v3873_v51, %s3677_s21 }
 0x275   :  { %1502 = vrot.lane.b32.xlu1 %v8411_v61, %s3680_s27 }
 0x276   :  { %v5097_v28 = vpop.permute.xlu0 %1240  ;;  %v5099_v58 = vpop.permute.xlu2 %1107 }
 0x277   :  { %8494 = vst [vmem:[#allocation133_spill] sm:$0xff] %v5097_v28  ;;  %1558 = vperm.xlu0 %3497, %v4673_v33   ;;  %v1106_v59 = vpop.permute.xlu1 %1105  ;;  %v1128_v25 = vsel %vm1123_vm5, %v1100_v56, %v5099_v58 }
 0x278   :  { %8495 = vst [vmem:[#allocation134_spill] sm:$0xff] %v5099_v58  ;;  %v1135_v15 = vsel %vm1123_vm5, %v4942_v9, %v1106_v59  ;;  %v1155_v42 = vsel %vm1151_vm12, %v1128_v25, 0.0 }
 0x279   :  { %v1166_v43 = vsel %vm1150_vm2, %v1135_v15, 0.0 }
 0x27c   :  { %1486 = vrot.lane.b32.xlu2 %v3883_v55, %s3680_s27 }
 0x27d   :  { %1306 = vperm.xlu1 %3495, %v4765_v36  }
 0x27e   :  { %v5113_v28 = vpop.permute.xlu0 %1371  ;;  %v5115_v10 = vpop.permute.xlu2 %1113 }
 0x27f   :  { %8496 = vst [vmem:[#allocation135_spill] sm:$0xff] %v5113_v28  ;;  %3500 = vset.pattern.permute.xlu0 %v8115_v22  ;;  %v5118_v56 = vpop.permute.xlu1 %1111  ;;  %v1131_v25 = vsel %vm1123_vm5, %v1106_v59, %v5115_v10 }
 0x280   :  { %8497 = vst [vmem:[#allocation136_spill] sm:$0xff] %v5115_v10  ;;  %1691 = vperm.xlu0 %3500, %v4848_v54   ;;  %v1130_v53 = vsel %vm1123_vm5, %v4961_v20, %v5118_v56  ;;  %v1167_v15 = vsel %vm1151_vm12, %v1131_v25, 0.0  ;;  %v8501_v10 = vmov 11  }
 0x281   :  { %8498 = vst [vmem:[#allocation137_spill] sm:$0xff] %v5118_v56  ;;  %v1163_v28 = vsel %vm1151_vm12, %v1130_v53, 0.0 }
 0x284   :  { %1494 = vrot.lane.b32.xlu2 %v8422_v14, %s3680_s27 }
 0x285   :  { %1359 = vrot.lane.b32.xlu1 %v3871_v50, %s3678_s24 }
 0x286   :  { %v5134_v22 = vpop.permute.xlu0 %1171  ;;  %v5136_v59 = vpop.permute.xlu2 %1119  ;;  %3496 = vset.pattern.permute.xlu1 %v8501_v10 }
 0x287   :  { %8499 = vst [vmem:[#allocation138_spill] sm:$0xff] %v5134_v22  ;;  %v1186_v58 = vmul.f32 %v5134_v22, %v1154_v11  ;;  %v1187_v20 = vmul.f32 %v5134_v22, %v1155_v42  ;;  %v5141_v56 = vpop.permute.xlu1 %1117 }
 0x288   :  { %8500 = vst [vmem:[#allocation139_spill] sm:$0xff] %v5136_v59  ;;  %1623 = vrot.lane.b32.xlu0 %v8410_v1, %s3682_s28  ;;  %v8597_v59 = vld [vmem:[#allocation43_spill] sm:$0xff] }
 0x289   :  { %8502 = vst [vmem:[#allocation140_spill] sm:$0xff] %v5141_v56  ;;  %v5146_v17 = vadd.f32 %v1186_v58, %v5009_v29  ;;  %v5149_v25 = vadd.f32 %v1187_v20, %v5012_v57  ;;  %v8600_v56 = vld [vmem:[#allocation46_spill] sm:$0xff] }
 0x28b   :  { %8503 = vst [vmem:[#allocation141_spill] sm:$0xff] %v5146_v17 }
 0x28c   :  { %8504 = vst [vmem:[#allocation142_spill] sm:$0xff] %v5149_v25  ;;  %1504 = vrot.lane.b32.xlu2 %v3951_v16, %s3680_s27 }
 0x28d   :  { %1373 = vrot.lane.b32.xlu1 %v8412_v41, %s3678_s24 }
 0x28e   :  { %v5155_v11 = vpop.permute.xlu2 %1183 }
 0x28f   :  { %8505 = vst [vmem:[#allocation143_spill] sm:$0xff] %v5155_v11  ;;  %v5157_v42 = vpop.permute.xlu0 %1310  ;;  %v5159_v53 = vpop.permute.xlu1 %1179  ;;  %v1198_v22 = vmul.f32 %v5155_v11, %v1166_v43  ;;  %v1199_v29 = vmul.f32 %v5155_v11, %v1167_v15 }
 0x290   :  { %8506 = vst [vmem:[#allocation144_spill] sm:$0xff] %v5157_v42  ;;  %1877 = vrot.lane.b32.xlu0 %v8406_v23, %s3686_s30  ;;  %v1194_v57 = vmul.f32 %v5159_v53, %v1162_v49  ;;  %v1195_v58 = vmul.f32 %v5159_v53, %v1163_v28  ;;  %v8590_v42 = vld [vmem:[#allocation38_spill] sm:$0xff] }
 0x291   :  { %8507 = vst [vmem:[#allocation145_spill] sm:$0xff] %v5159_v53  ;;  %v5174_v17 = vadd.f32 %v1198_v22, %v5045_v62  ;;  %v5177_v43 = vadd.f32 %v1199_v29, %v5048_v13  ;;  %v8122_v62 = vmov 13   ;;  %v5510_v53 = vmul.f32 %v3939_v12, %v8411_v61 }
 0x292   :  { %v5168_v20 = vadd.f32 %v1194_v57, %v4934_v7  ;;  %v5171_v25 = vadd.f32 %v1195_v58, %v4954_v27 }
 0x293   :  { %8510 = vst [vmem:[#allocation148_spill] sm:$0xff] %v5174_v17  ;;  %v8525_v17 = vmov 12  }
 0x294   :  { %8508 = vst [vmem:[#allocation146_spill] sm:$0xff] %v5168_v20  ;;  %1357 = vrot.lane.b32.xlu2 %v3827_v38, %s3678_s24 }
 0x295   :  { %8509 = vst [vmem:[#allocation147_spill] sm:$0xff] %v5171_v25  ;;  %1570 = vperm.xlu1 %3496, %v4722_v32  }
 0x296   :  { %8511 = vst [vmem:[#allocation149_spill] sm:$0xff] %v5177_v43  ;;  %v5182_v49 = vpop.permute.xlu2 %1238 }
 0x297   :  { %8512 = vst [vmem:[#allocation150_spill] sm:$0xff] %v5182_v49  ;;  %v5184_v28 = vpop.permute.xlu0 %1236  ;;  %v5186_v7 = vpop.permute.xlu1 %1232 }
 0x298   :  { %8513 = vst [vmem:[#allocation151_spill] sm:$0xff] %v5184_v28  ;;  %1683 = vperm.xlu0 %3500, %v4673_v33  }
 0x299   :  { %8514 = vst [vmem:[#allocation152_spill] sm:$0xff] %v5186_v7 }
 0x29c   :  { %1365 = vrot.lane.b32.xlu2 %v3847_v44, %s3678_s24 }
 0x29d   :  { %1619 = vrot.lane.b32.xlu1 %v3925_v6, %s3682_s28 }
 0x29e   :  { %v5193_v27 = vpop.permute.xlu2 %1248  ;;  %3498 = vset.pattern.permute.xlu1 %v8486_v39 }
 0x29f   :  { %8515 = vst [vmem:[#allocation153_spill] sm:$0xff] %v5193_v27  ;;  %v5196_v13 = vpop.permute.xlu0 %1496  ;;  %v5198_v22 = vpop.permute.xlu1 %1246  ;;  %v8587_v27 = vld [vmem:[#allocation35_spill] sm:$0xff] }
 0x2a0   :  { %8516 = vst [vmem:[#allocation154_spill] sm:$0xff] %v5196_v13  ;;  %3503 = vset.pattern.permute.xlu0 %v8122_v62 }
 0x2a1   :  { %8517 = vst [vmem:[#allocation155_spill] sm:$0xff] %v5198_v22  ;;  %1816 = vperm.xlu0 %3503, %v4848_v54   ;;  %v8596_v22 = vld [vmem:[#allocation39_spill] sm:$0xff] }
 0x2a4   :  { %1375 = vrot.lane.b32.xlu2 %v3873_v51, %s3678_s24 }
 0x2a5   :  { %1633 = vrot.lane.b32.xlu1 %v8411_v61, %s3682_s28 }
 0x2a6   :  { %v5206_v15 = vpop.permute.xlu2 %1361 }
 0x2a7   :  { %8518 = vst [vmem:[#allocation156_spill] sm:$0xff] %v5206_v15  ;;  %v5208_v29 = vpop.permute.xlu0 %1302  ;;  %v5210_v39 = vpop.permute.xlu1 %1314 }
 0x2a8   :  { %8519 = vst [vmem:[#allocation157_spill] sm:$0xff] %v5208_v29 }
 0x2a9   :  { %8520 = vst [vmem:[#allocation158_spill] sm:$0xff] %v5210_v39  ;;  %1748 = vrot.lane.b32.xlu0 %v8410_v1, %s3684_s29  ;;  %v8133_v39 = vmov 14  }
 0x2ac   :  { %1617 = vrot.lane.b32.xlu2 %v3883_v55, %s3682_s28 }
 0x2ad   :  { %1431 = vperm.xlu1 %3498, %v4765_v36  }
 0x2ae   :  { %v5217_v57 = vpop.permute.xlu2 %1369 }
 0x2af   :  { %8521 = vst [vmem:[#allocation159_spill] sm:$0xff] %v5217_v57  ;;  %v5219_v58 = vpop.permute.xlu1 %1363 }
 0x2b0   :  { %8522 = vst [vmem:[#allocation160_spill] sm:$0xff] %v5219_v58  ;;  %v5221_v62 = vpop.permute.xlu0 %1435 }
 0x2b1   :  { %8523 = vst [vmem:[#allocation161_spill] sm:$0xff] %v5221_v62  ;;  %2004 = vrot.lane.b32.xlu0 %v8406_v23, %s3688_s5 }
 0x2b4   :  { %1625 = vrot.lane.b32.xlu2 %v8422_v14, %s3682_s28 }
 0x2b5   :  { %1484 = vrot.lane.b32.xlu1 %v3871_v50, %s3680_s27 }
 0x2b6   :  { %v5229_v43 = vpop.permute.xlu2 %1379  ;;  %3499 = vset.pattern.permute.xlu1 %v8525_v17 }
 0x2b7   :  { %8524 = vst [vmem:[#allocation162_spill] sm:$0xff] %v5229_v43  ;;  %v5232_v25 = vpop.permute.xlu1 %1377 }
 0x2b8   :  { %8526 = vst [vmem:[#allocation163_spill] sm:$0xff] %v5232_v25  ;;  %v5234_v20 = vpop.permute.xlu0 %1367  ;;  %v8588_v25 = vld [vmem:[#allocation12_spill] sm:$0xff] }
 0x2b9   :  { %8527 = vst [vmem:[#allocation164_spill] sm:$0xff] %v5234_v20  ;;  %1808 = vperm.xlu0 %3503, %v4673_v33   ;;  %v187_v15 = vmul.f32 %v8588_v25, %v8412_v41 }
 0x2bc   :  { %1635 = vrot.lane.b32.xlu2 %v3951_v16, %s3682_s28 }
 0x2bd   :  { %1498 = vrot.lane.b32.xlu1 %v8412_v41, %s3680_s27 }
 0x2be   :  { %v5241_v13 = vpop.permute.xlu2 %1226 }
 0x2bf   :  { %8528 = vst [vmem:[#allocation165_spill] sm:$0xff] %v5241_v13  ;;  %v5243_v29 = vpop.permute.xlu1 %1175 }
 0x2c0   :  { %8529 = vst [vmem:[#allocation166_spill] sm:$0xff] %v5243_v29  ;;  %v5245_v28 = vpop.permute.xlu0 %1627  ;;  %v1190_v43 = vmul.f32 %v5243_v29, %v5087_v48  ;;  %v1191_v20 = vmul.f32 %v5243_v29, %v5090_v5  ;;  %v8585_v29 = vld [vmem:[#allocation34_spill] sm:$0xff] }
 0x2c1   :  { %8530 = vst [vmem:[#allocation167_spill] sm:$0xff] %v5245_v28  ;;  %3506 = vset.pattern.permute.xlu0 %v8133_v39 }
 0x2c2   :  { %1943 = vperm.xlu0 %3506, %v4848_v54   ;;  %v5254_v62 = vadd.f32 %v1190_v43, %v5006_v3  ;;  %v5257_v13 = vadd.f32 %v1191_v20, %v5015_v26  ;;  %v8135_v43 = vmov 15  }
 0x2c3   :  { %3513 = vset.pattern.permute.xlu2 %v8135_v43 }
 0x2c4   :  { %8531 = vst [vmem:[#allocation168_spill] sm:$0xff] %v5254_v62  ;;  %1482 = vrot.lane.b32.xlu2 %v3827_v38, %s3680_s27 }
 0x2c5   :  { %8532 = vst [vmem:[#allocation169_spill] sm:$0xff] %v5257_v13  ;;  %1695 = vperm.xlu1 %3499, %v4722_v32  }
 0x2c6   :  { %v5262_v48 = vpop.permute.xlu2 %1234 }
 0x2c7   :  { %8533 = vst [vmem:[#allocation170_spill] sm:$0xff] %v5262_v48  ;;  %v5264_v28 = vpop.permute.xlu1 %1228 }
 0x2c8   :  { %8534 = vst [vmem:[#allocation171_spill] sm:$0xff] %v5264_v28  ;;  %v5266_v5 = vpop.permute.xlu0 %1427 }
 0x2c9   :  { %8535 = vst [vmem:[#allocation172_spill] sm:$0xff] %v5266_v5 }
 0x2ca   :  { %1873 = vrot.lane.b32.xlu0 %v8410_v1, %s3686_s30 }
 0x2cc   :  { %1490 = vrot.lane.b32.xlu2 %v3847_v44, %s3680_s27 }
 0x2cd   :  { %1736 = vrot.lane.b32.xlu1 %v3915_v2, %s3684_s29 }
 0x2ce   :  { %v5274_v3 = vpop.permute.xlu2 %1244  ;;  %3501 = vset.pattern.permute.xlu1 %v8501_v10 }
 0x2cf   :  { %8536 = vst [vmem:[#allocation173_spill] sm:$0xff] %v5274_v3  ;;  %v5277_v26 = vpop.permute.xlu1 %1242 }
 0x2d0   :  { %8537 = vst [vmem:[#allocation174_spill] sm:$0xff] %v5277_v26  ;;  %v8551_v26 = vmov 15  }
 0x2d1   :  { %v5279_v20 = vpop.permute.xlu0 %1566 }
 0x2d2   :  { %8538 = vst [vmem:[#allocation175_spill] sm:$0xff] %v5279_v20  ;;  %2129 = vrot.lane.b32.xlu0 %v8406_v23, %s3690_s6  ;;  %v8142_v20 = vmov 16  }
 0x2d4   :  { %1500 = vrot.lane.b32.xlu2 %v3873_v51, %s3680_s27 }
 0x2d5   :  { %1758 = vrot.lane.b32.xlu1 %v8411_v61, %s3684_s29 }
 0x2d6   :  { %v5288_v39 = vpop.permute.xlu2 %1486 }
 0x2d7   :  { %8539 = vst [vmem:[#allocation176_spill] sm:$0xff] %v5288_v39  ;;  %v5290_v10 = vpop.permute.xlu1 %1439 }
 0x2d8   :  { %8540 = vst [vmem:[#allocation177_spill] sm:$0xff] %v5290_v10  ;;  %v8546_v10 = vmov 13  }
 0x2d9   :  { %v5292_v13 = vpop.permute.xlu0 %1492 }
 0x2da   :  { %8541 = vst [vmem:[#allocation178_spill] sm:$0xff] %v5292_v13  ;;  %1935 = vperm.xlu0 %3506, %v4673_v33  }
 0x2dc   :  { %1734 = vrot.lane.b32.xlu2 %v8421_v34, %s3684_s29 }
 0x2dd   :  { %1562 = vperm.xlu1 %3501, %v4765_v36  }
 0x2de   :  { %v5298_v43 = vpop.permute.xlu2 %1494 }
 0x2df   :  { %8542 = vst [vmem:[#allocation179_spill] sm:$0xff] %v5298_v43  ;;  %v5300_v62 = vpop.permute.xlu1 %1488  ;;  %v8584_v43 = vld [vmem:[#allocation33_spill] sm:$0xff] }
 0x2e0   :  { %8543 = vst [vmem:[#allocation180_spill] sm:$0xff] %v5300_v62 }
 0x2e1   :  { %v5302_v5 = vpop.permute.xlu0 %1752 }
 0x2e2   :  { %8544 = vst [vmem:[#allocation181_spill] sm:$0xff] %v5302_v5  ;;  %2000 = vrot.lane.b32.xlu0 %v8410_v1, %s3688_s5 }
 0x2e3   :  { %3510 = vset.pattern.permute.xlu0 %v8142_v20 }
 0x2e4   :  { %1750 = vrot.lane.b32.xlu2 %v8422_v14, %s3684_s29 }
 0x2e5   :  { %1615 = vrot.lane.b32.xlu1 %v3871_v50, %s3682_s28 }
 0x2e6   :  { %v5311_v33 = vpop.permute.xlu2 %1504  ;;  %3502 = vset.pattern.permute.xlu1 %v8546_v10 }
 0x2e7   :  { %8545 = vst [vmem:[#allocation182_spill] sm:$0xff] %v5311_v33  ;;  %v5314_v13 = vpop.permute.xlu1 %1502 }
 0x2e8   :  { %8547 = vst [vmem:[#allocation183_spill] sm:$0xff] %v5314_v13 }
 0x2e9   :  { %v5316_v62 = vpop.permute.xlu0 %1558 }
 0x2ea   :  { %8548 = vst [vmem:[#allocation184_spill] sm:$0xff] %v5316_v62  ;;  %2195 = vperm.xlu0 %3510, %v4848_v54  }
 0x2ec   :  { %1760 = vrot.lane.b32.xlu2 %v3951_v16, %s3684_s29 }
 0x2ed   :  { %1629 = vrot.lane.b32.xlu1 %v8412_v41, %s3682_s28 }
 0x2ee   :  { %v5323_v20 = vpop.permute.xlu2 %1357 }
 0x2ef   :  { %8549 = vst [vmem:[#allocation185_spill] sm:$0xff] %v5323_v20  ;;  %v5325_v5 = vpop.permute.xlu1 %1306 }
 0x2f0   :  { %8550 = vst [vmem:[#allocation186_spill] sm:$0xff] %v5325_v5 }
 0x2f2   :  { %3511 = vset.pattern.permute.xlu0 %v8551_v26  ;;  %v5328_v33 = vpop.permute.xlu0 %1691 }
 0x2f3   :  { %8552 = vst [vmem:[#allocation187_spill] sm:$0xff] %v5328_v33  ;;  %2068 = vperm.xlu0 %3511, %v4848_v54  }
 0x2f4   :  { %1613 = vrot.lane.b32.xlu2 %v3827_v38, %s3682_s28 }
 0x2f5   :  { %1820 = vperm.xlu1 %3502, %v4722_v32  }
 0x2f6   :  { %v5334_v62 = vpop.permute.xlu2 %1365 }
 0x2f7   :  { %8553 = vst [vmem:[#allocation188_spill] sm:$0xff] %v5334_v62  ;;  %v5336_v13 = vpop.permute.xlu1 %1359 }
 0x2f8   :  { %8554 = vst [vmem:[#allocation189_spill] sm:$0xff] %v5336_v13 }
 0x2fa   :  { %v5338_v3 = vpop.permute.xlu0 %1623 }
 0x2fb   :  { %8555 = vst [vmem:[#allocation190_spill] sm:$0xff] %v5338_v3  ;;  %2064 = vperm.xlu0 %3511, %v4765_v36  }
 0x2fc   :  { %1621 = vrot.lane.b32.xlu2 %v3847_v44, %s3682_s28 }
 0x2fd   :  { %1861 = vrot.lane.b32.xlu1 %v3915_v2, %s3686_s30 }
 0x2fe   :  { %v5345_v54 = vpop.permute.xlu2 %1375  ;;  %3504 = vset.pattern.permute.xlu1 %v8525_v17 }
 0x2ff   :  { %8556 = vst [vmem:[#allocation191_spill] sm:$0xff] %v5345_v54  ;;  %v5348_v20 = vpop.permute.xlu1 %1373 }
 0x300   :  { %8557 = vst [vmem:[#allocation192_spill] sm:$0xff] %v5348_v20 }
 0x302   :  { %v5350_v33 = vpop.permute.xlu0 %1877 }
 0x303   :  { %8558 = vst [vmem:[#allocation193_spill] sm:$0xff] %v5350_v33  ;;  %2131 = vrot.lane.b32.xlu0 %v8412_v41, %s3690_s6 }
 0x304   :  { %1631 = vrot.lane.b32.xlu2 %v3873_v51, %s3682_s28 }
 0x305   :  { %1883 = vrot.lane.b32.xlu1 %v8411_v61, %s3686_s30 }
 0x306   :  { %v5358_v62 = vpop.permute.xlu2 %1617 }
 0x307   :  { %8559 = vst [vmem:[#allocation194_spill] sm:$0xff] %v5358_v62  ;;  %v5360_v3 = vpop.permute.xlu1 %1570 }
 0x308   :  { %8560 = vst [vmem:[#allocation195_spill] sm:$0xff] %v5360_v3  ;;  %v8566_v3 = vmov 14  }
 0x30a   :  { %v5362_v5 = vpop.permute.xlu0 %1683 }
 0x30b   :  { %8561 = vst [vmem:[#allocation196_spill] sm:$0xff] %v5362_v5  ;;  %1355 = vrot.lane.b32.xlu0 %v3915_v2, %s3678_s24 }
 0x30c   :  { %1859 = vrot.lane.b32.xlu2 %v8421_v34, %s3686_s30 }
 0x30d   :  { %1687 = vperm.xlu1 %3504, %v4765_v36  }
 0x30e   :  { %v5369_v17 = vpop.permute.xlu2 %1625 }
 0x30f   :  { %8562 = vst [vmem:[#allocation197_spill] sm:$0xff] %v5369_v17  ;;  %v5371_v20 = vpop.permute.xlu1 %1619 }
 0x310   :  { %8563 = vst [vmem:[#allocation198_spill] sm:$0xff] %v5371_v20 }
 0x313   :  { %v5373_v54 = vpop.permute.xlu0 %1816  ;;  %1218 = vrot.lane.b32.xlu0 %v8417_v24, %s3677_s21 }
 0x314   :  { %8564 = vst [vmem:[#allocation199_spill] sm:$0xff] %v5373_v54  ;;  %1875 = vrot.lane.b32.xlu2 %v8422_v14, %s3686_s30 }
 0x315   :  { %1732 = vrot.lane.b32.xlu1 %v3849_v45, %s3684_s29 }
 0x316   :  { %v5381_v5 = vpop.permute.xlu2 %1635  ;;  %3505 = vset.pattern.permute.xlu1 %v8566_v3 }
 0x317   :  { %8565 = vst [vmem:[#allocation200_spill] sm:$0xff] %v5381_v5  ;;  %v5384_v13 = vpop.permute.xlu1 %1633 }
 0x318   :  { %8567 = vst [vmem:[#allocation201_spill] sm:$0xff] %v5384_v13 }
 0x31b   :  { %v5386_v62 = vpop.permute.xlu0 %1748  ;;  %1480 = vrot.lane.b32.xlu0 %v3915_v2, %s3680_s27 }
 0x31c   :  { %8568 = vst [vmem:[#allocation202_spill] sm:$0xff] %v5386_v62  ;;  %1885 = vrot.lane.b32.xlu2 %v3951_v16, %s3686_s30 }
 0x31d   :  { %1754 = vrot.lane.b32.xlu1 %v8412_v41, %s3684_s29 }
 0x31e   :  { %v5394_v20 = vpop.permute.xlu2 %1482 }
 0x31f   :  { %8569 = vst [vmem:[#allocation203_spill] sm:$0xff] %v5394_v20  ;;  %v5396_v54 = vpop.permute.xlu1 %1431 }
 0x320   :  { %8570 = vst [vmem:[#allocation204_spill] sm:$0xff] %v5396_v54 }
 0x323   :  { %v5398_v5 = vpop.permute.xlu0 %2004  ;;  %1609 = vrot.lane.b32.xlu0 %v8421_v34, %s3682_s28 }
 0x324   :  { %8571 = vst [vmem:[#allocation205_spill] sm:$0xff] %v5398_v5  ;;  %1730 = vrot.lane.b32.xlu2 %v8417_v24, %s3684_s29  ;;  %v8575_v5 = vld [vmem:[#allocation56_spill] sm:$0xff] }
 0x325   :  { %1947 = vperm.xlu1 %3505, %v4722_v32   ;;  %v259_v54 = vperm.slane %v8575_v5, 4  ;;  %v260_v17 = vperm.slane %v8575_v5, 6 }
 0x326   :  { %v5405_v62 = vpop.permute.xlu2 %1490 }
 0x327   :  { %8572 = vst [vmem:[#allocation206_spill] sm:$0xff] %v5405_v62  ;;  %v5407_v13 = vpop.permute.xlu1 %1484  ;;  %v384_v62 = vperm.slane %v8426_v52, 4  ;;  %v5428_v28 = vperm.slane %v260_v17, 0  ;;  %v8582_v17 = vld [vmem:[#allocation61_spill] sm:$0xff] }
 0x328   :  { %8573 = vst [vmem:[#allocation207_spill] sm:$0xff] %v5407_v13  ;;  %v385_v13 = vperm.slane %v8426_v52, 6  ;;  %v516_v7 = vperm.slane %v8582_v17, 6 }
 0x329   :  { %v5430_v48 = vperm.slane %v384_v62, 0  ;;  %vm268_vm15 = vcmp.eq.s32.totalorder %v5428_v28, 1  ;;  %v8581_v62 = vld [vmem:[#allocation32_spill] sm:$0xff] }
 0x32a   :  { %v5432_v5 = vperm.slane %v385_v13, 0 }
 0x32b   :  { %1476 = vrot.lane.b32.xlu0 %v3849_v45, %s3680_s27  ;;  %v5411_v20 = vpop.permute.xlu0 %1808  ;;  %vm392_vm6 = vcmp.eq.s32.totalorder %v5430_v48, 1  ;;  %v8622_v48 = vld [vmem:[#allocation55_spill] sm:$0xff] }
 0x32c   :  { %8574 = vst [vmem:[#allocation208_spill] sm:$0xff] %v5411_v20  ;;  %1746 = vrot.lane.b32.xlu2 %v3847_v44, %s3684_s29  ;;  %v5426_v20 = vperm.slane %v259_v54, 0  ;;  %vm393_vm10 = vcmp.eq.s32.totalorder %v5432_v5, 1 }
 0x32d   :  { %1988 = vrot.lane.b32.xlu1 %v3915_v2, %s3688_s5 }
 0x32e   :  { %v5419_v32 = vpop.permute.xlu2 %1500  ;;  %3507 = vset.pattern.permute.xlu1 %v8546_v10  ;;  %vm267_vm14 = vcmp.eq.s32.totalorder %v5426_v20, 1  ;;  %v8579_v10 = vld [vmem:[#allocation29_spill] sm:$0xff] }
 0x32f   :  { %8576 = vst [vmem:[#allocation56_spill] sm:$0xff] %v5419_v32  ;;  %v5424_v33 = vpop.permute.xlu1 %1498  ;;  %v235_v13 = vsel %vm234_vm7, %v8579_v10, %v8581_v62 }
 0x330   :  { %8577 = vst [vmem:[#allocation209_spill] sm:$0xff] %v5424_v33  ;;  %v8580_v33 = vld [vmem:[#allocation30_spill] sm:$0xff]  ;;  %v272_v62 = vsel %vm268_vm15, %v235_v13, 0.0 }
 0x331   :  { %v239_v54 = vsel %vm234_vm7, %v8580_v33, %v8579_v10  ;;  %v370_v33 = vsel %vm365_vm8, %v8585_v29, %v8584_v43  ;;  %v186_v29 = vmul.f32 %v8588_v25, %v3847_v44  ;;  %v5492_v25 = vmul.f32 %v3939_v12, %v8422_v14 }
 0x332   :  { %v271_v10 = vsel %vm267_vm14, %v239_v54, 0.0  ;;  %v396_v54 = vsel %vm392_vm6, %v370_v33, 0.0  ;;  %v236_v12 = vsel %vm234_vm7, %v8590_v42, %v8597_v59 }
 0x333   :  { %1605 = vrot.lane.b32.xlu0 %v8417_v24, %s3682_s28 }
 0x334   :  { %v5436_v32 = vpop.permute.xlu0 %1943  ;;  %1756 = vrot.lane.b32.xlu2 %v3873_v51, %s3684_s29 }
 0x335   :  { %8578 = vst [vmem:[#allocation210_spill] sm:$0xff] %v5436_v32  ;;  %2010 = vrot.lane.b32.xlu1 %v8411_v61, %s3688_s5  ;;  %v515_v32 = vperm.slane %v8582_v17, 4  ;;  %v8591_v17 = vld [vmem:[#allocation18_spill] sm:$0xff] }
 0x336   :  { %v5453_v39 = vpop.permute.xlu2 %1734  ;;  %v304_v11 = vmul.f32 %v8591_v17, %v272_v62 }
 0x337   :  { %8583 = vst [vmem:[#allocation29_spill] sm:$0xff] %v5453_v39  ;;  %v5461_v58 = vpop.permute.xlu1 %1695  ;;  %v366_v39 = vsel %vm365_vm8, %v8584_v43, %v8587_v27  ;;  %v5480_v13 = vperm.slane %v515_v32, 0  ;;  %v240_v27 = vsel %vm234_vm7, %v4008_v37, %v8590_v42  ;;  %v8592_v37 = vld [vmem:[#allocation16_spill] sm:$0xff] }
 0x338   :  { %8586 = vst [vmem:[#allocation30_spill] sm:$0xff] %v5461_v58  ;;  %v8589_v58 = vld [vmem:[#allocation14_spill] sm:$0xff]  ;;  %v397_v32 = vsel %vm393_vm10, %v366_v39, 0.0  ;;  %v5502_v33 = vmul.f32 %v8592_v37, %v8406_v23  ;;  %v8594_v39 = vld [vmem:[#allocation24_spill] sm:$0xff]  ;;  %v275_v23 = vsel %vm267_vm14, %v240_v27, 0.0  ;;  %v320_v59 = vadd.f32 %v304_v11, %v187_v15  ;;  %v8604_v11 = vld [vmem:[#allocation49_spill] sm:$0xff] }
 0x339   :  { %v190_v57 = vmul.f32 %v8589_v58, %v8410_v1  ;;  %v5488_v43 = vmul.f32 %v8589_v58, %v3873_v51  ;;  %v303_v1 = vmul.f32 %v8591_v17, %v271_v10  ;;  %v5506_v58 = vmul.f32 %v8592_v37, %v3951_v16  ;;  %v8602_v42 = vld [vmem:[#allocation44_spill] sm:$0xff] }
 0x33a   :  { %v5512_v10 = vperm.slane %v516_v7, 0  ;;  %v428_v17 = vmul.f32 %v8594_v39, %v396_v54  ;;  %v429_v7 = vmul.f32 %v8594_v39, %v397_v32  ;;  %vm523_vm11 = vcmp.eq.s32.totalorder %v5480_v13, 1  ;;  %v8598_v54 = vld [vmem:[#allocation36_spill] sm:$0xff]  ;;  %v8634_v13 = vld [vmem:[#allocation75_spill] sm:$0xff] }
 0x33b   :  { %1869 = vrot.lane.b32.xlu0 %v3925_v6, %s3686_s30  ;;  %v8595_v6 = vld [vmem:[#allocation40_spill] sm:$0xff]  ;;  %v319_v9 = vadd.f32 %v303_v1, %v186_v29  ;;  %v237_v32 = vsel %vm234_vm7, %v8600_v56, %v4081_v4  ;;  %v307_v39 = vmul.f32 %v3905_v63, %v275_v23  ;;  %v276_v1 = vsel %vm268_vm15, %v236_v12, 0.0  ;;  %v8605_v12 = vld [vmem:[#allocation59_spill] sm:$0xff] }
 0x33c   :  { %v5514_v62 = vpop.permute.xlu0 %1873  ;;  %1986 = vrot.lane.b32.xlu2 %v8421_v34, %s3688_s5  ;;  %v371_v37 = vsel %vm365_vm8, %v8596_v22, %v8595_v6  ;;  %v241_v22 = vsel %vm234_vm7, %v4053_v60, %v8600_v56  ;;  %vm524_vm2 = vcmp.eq.s32.totalorder %v5512_v10, 1  ;;  %v5568_v56 = vadd.f32 %v429_v7, %v320_v59 }
 0x33d   :  { %8593 = vst [vmem:[#allocation32_spill] sm:$0xff] %v5514_v62  ;;  %1812 = vperm.xlu1 %3507, %v4765_v36   ;;  %v8599_v62 = vld [vmem:[#allocation37_spill] sm:$0xff]  ;;  %v367_v36 = vsel %vm365_vm8, %v8595_v6, %v8602_v42  ;;  %v400_v60 = vsel %vm392_vm6, %v371_v37, 0.0  ;;  %v372_v6 = vsel %vm365_vm8, %v4063_v8, %v8604_v11  ;;  %v5561_v15 = vadd.f32 %v428_v17, %v319_v9  ;;  %v8606_v17 = vld [vmem:[#allocation20_spill] sm:$0xff]  ;;  %v8607_v42 = vld [vmem:[#allocation42_spill] sm:$0xff] }
 0x33e   :  { %v495_v27 = vsel %vm490_vm13, %v8599_v62, %v8598_v54  ;;  %v5540_v49 = vpop.permute.xlu2 %1750  ;;  %v279_v23 = vsel %vm267_vm14, %v241_v22, 0.0  ;;  %v401_v29 = vsel %vm393_vm10, %v367_v36, 0.0  ;;  %v280_v37 = vsel %vm268_vm15, %v237_v32, 0.0  ;;  %v8608_v36 = vld [vmem:[#allocation41_spill] sm:$0xff]  ;;  %v8609_v32 = vld [vmem:[#allocation26_spill] sm:$0xff] }
 0x33f   :  { %8601 = vst [vmem:[#allocation61_spill] sm:$0xff] %v5540_v49  ;;  %v5550_v62 = vpop.permute.xlu1 %1736  ;;  %v527_v4 = vsel %vm523_vm11, %v495_v27, 0.0  ;;  %v242_v8 = vsel %vm234_vm7, %v4127_v47, %v8605_v12  ;;  %v491_v9 = vsel %vm490_vm13, %v8598_v54, %v4006_v35  ;;  %v432_v27 = vmul.f32 %v8606_v17, %v400_v60  ;;  %v8610_v49 = vld [vmem:[#allocation62_spill] sm:$0xff] }
 0x340   :  { %8603 = vst [vmem:[#allocation33_spill] sm:$0xff] %v5550_v62  ;;  %v308_v7 = vmul.f32 %v3905_v63, %v276_v1  ;;  %v404_v22 = vsel %vm392_vm6, %v372_v6, 0.0  ;;  %v323_v59 = vadd.f32 %v307_v39, %v190_v57  ;;  %v496_v47 = vsel %vm490_vm13, %v8608_v36, %v8607_v42  ;;  %v8612_v39 = vld [vmem:[#allocation51_spill] sm:$0xff]  ;;  %v8613_v6 = vld [vmem:[#allocation28_spill] sm:$0xff] }
 0x341   :  { %v311_v62 = vmul.f32 %v8609_v32, %v279_v23  ;;  %v238_v35 = vsel %vm234_vm7, %v8605_v12, %v8610_v49  ;;  %v433_v54 = vmul.f32 %v8606_v17, %v401_v29  ;;  %v312_v57 = vmul.f32 %v8609_v32, %v280_v37  ;;  %v8614_v12 = vld [vmem:[#allocation63_spill] sm:$0xff]  ;;  %v8615_v29 = vld [vmem:[#allocation60_spill] sm:$0xff]  ;;  %v8616_v17 = vld [vmem:[#allocation65_spill] sm:$0xff] }
 0x342   :  { %v368_v60 = vsel %vm365_vm8, %v8604_v11, %v8612_v39  ;;  %v283_v1 = vsel %vm267_vm14, %v242_v8, 0.0  ;;  %v528_v49 = vsel %vm524_vm2, %v491_v9, 0.0  ;;  %v436_v23 = vmul.f32 %v8613_v6, %v404_v22 }
 0x343   :  { %1994 = vrot.lane.b32.xlu0 %v3883_v55, %s3688_s5  ;;  %v373_v37 = vsel %vm365_vm8, %v8615_v29, %v8614_v12  ;;  %v369_v11 = vsel %vm365_vm8, %v8614_v12, %v8616_v17  ;;  %v448_v8 = vadd.f32 %v432_v27, %v323_v59  ;;  %v531_v9 = vsel %vm523_vm11, %v496_v47, 0.0  ;;  %v8618_v29 = vld [vmem:[#allocation52_spill] sm:$0xff]  ;;  %v8620_v27 = vld [vmem:[#allocation22_spill] sm:$0xff] }
 0x344   :  { %v5597_v63 = vpop.permute.xlu0 %2129  ;;  %2002 = vrot.lane.b32.xlu2 %v8422_v14, %s3688_s5  ;;  %v324_v22 = vadd.f32 %v308_v7, %v5488_v43  ;;  %v284_v36 = vsel %vm268_vm15, %v238_v35, 0.0  ;;  %v327_v39 = vadd.f32 %v311_v62, %v5492_v25  ;;  %v315_v59 = vmul.f32 %v8620_v27, %v283_v1  ;;  %v8621_v35 = vld [vmem:[#allocation67_spill] sm:$0xff]  ;;  %v8624_v17 = vld [vmem:[#allocation66_spill] sm:$0xff] }
 0x345   :  { %8611 = vst [vmem:[#allocation34_spill] sm:$0xff] %v5597_v63  ;;  %1857 = vrot.lane.b32.xlu1 %v3849_v45, %s3686_s30  ;;  %v8619_v63 = vld [vmem:[#allocation48_spill] sm:$0xff]  ;;  %v328_v43 = vadd.f32 %v312_v57, %v5510_v53  ;;  %v408_v28 = vsel %vm392_vm6, %v373_v37, 0.0  ;;  %v409_v7 = vsel %vm393_vm10, %v369_v11, 0.0  ;;  %v316_v62 = vmul.f32 %v8620_v27, %v284_v36  ;;  %v8627_v36 = vld [vmem:[#allocation70_spill] sm:$0xff] }
 0x346   :  { %v5622_v20 = vpop.permute.xlu2 %1760  ;;  %3508 = vset.pattern.permute.xlu1 %v8551_v26  ;;  %v497_v12 = vsel %vm490_vm13, %v8619_v63, %v8618_v29  ;;  %v405_v26 = vsel %vm393_vm10, %v368_v60, 0.0  ;;  %v449_v47 = vadd.f32 %v433_v54, %v324_v22  ;;  %v452_v25 = vadd.f32 %v436_v23, %v327_v39  ;;  %v8625_v11 = vld [vmem:[#allocation64_spill] sm:$0xff] }
 0x347   :  { %8617 = vst [vmem:[#allocation35_spill] sm:$0xff] %v5622_v20  ;;  %v5630_v32 = vpop.permute.xlu1 %1758  ;;  %v492_v63 = vsel %vm490_vm13, %v8607_v42, %v8621_v35  ;;  %v641_v60 = vperm.slane %v8426_v52, 7  ;;  %v535_v54 = vsel %vm523_vm11, %v497_v12, 0.0  ;;  %v437_v53 = vmul.f32 %v8613_v6, %v405_v26  ;;  %v8623_v42 = vld [vmem:[#allocation27_spill] sm:$0xff]  ;;  %v8629_v27 = vld [vmem:[#allocation68_spill] sm:$0xff] }
 0x348   :  { %v493_v5 = vsel %vm490_vm13, %v8618_v29, %v8622_v48  ;;  %v640_v57 = vperm.slane %v8426_v52, 5  ;;  %v331_v1 = vadd.f32 %v315_v59, %v5502_v33  ;;  %v440_v23 = vmul.f32 %v8623_v42, %v408_v28  ;;  %v8628_v29 = vld [vmem:[#allocation69_spill] sm:$0xff] }
 0x349   :  { %v441_v37 = vmul.f32 %v8623_v42, %v409_v7  ;;  %v498_v6 = vsel %vm490_vm13, %v8625_v11, %v8624_v17  ;;  %v532_v52 = vsel %vm524_vm2, %v492_v63, 0.0  ;;  %v559_v39 = vmul.f32 %v8627_v36, %v527_v4 }
 0x34a   :  { %v560_v33 = vmul.f32 %v8627_v36, %v528_v49  ;;  %v563_v12 = vmul.f32 %v8628_v29, %v531_v9  ;;  %v332_v26 = vadd.f32 %v316_v62, %v5506_v58  ;;  %v494_v59 = vsel %vm490_vm13, %v8624_v17, %v8629_v27  ;;  %v8631_v9 = vld [vmem:[#allocation45_spill] sm:$0xff] }
 0x34b   :  { %1865 = vrot.lane.b32.xlu0 %v3871_v50, %s3686_s30  ;;  %v564_v28 = vmul.f32 %v8628_v29, %v532_v52  ;;  %v645_v7 = vperm.slane %v641_v60, 1  ;;  %v453_v4 = vadd.f32 %v437_v53, %v328_v43  ;;  %v536_v49 = vsel %vm524_vm2, %v493_v5, 0.0  ;;  %v8633_v52 = vld [vmem:[#allocation71_spill] sm:$0xff] }
 0x34c   :  { %v5668_v22 = vpop.permute.xlu0 %1935  ;;  %2012 = vrot.lane.b32.xlu2 %v3951_v16, %s3688_s5  ;;  %v567_v63 = vmul.f32 %v8631_v9, %v535_v54  ;;  %v644_v48 = vperm.slane %v640_v57, 1  ;;  %v456_v58 = vadd.f32 %v440_v23, %v331_v1  ;;  %v457_v62 = vadd.f32 %v441_v37, %v332_v26  ;;  %v8632_v57 = vld [vmem:[#allocation73_spill] sm:$0xff]  ;;  %v8635_v37 = vld [vmem:[#allocation58_spill] sm:$0xff] }
 0x34d   :  { %8626 = vst [vmem:[#allocation12_spill] sm:$0xff] %v5668_v22  ;;  %1879 = vrot.lane.b32.xlu1 %v8412_v41, %s3686_s30  ;;  %v539_v11 = vsel %vm523_vm11, %v498_v6, 0.0  ;;  %v568_v17 = vmul.f32 %v8631_v9, %v536_v49  ;;  %v540_v60 = vsel %vm524_vm2, %v494_v59, 0.0  ;;  %v575_v43 = vadd.f32 %v559_v39, %v5561_v15  ;;  %v8637_v6 = vld [vmem:[#allocation3_spill] sm:$0xff]  ;;  %v8638_v39 = vld [vmem:[#allocation54_spill] sm:$0xff] }
 0x34e   :  { %v5685_v35 = vpop.permute.xlu2 %1613  ;;  %v576_v53 = vadd.f32 %v560_v33, %v5568_v56  ;;  %v5699_v5 = vadd.f32 %v563_v12, %v448_v8  ;;  %v5701_v54 = vadd.f32 %v564_v28, %v449_v47  ;;  %v626_v1 = vsel %vm621_vm1, %v8633_v52, %v8632_v57  ;;  %v8636_v47 = vld [vmem:[#allocation77_spill] sm:$0xff]  ;;  %v8641_v26 = vld [vmem:[#allocation2_spill] sm:$0xff] }
 0x34f   :  { %8630 = vst [vmem:[#allocation14_spill] sm:$0xff] %v5685_v35  ;;  %v5690_v42 = vpop.permute.xlu1 %1562  ;;  %vm649_vm7 = vcmp.eq.s32.totalorder %v645_v7, 1  ;;  %v622_v10 = vsel %vm621_vm1, %v8632_v57, %v8634_v13  ;;  %v583_v23 = vadd.f32 %v567_v63, %v452_v25  ;;  %v571_v15 = vmul.f32 %v8635_v37, %v539_v11  ;;  %v8640_v25 = vld [vmem:[#allocation72_spill] sm:$0xff]  ;;  %v8643_v49 = vld [vmem:[#allocation74_spill] sm:$0xff]  ;;  %v5738_v63 = vld [vmem:[%s7926_s3 + $0x18] sm:$0xff] }
 0x350   :  { %v572_v56 = vmul.f32 %v8635_v37, %v540_v60  ;;  %vm648_vm8 = vcmp.eq.s32.totalorder %v644_v48, 1  ;;  %v584_v8 = vadd.f32 %v568_v17, %v453_v4  ;;  %v628_v36 = vsel %vm621_vm1, %v8637_v6, %v8636_v47  ;;  %v8642_v4 = vld [vmem:[#allocation76_spill] sm:$0xff]  ;;  %v8644_v11 = vld [vmem:[#allocation50_spill] sm:$0xff]  ;;  %v8645_v60 = vld [vmem:[#allocation79_spill] sm:$0xff] }
 0x351   :  { %v766_v33 = vperm.slane %v8638_v39, 7  ;;  %v765_v29 = vperm.slane %v8638_v39, 5  ;;  %v627_v27 = vsel %vm621_vm1, %v8641_v26, %v8640_v25  ;;  %v652_v59 = vsel %vm648_vm8, %v626_v1, 0.0  ;;  %v8646_v52 = vld [vmem:[#allocation78_spill] sm:$0xff]  ;;  %v8655_v7 = vld [vmem:[#allocation53_spill] sm:$0xff] }
 0x352   :  { %v653_v28 = vsel %vm649_vm7, %v622_v10, 0.0  ;;  %v629_v9 = vsel %vm621_vm1, %v8643_v49, %v8642_v4  ;;  %v625_v17 = vsel %vm621_vm1, %v8642_v4, %v8644_v11  ;;  %v623_v57 = vsel %vm621_vm1, %v8640_v25, %v8645_v60  ;;  %v8647_v13 = vld [vmem:[#allocation82_spill] sm:$0xff]  ;;  %v8650_v25 = vld [vmem:[#allocation80_spill] sm:$0xff] }
 0x353   :  { %1990 = vrot.lane.b32.xlu0 %v3827_v38, %s3688_s5  ;;  %v624_v1 = vsel %vm621_vm1, %v8636_v47, %v8646_v52  ;;  %v684_v10 = vmul.f32 %v8647_v13, %v652_v59  ;;  %v587_v6 = vadd.f32 %v571_v15, %v456_v58  ;;  %v588_v26 = vadd.f32 %v572_v56, %v457_v62  ;;  %v8651_v56 = vld [vmem:[#allocation95_spill] sm:$0xff] }
 0x354   :  { %v5721_v12 = vpop.permute.xlu0 %2000  ;;  %1855 = vrot.lane.b32.xlu2 %v8417_v24, %s3686_s30  ;;  %v660_v49 = vsel %vm648_vm8, %v628_v36, 0.0  ;;  %v685_v4 = vmul.f32 %v8647_v13, %v653_v28  ;;  %v770_v38 = vperm.slane %v766_v33, 1  ;;  %v769_v55 = vperm.slane %v765_v29, 1  ;;  %v8652_v36 = vld [vmem:[#allocation93_spill] sm:$0xff]  ;;  %v8653_v28 = vld [vmem:[#allocation86_spill] sm:$0xff] }
 0x355   :  { %8639 = vst [vmem:[#allocation38_spill] sm:$0xff] %v5721_v12  ;;  %2072 = vperm.xlu1 %3508, %v5738_v63   ;;  %v656_v12 = vsel %vm648_vm8, %v627_v27, 0.0  ;;  %v692_v60 = vmul.f32 %v8650_v25, %v660_v49  ;;  %v664_v47 = vsel %vm648_vm8, %v629_v9, 0.0  ;;  %v665_v59 = vsel %vm649_vm7, %v625_v17, 0.0  ;;  %v8654_v29 = vld [vmem:[#allocation81_spill] sm:$0xff] }
 0x356   :  { %v5754_v37 = vpop.permute.xlu2 %1621  ;;  %v657_v52 = vsel %vm649_vm7, %v623_v57, 0.0  ;;  %v661_v58 = vsel %vm649_vm7, %v624_v1, 0.0  ;;  %v700_v15 = vadd.f32 %v684_v10, %v575_v43  ;;  %v749_v27 = vsel %vm746_vm9, %v8652_v36, %v8651_v56  ;;  %v8656_v43 = vld [vmem:[#allocation89_spill] sm:$0xff]  ;;  %v8657_v1 = vld [vmem:[#allocation90_spill] sm:$0xff] }
 0x357   :  { %8648 = vst [vmem:[#allocation18_spill] sm:$0xff] %v5754_v37  ;;  %v5758_v11 = vpop.permute.xlu1 %1615  ;;  %v693_v62 = vmul.f32 %v8650_v25, %v661_v58  ;;  %v761_v48 = vsel %vm746_vm9, %v8651_v56, %v8653_v28  ;;  %v701_v33 = vadd.f32 %v685_v4, %v576_v53  ;;  %v688_v9 = vmul.f32 %v8654_v29, %v656_v12  ;;  %v8659_v53 = vld [vmem:[#allocation96_spill] sm:$0xff]  ;;  %v8661_v25 = vld [vmem:[#allocation87_spill] sm:$0xff] }
 0x358   :  { %8649 = vst [vmem:[#allocation16_spill] sm:$0xff] %v5758_v11  ;;  %v689_v17 = vmul.f32 %v8654_v29, %v657_v52  ;;  %v893_v57 = vperm.slane %v8655_v7, 6  ;;  %vm774_vm13 = vcmp.eq.s32.totalorder %v770_v38, 1  ;;  %vm773_vm1 = vcmp.eq.s32.totalorder %v769_v55, 1  ;;  %v8660_v12 = vld [vmem:[#allocation88_spill] sm:$0xff]  ;;  %v5842_v38 = vld [vmem:[%s7928_s1] sm:$0xff] }
 0x359   :  { %v747_v13 = vsel %vm746_vm9, %v8657_v1, %v8656_v43  ;;  %v708_v10 = vadd.f32 %v692_v60, %v583_v23  ;;  %v748_v4 = vsel %vm746_vm9, %v8660_v12, %v8659_v53  ;;  %v760_v52 = vsel %vm746_vm9, %v8659_v53, %v8661_v25  ;;  %v8662_v23 = vld [vmem:[#allocation85_spill] sm:$0xff]  ;;  %v8663_v28 = vld [vmem:[#allocation84_spill] sm:$0xff]  ;;  %v8666_v53 = vld [vmem:[#allocation91_spill] sm:$0xff]  ;;  %8672 = vst [vmem:[#allocation43_spill] sm:$0xff] %v5842_v38 }
 0x35a   :  { %v785_v58 = vsel %vm773_vm1, %v749_v27, 0.0  ;;  %v786_v56 = vsel %vm774_vm13, %v761_v48, 0.0  ;;  %v696_v60 = vmul.f32 %v8662_v23, %v664_v47  ;;  %v697_v36 = vmul.f32 %v8662_v23, %v665_v59  ;;  %v8665_v48 = vld [vmem:[#allocation83_spill] sm:$0xff]  ;;  %v8674_v55 = vld [vmem:[#allocation100_spill] sm:$0xff] }
 0x35b   :  { %2117 = vrot.lane.b32.xlu0 %v3871_v50, %s3690_s6  ;;  %v759_v29 = vsel %vm746_vm9, %v8656_v43, %v8663_v28  ;;  %v709_v1 = vadd.f32 %v693_v62, %v584_v8  ;;  %v777_v27 = vsel %vm773_vm1, %v747_v13, 0.0  ;;  %v762_v25 = vsel %vm746_vm9, %v8666_v53, %v8665_v48  ;;  %v8668_v62 = vld [vmem:[#allocation94_spill] sm:$0xff]  ;;  %v8669_v13 = vld [vmem:[#allocation92_spill] sm:$0xff]  ;;  %v8670_v48 = vld [vmem:[#allocation99_spill] sm:$0xff] }
 0x35c   :  { %v5784_v49 = vpop.permute.xlu0 %2195  ;;  %1871 = vrot.lane.b32.xlu2 %v3847_v44, %s3686_s30  ;;  %v5814_v47 = vperm.slane %v893_v57, 0  ;;  %v892_v59 = vperm.slane %v8655_v7, 4  ;;  %v781_v43 = vsel %vm773_vm1, %v748_v4, 0.0  ;;  %v782_v8 = vsel %vm774_vm13, %v760_v52, 0.0  ;;  %v8671_v50 = vld [vmem:[#allocation98_spill] sm:$0xff]  ;;  %v8784_v37 = vld [vmem:[#allocation191_spill] sm:$0xff] }
 0x35d   :  { %8658 = vst [vmem:[#allocation24_spill] sm:$0xff] %v5784_v49  ;;  %2113 = vrot.lane.b32.xlu1 %v3915_v2, %s3690_s6  ;;  %v817_v28 = vmul.f32 %v8668_v62, %v785_v58  ;;  %v750_v49 = vsel %vm746_vm9, %v8669_v13, %v8666_v53  ;;  %v809_v57 = vmul.f32 %v8670_v48, %v777_v27  ;;  %v778_v58 = vsel %vm774_vm13, %v759_v29, 0.0  ;;  %v8679_v29 = vld [vmem:[#allocation47_spill] sm:$0xff] }
 0x35e   :  { %v5806_v12 = vpop.permute.xlu2 %1631  ;;  %3509 = vset.pattern.permute.xlu1 %v8566_v3  ;;  %v818_v3 = vmul.f32 %v8668_v62, %v786_v56  ;;  %v813_v22 = vmul.f32 %v8671_v50, %v781_v43  ;;  %v814_v7 = vmul.f32 %v8671_v50, %v782_v8  ;;  %v704_v20 = vadd.f32 %v688_v9, %v5699_v5  ;;  %v8675_v9 = vld [vmem:[#allocation110_spill] sm:$0xff] }
 0x35f   :  { %8664 = vst [vmem:[#allocation40_spill] sm:$0xff] %v5806_v12  ;;  %v5817_v23 = vpop.permute.xlu1 %1629  ;;  %v705_v4 = vadd.f32 %v689_v17, %v5701_v54  ;;  %v712_v52 = vadd.f32 %v696_v60, %v587_v6  ;;  %v790_v56 = vsel %vm774_vm13, %v762_v25, 0.0  ;;  %v810_v62 = vmul.f32 %v8670_v48, %v778_v58  ;;  %v8676_v17 = vld [vmem:[#allocation109_spill] sm:$0xff]  ;;  %v8682_v43 = vld [vmem:[#allocation106_spill] sm:$0xff]  ;;  %v8685_v48 = vld [vmem:[#allocation111_spill] sm:$0xff] }
 0x360   :  { %8667 = vst [vmem:[#allocation39_spill] sm:$0xff] %v5817_v23  ;;  %v713_v23 = vadd.f32 %v697_v36, %v588_v26  ;;  %v896_v35 = vperm.slane %v892_v59, 0  ;;  %v789_v53 = vsel %vm773_vm1, %v750_v49, 0.0  ;;  %v833_v27 = vadd.f32 %v817_v28, %v708_v10  ;;  %v8683_v28 = vld [vmem:[#allocation105_spill] sm:$0xff]  ;;  %v8688_v58 = vld [vmem:[#allocation103_spill] sm:$0xff] }
 0x361   :  { %v834_v13 = vadd.f32 %v818_v3, %v709_v1  ;;  %vm901_vm9 = vcmp.eq.s32.totalorder %v5814_v47, 1  ;;  %v825_v50 = vadd.f32 %v809_v57, %v700_v15  ;;  %v829_v5 = vadd.f32 %v813_v22, %v704_v20  ;;  %v8677_v22 = vld [vmem:[#allocation102_spill] sm:$0xff]  ;;  %v8680_v1 = vld [vmem:[#allocation104_spill] sm:$0xff]  ;;  %v8686_v57 = vld [vmem:[#allocation101_spill] sm:$0xff] }
 0x362   :  { %v830_v54 = vadd.f32 %v814_v7, %v705_v4  ;;  %vm166_vm12 = vcmp.ge.s32.totalorder %v5842_v38, 2  ;;  %v821_v26 = vmul.f32 %v8674_v55, %v789_v53  ;;  %v874_v20 = vsel %vm871_vm3, %v8676_v17, %v8675_v9  ;;  %v8684_v3 = vld [vmem:[#allocation108_spill] sm:$0xff] }
 0x363   :  { %v886_v15 = vsel %vm871_vm3, %v8675_v9, %v8677_v22  ;;  %v1018_v10 = vperm.slane %v8638_v39, 6  ;;  %v826_v60 = vadd.f32 %v810_v62, %v701_v33  ;;  %v822_v36 = vmul.f32 %v8674_v55, %v790_v56  ;;  %v8689_v22 = vld [vmem:[#allocation97_spill] sm:$0xff] }
 0x364   :  { %1881 = vrot.lane.b32.xlu2 %v3873_v51, %s3686_s30  ;;  %v884_v25 = vsel %vm871_vm3, %v8680_v1, %v8679_v29  ;;  %vm900_vm14 = vcmp.eq.s32.totalorder %v896_v35, 1  ;;  %v872_v8 = vsel %vm871_vm3, %v8682_v43, %v8680_v1  ;;  %v875_v33 = vsel %vm871_vm3, %v8684_v3, %v8683_v28 }
 0x365   :  { %v5845_v6 = vpop.permute.xlu0 %2068  ;;  %2135 = vrot.lane.b32.xlu1 %v8411_v61, %s3690_s6  ;;  %v873_v7 = vsel %vm871_vm3, %v8686_v57, %v8685_v48  ;;  %v5883_v4 = vsel %vm166_vm12, 1, %v8453_v18  ;;  %v885_v56 = vsel %vm871_vm3, %v8685_v48, %v8688_v58  ;;  %v912_v62 = vsel %vm900_vm14, %v874_v20, 0.0  ;;  %v8691_v48 = vld [vmem:[#allocation112_spill] sm:$0xff]  ;;  %v5920_v58 = vld [vmem:[%s7926_s3 + $0x8] sm:$0xff] }
 0x366   :  { %8673 = vst [vmem:[#allocation36_spill] sm:$0xff] %v5845_v6  ;;  %v5859_v49 = vpop.permute.xlu2 %1859  ;;  %v913_v53 = vsel %vm901_vm9, %v886_v15, 0.0  ;;  %v1017_v55 = vperm.slane %v8638_v39, 4  ;;  %v837_v9 = vadd.f32 %v821_v26, %v712_v52  ;;  %v905_v17 = vsel %vm901_vm9, %v884_v25, 0.0  ;;  %v8690_v52 = vld [vmem:[#allocation107_spill] sm:$0xff] }
 0x367   :  { %8678 = vst [vmem:[#allocation37_spill] sm:$0xff] %v5859_v49  ;;  %v5866_v59 = vpop.permute.xlu1 %1820  ;;  %v887_v29 = vsel %vm871_vm3, %v8683_v28, %v8689_v22  ;;  %v5899_v1 = vperm.slane %v1018_v10, 0  ;;  %v904_v43 = vsel %vm900_vm14, %v872_v8, 0.0  ;;  %v916_v20 = vsel %vm900_vm14, %v875_v33, 0.0  ;;  %v8692_v10 = vld [vmem:[#allocation113_spill] sm:$0xff] }
 0x368   :  { %8681 = vst [vmem:[#allocation46_spill] sm:$0xff] %v5866_v59  ;;  %v908_v3 = vsel %vm900_vm14, %v873_v7, 0.0  ;;  %v3343_v15 = vrot.slane %v5883_v4, 9  ;;  %v909_v39 = vsel %vm901_vm9, %v885_v56, 0.0  ;;  %v944_v26 = vmul.f32 %v8690_v52, %v912_v62  ;;  %v8743_v59 = vld [vmem:[#allocation156_spill] sm:$0xff] }
 0x369   :  { %8687 = vst [vmem:[#allocation44_spill] sm:$0xff] %v5883_v4  ;;  %v945_v25 = vmul.f32 %v8690_v52, %v913_v53  ;;  %v940_v57 = vmul.f32 %v8691_v48, %v908_v3  ;;  %v936_v8 = vmul.f32 %v8692_v10, %v904_v43  ;;  %v937_v28 = vmul.f32 %v8692_v10, %v905_v17  ;;  %v8695_v53 = vld [vmem:[#allocation116_spill] sm:$0xff]  ;;  %v8697_v43 = vld [vmem:[#allocation125_spill] sm:$0xff]  ;;  %v8699_v52 = vld [vmem:[#allocation118_spill] sm:$0xff] }
 0x36a   :  { %v941_v35 = vmul.f32 %v8691_v48, %v909_v39  ;;  %v1021_v33 = vperm.slane %v1017_v55, 0  ;;  %8694 = vst [vmem:[#allocation59_spill] sm:$0xff] %v5920_v58  ;;  %v838_v56 = vadd.f32 %v822_v36, %v713_v23  ;;  %v917_v62 = vsel %vm901_vm9, %v887_v29, 0.0  ;;  %v8698_v3 = vld [vmem:[#allocation124_spill] sm:$0xff] }
 0x36b   :  { %v948_v22 = vmul.f32 %v8695_v53, %v916_v20  ;;  %vm1026_vm3 = vcmp.eq.s32.totalorder %v5899_v1, 1  ;;  %v949_v55 = vmul.f32 %v8695_v53, %v917_v62  ;;  %v1001_v39 = vsel %vm998_vm4, %v8698_v3, %v8697_v43 }
 0x36c   :  { %2111 = vrot.lane.b32.xlu2 %v8421_v34, %s3690_s6  ;;  %v1013_v23 = vsel %vm998_vm4, %v8697_v43, %v8699_v52  ;;  %vm5938_vm15 = vcmp.ne.s32.totalorder %v3343_v15, 0  ;;  %v960_v29 = vadd.f32 %v944_v26, %v833_v27  ;;  %v961_v20 = vadd.f32 %v945_v25, %v834_v13  ;;  %v8707_v26 = vld [vmem:[#allocation119_spill] sm:$0xff] }
 0x36d   :  { %v5915_v7 = vpop.permute.xlu0 %2064  ;;  %1939 = vperm.xlu1 %3509, %v5920_v58   ;;  %v956_v48 = vadd.f32 %v940_v57, %v829_v5  ;;  %v1145_v10 = vperm.slane %v5026_v19, 6  ;;  %v952_v62 = vadd.f32 %v936_v8, %v825_v50  ;;  %v953_v53 = vadd.f32 %v937_v28, %v826_v60  ;;  %v8703_v58 = vld [vmem:[#allocation114_spill] sm:$0xff]  ;;  %vm1271_vm10 = vmand %vm166_vm12, %vm5938_vm15  ;;  %v8704_v50 = vld [vmem:[#allocation115_spill] sm:$0xff] }
 0x36e   :  { %8693 = vst [vmem:[#allocation49_spill] sm:$0xff] %v5915_v7  ;;  %v5927_v17 = vpop.permute.xlu2 %1875  ;;  %v957_v61 = vadd.f32 %v941_v35, %v830_v54  ;;  %vm1025_vm6 = vcmp.eq.s32.totalorder %v1021_v33, 1  ;;  %v5945_v3 = vadd.f32 %v948_v22, %v837_v9  ;;  %v8702_v7 = vld [vmem:[#allocation126_spill] sm:$0xff]  ;;  %v1038_v27 = vsel %vm1026_vm3, %v1013_v23, 0.0  ;;  %v8705_v5 = vld [vmem:[#allocation117_spill] sm:$0xff]  ;;  %v8706_v60 = vld [vmem:[#allocation120_spill] sm:$0xff] }
 0x36f   :  { %8696 = vst [vmem:[#allocation20_spill] sm:$0xff] %v5927_v17  ;;  %v5942_v36 = vpop.permute.xlu1 %1861  ;;  %v1000_v15 = vsel %vm998_vm4, %v8703_v58, %v8702_v7  ;;  %v1037_v43 = vsel %vm1025_vm6, %v1001_v39, 0.0  ;;  %v965_v13 = vadd.f32 %v949_v55, %v838_v56  ;;  %v1011_v54 = vsel %vm998_vm4, %v8705_v5, %v8704_v50  ;;  %v8708_v57 = vld [vmem:[#allocation122_spill] sm:$0xff]  ;;  %v8709_v58 = vld [vmem:[#allocation121_spill] sm:$0xff] }
 0x370   :  { %v1014_v9 = vsel %vm998_vm4, %v8706_v60, %v4836_v30  ;;  %v1012_v25 = vsel %vm998_vm4, %v8702_v7, %v8707_v26  ;;  %v999_v8 = vsel %vm998_vm4, %v8708_v57, %v8705_v5  ;;  %v5974_v28 = vperm.slane %v1145_v10, 0 }
 0x371   :  { %v1144_v35 = vperm.slane %v5026_v19, 4  ;;  %vm8319_vm11 = vcmp.lt.s32.totalorder %v4143_v21, 98  ;;  %v1033_v30 = vsel %vm1025_vm6, %v1000_v15, 0.0  ;;  %v1069_v56 = vmul.f32 %v8709_v58, %v1037_v43 }
 0x372   :  { %v1070_v7 = vmul.f32 %v8709_v58, %v1038_v27  ;;  %v5984_v22 = vsel %vm1271_vm10, 1, %v8453_v18  ;;  %v1030_v19 = vsel %vm1026_vm3, %v1011_v54, 0.0  ;;  %v1002_v39 = vsel %vm998_vm4, %v4944_v31, %v8706_v60  ;;  %v8715_v58 = vld [vmem:[#allocation57_spill] sm:$0xff] }
 0x373   :  { %8710 = vst [vmem:[#allocation42_spill] sm:$0xff] %v5984_v22  ;;  %v1034_v52 = vsel %vm1026_vm3, %v1012_v25, 0.0  ;;  %v1065_v23 = vmul.f32 %v4989_v46, %v1033_v30  ;;  %v8712_v15 = vmov 16   ;;  %v1029_v43 = vsel %vm1025_vm6, %v999_v8, 0.0 }
 0x374   :  { %2127 = vrot.lane.b32.xlu2 %v8422_v14, %s3690_s6  ;;  %v1066_v27 = vmul.f32 %v4989_v46, %v1034_v52  ;;  %vm8249_vm2 = vcmp.lt.s32.totalorder %v5842_v38, 14  ;;  %v1042_v5 = vsel %vm1026_vm3, %v1014_v9, 0.0  ;;  %v1061_v54 = vmul.f32 %v4995_v0, %v1029_v43  ;;  %v8719_v52 = vld [vmem:[#allocation136_spill] sm:$0xff] }
 0x375   :  { %v5986_v55 = vpop.permute.xlu0 %2131  ;;  %1984 = vrot.lane.b32.xlu1 %v3849_v45, %s3688_s5  ;;  %v1148_v60 = vperm.slane %v1144_v35, 0  ;;  %v1275_v26 = vperm.slane %v5984_v22, 4  ;;  %v1041_v46 = vsel %vm1025_vm6, %v1002_v39, 0.0  ;;  %v6018_v25 = vadd.f32 %v1069_v56, %v960_v29  ;;  %v8716_v56 = vld [vmem:[#allocation123_spill] sm:$0xff]  ;;  %vm1904_vm3 = vmand %vm8249_vm2, %vm5938_vm15 }
 0x376   :  { %8711 = vst [vmem:[#allocation41_spill] sm:$0xff] %v5986_v55  ;;  %v5999_v10 = vpop.permute.xlu2 %1885  ;;  %3512 = vset.pattern.permute.xlu1 %v8712_v15  ;;  %v6020_v57 = vadd.f32 %v1070_v7, %v961_v20  ;;  %vm1153_vm4 = vcmp.eq.s32.totalorder %v5974_v28, 1  ;;  %v1062_v8 = vmul.f32 %v4995_v0, %v1030_v19  ;;  %v6024_v30 = vadd.f32 %v1065_v23, %v956_v48  ;;  %v8714_v20 = vld [vmem:[#allocation128_spill] sm:$0xff]  ;;  %v8717_v7 = vld [vmem:[#allocation129_spill] sm:$0xff]  ;;  %v8734_v55 = vld [vmem:[#allocation130_spill] sm:$0xff] }
 0x377   :  { %v6005_v50 = vpop.permute.xlu1 %1883  ;;  %v6011_v31 = vsel %vm8319_vm11, %v5999_v10, %v5942_v36  ;;  %v1276_v1 = vperm.slane %v5984_v22, 6  ;;  %v6030_v9 = vsel %vm8249_vm2, 1, %v8453_v18  ;;  %v6032_v35 = vadd.f32 %v1066_v27, %v957_v61  ;;  %v8718_v61 = vld [vmem:[#allocation134_spill] sm:$0xff] }
 0x378   :  { %8713 = vst [vmem:[#allocation26_spill] sm:$0xff] %v6030_v9  ;;  %v1073_v33 = vmul.f32 %v5040_v40, %v1041_v46  ;;  %v1074_v29 = vmul.f32 %v5040_v40, %v1042_v5  ;;  %v1136_v0 = vsel %vm1123_vm5, %v8715_v58, %v8714_v20  ;;  %v6040_v48 = vadd.f32 %v1061_v54, %v952_v62 }
 0x379   :  { %v1139_v19 = vsel %vm1123_vm5, %v8717_v7, %v8716_v56  ;;  %vm1152_vm7 = vcmp.eq.s32.totalorder %v1148_v60, 1  ;;  %v6046_v39 = vperm.slane %v1275_v26, 0  ;;  %v1124_v40 = vsel %vm1123_vm5, %v8718_v61, %v8715_v58 }
 0x37a   :  { %v1127_v62 = vsel %vm1123_vm5, %v8719_v52, %v8717_v7  ;;  %vm8255_vm8 = vcmp.lt.s32.totalorder %v4143_v21, 34  ;;  %v3344_v23 = vrot.slane %v6030_v9, 9  ;;  %v1078_v27 = vadd.f32 %v1062_v8, %v953_v53 }
 0x37b   :  { %v1157_v5 = vsel %vm1153_vm4, %v1136_v0, 0.0  ;;  %v6066_v54 = vperm.slane %v1276_v1, 0  ;;  %v1400_v26 = vperm.slane %v5883_v4, 4  ;;  %v1089_v20 = vadd.f32 %v1073_v33, %v5945_v3  ;;  %v8723_v1 = vld [vmem:[#allocation150_spill] sm:$0xff]  ;;  %v8724_v0 = vld [vmem:[#allocation132_spill] sm:$0xff] }
 0x37c   :  { %2137 = vrot.lane.b32.xlu2 %v3951_v16, %s3690_s6  ;;  %v1090_v58 = vadd.f32 %v1074_v29, %v965_v13  ;;  %v1169_v56 = vsel %vm1153_vm4, %v1139_v19, 0.0  ;;  %v1401_v7 = vperm.slane %v5883_v4, 6  ;;  %v1156_v53 = vsel %vm1152_vm7, %v1124_v40, 0.0  ;;  %v8725_v3 = vld [vmem:[#allocation140_spill] sm:$0xff]  ;;  %v8726_v13 = vld [vmem:[#allocation127_spill] sm:$0xff]  ;;  %v8729_v16 = vld [vmem:[#allocation137_spill] sm:$0xff] }
 0x37d   :  { %v6060_v43 = vpop.permute.xlu0 %1355  ;;  %2006 = vrot.lane.b32.xlu1 %v8412_v41, %s3688_s5  ;;  %v1168_v8 = vsel %vm1152_vm7, %v1127_v62, 0.0  ;;  %vm8256_vm13 = vcmp.eq.s32.totalorder %v6046_v39, 1  ;;  %v1257_v52 = vsel %vm8255_vm8, %v8724_v0, %v8723_v1  ;;  %v1125_v33 = vsel %vm1123_vm5, %v8726_v13, %v8725_v3  ;;  %v8727_v29 = vld [vmem:[#allocation131_spill] sm:$0xff]  ;;  %v8733_v41 = vld [vmem:[#allocation138_spill] sm:$0xff] }
 0x37e   :  { %8720 = vst [vmem:[#allocation62_spill] sm:$0xff] %v6060_v43  ;;  %v6069_v46 = vpop.permute.xlu2 %1730  ;;  %v1137_v19 = vsel %vm1123_vm5, %v8725_v3, %v8727_v29  ;;  %v8728_v40 = vld [vmem:[#allocation139_spill] sm:$0xff]  ;;  %vm6096_vm1 = vcmp.ne.s32.totalorder %v3344_v23, 0  ;;  %v8730_v14 = vmov 0  ;;  %v1188_v43 = vmul.f32 %v8733_v41, %v1156_v53 }
 0x37f   :  { %8721 = vst [vmem:[#allocation51_spill] sm:$0xff] %v6069_v46  ;;  %v6075_v61 = vpop.permute.xlu1 %1687  ;;  %v1126_v62 = vsel %vm1123_vm5, %v8729_v16, %v8728_v40  ;;  %v8731_v14 = vsel %vm6096_vm1, 4294967295, %v8730_v14  ;;  %v1138_v13 = vsel %vm1123_vm5, %v8728_v40, %v8734_v55  ;;  %vm1284_vm9 = vcmp.eq.s32.totalorder %v6066_v54, 1  ;;  %v8735_v40 = vld [vmem:[#allocation155_spill] sm:$0xff]  ;;  %vm6126_vm5 = vmand %vm166_vm12, %vm6096_vm1 }
 0x380   :  { %8722 = vst [vmem:[#allocation28_spill] sm:$0xff] %v6075_v61  ;;  %v6106_v0 = vperm.slane %v1400_v26, 0  ;;  %v1189_v3 = vmul.f32 %v8733_v41, %v1157_v5  ;;  %v1295_v16 = vsel %vm8256_vm13, %v1257_v52, 0.0  ;;  %vm1381_vm14 = vcmp.lt.s32.totalorder %v4143_v21, 32  ;;  %v8738_v5 = vld [vmem:[#allocation145_spill] sm:$0xff]  ;;  %v8739_v52 = vld [vmem:[#allocation143_spill] sm:$0xff] }
 0x381   :  { %8732 = vst [vmem:[#allocation63_spill] sm:$0xff] %v8731_v14  ;;  %v6112_v23 = vperm.slane %v1401_v7, 0  ;;  %v1160_v53 = vsel %vm1152_vm7, %v1125_v33, 0.0  ;;  %v1161_v29 = vsel %vm1153_vm4, %v1137_v19, 0.0  ;;  %v1164_v55 = vsel %vm1152_vm7, %v1126_v62, 0.0  ;;  %v8742_v14 = vld [vmem:[#allocation159_spill] sm:$0xff] }
 0x382   :  { %v1253_v26 = vsel %vm8255_vm8, %v8723_v1, %v8735_v40  ;;  %v1165_v60 = vsel %vm1153_vm4, %v1138_v13, 0.0  ;;  %v1196_v7 = vmul.f32 %v8738_v5, %v1164_v55  ;;  %v1200_v33 = vmul.f32 %v8739_v52, %v1168_v8  ;;  %v8741_v40 = vld [vmem:[#allocation144_spill] sm:$0xff]  ;;  %v8745_v8 = vld [vmem:[#allocation163_spill] sm:$0xff]  ;;  %v8748_v55 = vld [vmem:[#allocation133_spill] sm:$0xff] }
 0x383   :  { %v1201_v1 = vmul.f32 %v8739_v52, %v1169_v56  ;;  %v1197_v62 = vmul.f32 %v8738_v5, %v1165_v60  ;;  %v1327_v22 = vmul.f32 %v8741_v40, %v1295_v16  ;;  %vm1408_vm12 = vcmp.eq.s32.totalorder %v6106_v0, 1  ;;  %v8749_v60 = vld [vmem:[#allocation152_spill] sm:$0xff] }
 0x384   :  { %1982 = vrot.lane.b32.xlu2 %v8417_v24, %s3688_s5  ;;  %v1388_v28 = vsel %vm1381_vm14, %v8743_v59, %v8742_v14  ;;  %vm1409_vm6 = vcmp.eq.s32.totalorder %v6112_v23, 1  ;;  %v1384_v13 = vsel %vm1381_vm14, %v8742_v14, %v8745_v8  ;;  %v6163_v16 = vsel %vm6126_vm5, 1, %v8453_v18 }
 0x385   :  { %v6137_v19 = vpop.permute.xlu0 %1218  ;;  %2199 = vperm.xlu1 %3512, %v5738_v63   ;;  %v1296_v63 = vsel %vm1284_vm9, %v1253_v26, 0.0  ;;  %8746 = vst [vmem:[#allocation52_spill] sm:$0xff] %v6163_v16  ;;  %v1258_v5 = vsel %vm8255_vm8, %v8749_v60, %v8748_v55  ;;  %v8750_v26 = vld [vmem:[#allocation153_spill] sm:$0xff]  ;;  %v6176_v59 = vadd.f32 %v1188_v43, %v6040_v48  ;;  %v6178_v14 = vadd.f32 %v1189_v3, %v1078_v27 }
 0x386   :  { %8740 = vst [vmem:[#allocation60_spill] sm:$0xff] %v6137_v19  ;;  %v6151_v56 = vpop.permute.xlu2 %1746  ;;  %v1254_v52 = vsel %vm8255_vm8, %v8748_v55, %v8750_v26  ;;  %v6180_v41 = vadd.f32 %v1200_v33, %v1089_v20  ;;  %v1212_v8 = vadd.f32 %v1196_v7, %v6018_v25  ;;  %v1420_v19 = vsel %vm1408_vm12, %v1388_v28, 0.0  ;;  %v8755_v7 = vld [vmem:[#allocation135_spill] sm:$0xff]  ;;  %v8756_v33 = vld [vmem:[#allocation160_spill] sm:$0xff] }
 0x387   :  { %8744 = vst [vmem:[#allocation65_spill] sm:$0xff] %v6151_v56  ;;  %v6165_v47 = vpop.permute.xlu1 %1732  ;;  %v6186_v38 = vsel %vm1904_vm3, 1, %v8453_v18  ;;  %v6188_v60 = vadd.f32 %v1201_v1, %v1090_v58  ;;  %v1328_v46 = vmul.f32 %v8741_v40, %v1296_v63  ;;  %v1421_v48 = vsel %vm1409_vm6, %v1384_v13, 0.0  ;;  %v8757_v1 = vld [vmem:[#allocation161_spill] sm:$0xff]  ;;  %v8776_v56 = vld [vmem:[#allocation194_spill] sm:$0xff] }
 0x388   :  { %8747 = vst [vmem:[#allocation48_spill] sm:$0xff] %v6165_v47  ;;  %v1531_v43 = vperm.slane %v6163_v16, 4  ;;  %v1299_v27 = vsel %vm8256_vm13, %v1258_v5, 0.0  ;;  %v1343_v20 = vadd.f32 %v1327_v22, %v1212_v8  ;;  %v1213_v25 = vadd.f32 %v1197_v62, %v6020_v57  ;;  %v8758_v57 = vld [vmem:[#allocation166_spill] sm:$0xff] }
 0x389   :  { %8751 = vst [vmem:[#allocation22_spill] sm:$0xff] %v6176_v59  ;;  %v1300_v3 = vsel %vm1284_vm9, %v1254_v52, 0.0  ;;  %v1389_v58 = vsel %vm1381_vm14, %v8756_v33, %v8755_v7  ;;  %v1452_v28 = vmul.f32 %v8757_v1, %v1420_v19  ;;  %v1908_v63 = vperm.slane %v6186_v38, 4 }
 0x38a   :  { %8752 = vst [vmem:[#allocation67_spill] sm:$0xff] %v6178_v14  ;;  %v1909_v13 = vperm.slane %v6186_v38, 6  ;;  %v1453_v22 = vmul.f32 %v8757_v1, %v1421_v48  ;;  %v1192_v62 = vmul.f32 %v8758_v57, %v1160_v53  ;;  %v1193_v8 = vmul.f32 %v8758_v57, %v1161_v29  ;;  %v8760_v48 = vld [vmem:[#allocation158_spill] sm:$0xff] }
 0x38b   :  { %8753 = vst [vmem:[#allocation55_spill] sm:$0xff] %v6180_v41  ;;  %v1532_v55 = vperm.slane %v6163_v16, 6  ;;  %v1344_v19 = vadd.f32 %v1328_v46, %v1213_v25  ;;  %v6216_v52 = vperm.slane %v1531_v43, 0  ;;  %v1656_v33 = vperm.slane %v5883_v4, 5  ;;  %v8764_v25 = vld [vmem:[#allocation162_spill] sm:$0xff] }
 0x38c   :  { %8754 = vst [vmem:[#allocation27_spill] sm:$0xff] %v6188_v60  ;;  %1998 = vrot.lane.b32.xlu2 %v3847_v44, %s3688_s5  ;;  %v1657_v26 = vperm.slane %v5883_v4, 7  ;;  %v6223_v53 = vmul.f32 %v8760_v48, %v1299_v27  ;;  %v6226_v29 = vmul.f32 %v8760_v48, %v1300_v3  ;;  %v6230_v57 = vsel %vm1408_vm12, %v1389_v58, 0.0  ;;  %v8773_v48 = vld [vmem:[#allocation183_spill] sm:$0xff] }
 0x38d   :  { %v6212_v5 = vpop.permute.xlu0 %1480  ;;  %1224 = vrot.lane.b32.xlu1 %v3915_v2, %s3677_s21  ;;  %vm1506_vm15 = vcmp.lt.s32.totalorder %v4143_v21, 30  ;;  %v1468_v43 = vadd.f32 %v1452_v28, %v1343_v20  ;;  %v6239_v1 = vsel %vm1381_vm14, %v8755_v7, %v8764_v25  ;;  %v6241_v27 = vperm.slane %v1908_v63, 0  ;;  %v8765_v20 = vld [vmem:[#allocation179_spill] sm:$0xff]  ;;  %v8766_v28 = vld [vmem:[#allocation176_spill] sm:$0xff]  ;;  %v8772_v25 = vld [vmem:[#allocation173_spill] sm:$0xff] }
 0x38e   :  { %8759 = vst [vmem:[#allocation66_spill] sm:$0xff] %v6212_v5  ;;  %v6220_v40 = vpop.permute.xlu2 %1756  ;;  %v6243_v5 = vperm.slane %v1909_v13, 0  ;;  %v6245_v3 = vadd.f32 %v1453_v22, %v1344_v19  ;;  %v6248_v58 = vadd.f32 %v1192_v62, %v6024_v30  ;;  %v6251_v16 = vadd.f32 %v1193_v8, %v6032_v35  ;;  %v8767_v22 = vld [vmem:[#allocation170_spill] sm:$0xff]  ;;  %v8768_v19 = vld [vmem:[#allocation165_spill] sm:$0xff]  ;;  %v8769_v8 = vld [vmem:[#allocation151_spill] sm:$0xff] }
 0x38f   :  { %8761 = vst [vmem:[#allocation64_spill] sm:$0xff] %v6223_v53  ;;  %v6233_v46 = vpop.permute.xlu1 %1754  ;;  %v6253_v4 = vperm.slane %v1532_v55, 0  ;;  %vm8270_vm10 = vcmp.eq.s32.totalorder %v6216_v52, 1  ;;  %v1513_v7 = vsel %vm1506_vm15, %v8766_v28, %v8765_v20  ;;  %v6260_v63 = vperm.slane %v1656_v33, 1  ;;  %v8770_v55 = vld [vmem:[#allocation171_spill] sm:$0xff] }
 0x390   :  { %8762 = vst [vmem:[#allocation70_spill] sm:$0xff] %v6226_v29  ;;  %v6262_v13 = vperm.slane %v1657_v26, 1  ;;  %v6268_v30 = vsel %vm8255_vm8, %v8768_v19, %v8767_v22  ;;  %vm8253_vm4 = vcmp.lt.s32.totalorder %v4143_v21, 2  ;;  %v1781_v35 = vperm.slane %v6030_v9, 5  ;;  %v8771_v26 = vld [vmem:[#allocation193_spill] sm:$0xff]  ;;  %v8788_v29 = vld [vmem:[#allocation187_spill] sm:$0xff] }
 0x391   :  { %8763 = vst [vmem:[#allocation69_spill] sm:$0xff] %v6233_v46  ;;  %v1782_v62 = vperm.slane %v6030_v9, 7  ;;  %v1256_v33 = vsel %vm8255_vm8, %v8770_v55, %v8769_v8  ;;  %vm8267_vm7 = vcmp.eq.s32.totalorder %v6241_v27, 1  ;;  %vm8268_vm5 = vcmp.eq.s32.totalorder %v6243_v5, 1 }
 0x392   :  { %v1891_v28 = vsel %vm8319_vm11, %v8771_v26, %v5999_v10  ;;  %v1252_v19 = vsel %vm8255_vm8, %v8769_v8, %v8772_v25  ;;  %v1551_v55 = vsel %vm8270_vm10, %v1513_v7, 0.0  ;;  %vm8269_vm3 = vcmp.eq.s32.totalorder %v6253_v4, 1  ;;  %v8775_v10 = vld [vmem:[#allocation197_spill] sm:$0xff]  ;;  %v8819_v23 = vld [vmem:[#allocation55_spill] sm:$0xff] }
 0x393   :  { %v1509_v18 = vsel %vm1506_vm15, %v8765_v20, %v8773_v48  ;;  %vm1664_vm0 = vcmp.eq.s32.totalorder %v6260_v63, 1  ;;  %v1644_v8 = vsel %vm8253_vm4, %v8776_v56, %v8775_v10  ;;  %vm1665_vm2 = vcmp.eq.s32.totalorder %v6262_v13, 1  ;;  %v8777_v7 = vld [vmem:[#allocation201_spill] sm:$0xff] }
 0x394   :  { %2008 = vrot.lane.b32.xlu2 %v3873_v51, %s3688_s5  ;;  %v1640_v25 = vsel %vm8253_vm4, %v8775_v10, %v8777_v7  ;;  %v6312_v48 = vperm.slane %v1781_v35, 1  ;;  %v1933_v56 = vsel %vm8268_vm5, %v6011_v31, 0.0  ;;  %v1291_v14 = vsel %vm8256_vm13, %v1256_v33, 0.0  ;;  %v8781_v31 = vld [vmem:[#allocation175_spill] sm:$0xff] }
 0x395   :  { %v6296_v2 = vpop.permute.xlu0 %1609  ;;  %2107 = vrot.lane.b32.xlu1 %v8417_v24, %s3690_s6  ;;  %v1932_v24 = vsel %vm8267_vm7, %v1891_v28, 0.0  ;;  %vm1762_vm4 = vcmp.lt.s32.totalorder %v4143_v21, 126  ;;  %v1583_v7 = vmul.f32 %v8781_v31, %v1551_v55  ;;  %v1552_v59 = vsel %vm8269_vm3, %v1509_v18, 0.0  ;;  %v8785_v18 = vld [vmem:[#allocation61_spill] sm:$0xff] }
 0x396   :  { %8774 = vst [vmem:[#allocation68_spill] sm:$0xff] %v6296_v2  ;;  %v6310_v20 = vpop.permute.xlu2 %1986  ;;  %v6314_v2 = vperm.slane %v1782_v62, 1  ;;  %v8780_v62 = vld [vmem:[#allocation174_spill] sm:$0xff]  ;;  %v1676_v33 = vsel %vm1664_vm0, %v1644_v8, 0.0  ;;  %v1677_v55 = vsel %vm1665_vm2, %v1640_v25, 0.0  ;;  %v8786_v8 = vld [vmem:[#allocation29_spill] sm:$0xff] }
 0x397   :  { %v6321_v46 = vpop.permute.xlu1 %1947  ;;  %v6336_v28 = vsel %vm8255_vm8, %v8767_v22, %v8780_v62  ;;  %vm1789_vm8 = vcmp.eq.s32.totalorder %v6312_v48, 1  ;;  %v1584_v62 = vmul.f32 %v8781_v31, %v1552_v59  ;;  %v1708_v60 = vmul.f32 %v8788_v29, %v1676_v33  ;;  %v8790_v33 = vld [vmem:[#allocation204_spill] sm:$0xff] }
 0x398   :  { %v6327_v10 = vmul.f32 %v6321_v46, %v1932_v24  ;;  %v6330_v35 = vmul.f32 %v6321_v46, %v1933_v56  ;;  %v1292_v24 = vsel %vm1284_vm9, %v1252_v19, 0.0  ;;  %v8783_v56 = vld [vmem:[#allocation189_spill] sm:$0xff]  ;;  %vm1790_vm13 = vcmp.eq.s32.totalorder %v6314_v2, 1 }
 0x399   :  { %v1765_v19 = vsel %vm1762_vm4, %v8785_v18, %v5630_v32  ;;  %v1599_v53 = vadd.f32 %v1583_v7, %v1468_v43  ;;  %v2033_v7 = vperm.slane %v6030_v9, 4 }
 0x39a   :  { %8778 = vst [vmem:[#allocation45_spill] sm:$0xff] %v6327_v10  ;;  %v8782_v10 = vld [vmem:[#allocation164_spill] sm:$0xff]  ;;  %v1801_v59 = vsel %vm1789_vm8, %v1765_v19, 0.0 }
 0x39b   :  { %8779 = vst [vmem:[#allocation73_spill] sm:$0xff] %v6330_v35  ;;  %v1387_v35 = vsel %vm1381_vm14, %v8783_v56, %v8782_v10  ;;  %v1383_v22 = vsel %vm1381_vm14, %v8782_v10, %v8784_v37  ;;  %v1777_v56 = vsel %vm1762_vm4, %v5630_v32, %v8786_v8  ;;  %v8787_v10 = vld [vmem:[#allocation186_spill] sm:$0xff]  ;;  %v1709_v32 = vmul.f32 %v8788_v29, %v1677_v55 }
 0x39c   :  { %v1323_v37 = vmul.f32 %v8787_v10, %v1291_v14  ;;  %v1324_v25 = vmul.f32 %v8787_v10, %v1292_v24  ;;  %1222 = vrot.lane.b32.xlu2 %v8421_v34, %s3677_s21  ;;  %v1416_v18 = vsel %vm1408_vm12, %v1387_v35, 0.0  ;;  %v1417_v41 = vsel %vm1409_vm6, %v1383_v22, 0.0 }
 0x39d   :  { %v6376_v8 = vpop.permute.xlu0 %1476  ;;  %2123 = vrot.lane.b32.xlu1 %v3847_v44, %s3690_s6  ;;  %v1802_v14 = vsel %vm1790_vm13, %v1777_v56, 0.0  ;;  %v2034_v35 = vperm.slane %v6030_v9, 6  ;;  %v1448_v24 = vmul.f32 %v8790_v33, %v1416_v18  ;;  %v1449_v22 = vmul.f32 %v8790_v33, %v1417_v41  ;;  %v8792_v41 = vld [vmem:[#allocation178_spill] sm:$0xff]  ;;  %v8793_v33 = vld [vmem:[#allocation207_spill] sm:$0xff] }
 0x39e   :  { %8789 = vst [vmem:[#allocation71_spill] sm:$0xff] %v6376_v8  ;;  %v6384_v43 = vpop.permute.xlu2 %2002  ;;  %v1890_v55 = vsel %vm8319_vm11, %v5927_v17, %v6005_v50  ;;  %v1902_v56 = vsel %vm8319_vm11, %v6005_v50, %v5859_v49  ;;  %v1600_v44 = vadd.f32 %v1584_v62, %v6245_v3  ;;  %v1339_v10 = vadd.f32 %v1323_v37, %v6248_v58  ;;  %v8794_v17 = vld [vmem:[#allocation56_spill] sm:$0xff]  ;;  %v8795_v50 = vld [vmem:[#allocation199_spill] sm:$0xff] }
 0x39f   :  { %v6398_v19 = vpop.permute.xlu1 %1988  ;;  %v1340_v18 = vadd.f32 %v1324_v25, %v6251_v16  ;;  %v1724_v31 = vadd.f32 %v1708_v60, %v1599_v53  ;;  %v1512_v29 = vsel %vm1506_vm15, %v8793_v33, %v8792_v41  ;;  %v1508_v8 = vsel %vm1506_vm15, %v8792_v41, %v8794_v17  ;;  %v8796_v41 = vld [vmem:[#allocation190_spill] sm:$0xff] }
 0x3a0   :  { %8791 = vst [vmem:[#allocation75_spill] sm:$0xff] %v6398_v19  ;;  %v1833_v49 = vmul.f32 %v8795_v50, %v1801_v59  ;;  %v1834_v9 = vmul.f32 %v8795_v50, %v1802_v14  ;;  %v1928_v37 = vsel %vm8267_vm7, %v1890_v55, 0.0  ;;  %v1929_v16 = vsel %vm8268_vm5, %v1902_v56, 0.0  ;;  %v8838_v50 = vld [vmem:[#allocation167_spill] sm:$0xff] }
 0x3a1   :  { %v6417_v60 = vperm.slane %v2033_v7, 0  ;;  %v6419_v53 = vperm.slane %v2034_v35, 0  ;;  %v1725_v3 = vadd.f32 %v1709_v32, %v1600_v44  ;;  %v1464_v58 = vadd.f32 %v1448_v24, %v1339_v10  ;;  %v6433_v7 = vld [vmem:[%s7926_s3] sm:$0xff] }
 0x3a2   :  { %v1465_v62 = vadd.f32 %v1449_v22, %v1340_v18  ;;  %v1906_v25 = vperm.slane %v6186_v38, 0  ;;  %v1547_v59 = vsel %vm8270_vm10, %v1512_v29, 0.0  ;;  %v1548_v14 = vsel %vm8269_vm3, %v1508_v8, 0.0  ;;  %v8799_v8 = vld [vmem:[#allocation210_spill] sm:$0xff] }
 0x3a3   :  { %vm8797_vm7 = vcmp.lt.s32.totalorder %v4143_v21, 2  ;;  %v1907_v44 = vperm.slane %v6186_v38, 2  ;;  %v1960_v10 = vmul.f32 %v8799_v8, %v1928_v37  ;;  %v1961_v32 = vmul.f32 %v8799_v8, %v1929_v16 }
 0x3a4   :  { %v1643_v55 = vsel %vm8797_vm7, %v5758_v11, %v8796_v41  ;;  %2060 = vperm.xlu2 %3513, %v6433_v7   ;;  %vm8798_vm5 = vmmov %vm8797_vm7  ;;  %vm2014_vm7 = vcmp.lt.s32.totalorder %v4143_v21, 96  ;;  %v1849_v24 = vadd.f32 %v1833_v49, %v1724_v31  ;;  %v1850_v22 = vadd.f32 %v1834_v9, %v1725_v3 }
 0x3a5   :  { %v1639_v29 = vsel %vm8798_vm5, %v8796_v41, %v5806_v12  ;;  %v6443_v35 = vpop.permute.xlu0 %1605  ;;  %2133 = vrot.lane.b32.xlu1 %v3873_v51, %s3690_s6  ;;  %vm8276_vm3 = vcmp.eq.s32.totalorder %v6417_v60, 1  ;;  %vm8275_vm10 = vcmp.eq.s32.totalorder %v6419_v53, 1  ;;  %v1579_v56 = vmul.f32 %v5690_v42, %v1547_v59 }
 0x3a6   :  { %8800 = vst [vmem:[#allocation58_spill] sm:$0xff] %v6443_v35  ;;  %v6450_v38 = vpop.permute.xlu2 %2012  ;;  %v1580_v18 = vmul.f32 %v5690_v42, %v1548_v14  ;;  %v1672_v37 = vsel %vm1664_vm0, %v1643_v55, 0.0  ;;  %v6456_v41 = vperm.slane %v1906_v25, 0  ;;  %v1673_v49 = vsel %vm1665_vm2, %v1639_v29, 0.0 }
 0x3a7   :  { %v2011_v16 = vpop.permute.xlu1 %2010  ;;  %v6466_v3 = vperm.slane %v1907_v44, 0  ;;  %v1976_v59 = vadd.f32 %v1960_v10, %v1849_v24  ;;  %v1977_v14 = vadd.f32 %v1961_v32, %v1850_v22  ;;  %v1704_v29 = vmul.f32 %v6075_v61, %v1672_v37  ;;  %v8802_v44 = vld [vmem:[#allocation202_spill] sm:$0xff]  ;;  %v8806_v37 = vld [vmem:[#allocation192_spill] sm:$0xff] }
 0x3a8   :  { %v2017_v9 = vsel %vm2014_vm7, %v6384_v43, %v2011_v16  ;;  %v2029_v31 = vsel %vm2014_vm7, %v2011_v16, %v6310_v20  ;;  %v1705_v51 = vmul.f32 %v6075_v61, %v1673_v49  ;;  %v1595_v11 = vadd.f32 %v1579_v56, %v1464_v58  ;;  %v8804_v56 = vld [vmem:[#allocation188_spill] sm:$0xff] }
 0x3a9   :  { %8801 = vst [vmem:[#allocation77_spill] sm:$0xff] %v6466_v3  ;;  %v2053_v55 = vsel %vm8276_vm3, %v2017_v9, 0.0  ;;  %v2054_v25 = vsel %vm8275_vm10, %v2029_v31, 0.0  ;;  %v1596_v16 = vadd.f32 %v1580_v18, %v1465_v62  ;;  %v1764_v10 = vsel %vm1762_vm4, %v8802_v44, %v6220_v40  ;;  %v8805_v18 = vld [vmem:[#allocation185_spill] sm:$0xff]  ;;  %v8826_v44 = vld [vmem:[#allocation172_spill] sm:$0xff] }
 0x3aa   :  { %v2085_v8 = vmul.f32 %v5845_v6, %v2053_v55  ;;  %v2086_v12 = vmul.f32 %v5845_v6, %v2054_v25  ;;  %vm8318_vm5 = vcmp.eq.s32.totalorder %v6456_v41, 1  ;;  %v1776_v32 = vsel %vm1762_vm4, %v6220_v40, %v6165_v47  ;;  %v8811_v25 = vld [vmem:[#allocation157_spill] sm:$0xff]  ;;  %v8827_v6 = vld [vmem:[#allocation195_spill] sm:$0xff] }
 0x3ab   :  { %vm8308_vm10 = vcmp.eq.s32.totalorder %v6466_v3, 1  ;;  %vm8803_vm3 = vcmp.eq.s32.totalorder %v6046_v39, 1  ;;  %v1288_v22 = vsel %vm1284_vm9, %v6336_v28, 0.0  ;;  %v1386_v40 = vsel %vm1381_vm14, %v8805_v18, %v8804_v56  ;;  %v8842_v18 = vld [vmem:[#allocation65_spill] sm:$0xff] }
 0x3ac   :  { %2109 = vrot.lane.b32.xlu2 %v3849_v45, %s3690_s6  ;;  %v6488_v24 = vadd.f32 %v2085_v8, %v1976_v59  ;;  %v6490_v58 = vadd.f32 %v2086_v12, %v1977_v14  ;;  %v1287_v62 = vsel %vm8803_vm3, %v6268_v30, 0.0  ;;  %v1382_v8 = vsel %vm1381_vm14, %v8804_v56, %v8806_v37  ;;  %v8814_v56 = vld [vmem:[#allocation182_spill] sm:$0xff]  ;;  %v8841_v37 = vld [vmem:[#allocation69_spill] sm:$0xff] }
 0x3ad   :  { %v1870_v12 = vpop.permute.xlu0 %1869  ;;  %2187 = vperm.xlu1 %3512, %v6433_v7   ;;  %3514 = vset.pattern.permute.xlu2 %v8712_v15  ;;  %v1720_v39 = vadd.f32 %v1704_v29, %v1595_v11  ;;  %v1721_v30 = vadd.f32 %v1705_v51, %v1596_v16  ;;  %v1797_v9 = vsel %vm1789_vm8, %v1764_v10, 0.0  ;;  %v1798_v31 = vsel %vm1790_vm13, %v1776_v32, 0.0  ;;  %v8812_v16 = vld [vmem:[#allocation154_spill] sm:$0xff]  ;;  %v8813_v10 = vld [vmem:[#allocation180_spill] sm:$0xff] }
 0x3ae   :  { %v1895_v54 = vsel %vm8319_vm11, %v1870_v12, %v8771_v26  ;;  %v1899_v28 = vsel %vm8319_vm11, %v5942_v36, %v1870_v12  ;;  %v6514_v49 = vpop.permute.xlu2 %1855  ;;  %v1425_v55 = vsel %vm1409_vm6, %v6239_v1, 0.0  ;;  %v1319_v29 = vmul.f32 %v8811_v25, %v1287_v62 }
 0x3af   :  { %8807 = vst [vmem:[#allocation3_spill] sm:$0xff] %v6514_v49  ;;  %v1930_v11 = vsel %vm8318_vm5, %v1899_v28, 0.0  ;;  %v1931_v51 = vsel %vm8308_vm10, %v1895_v54, 0.0  ;;  %v6524_v15 = vpop.permute.xlu1 %1812  ;;  %v1514_v32 = vsel %vm1506_vm15, %v8813_v10, %v8812_v16  ;;  %v1412_v12 = vsel %vm1408_vm12, %v1386_v40, 0.0  ;;  %v8820_v40 = vld [vmem:[#allocation64_spill] sm:$0xff] }
 0x3b0   :  { %8808 = vst [vmem:[#allocation54_spill] sm:$0xff] %v6524_v15  ;;  %v6527_v26 = vmul.f32 %v6321_v46, %v1930_v11  ;;  %v6530_v36 = vmul.f32 %v6321_v46, %v1931_v51  ;;  %v1829_v59 = vmul.f32 %v6524_v15, %v1797_v9  ;;  %v1830_v14 = vmul.f32 %v6524_v15, %v1798_v31  ;;  %v8815_v9 = vld [vmem:[#allocation177_spill] sm:$0xff]  ;;  %v8816_v11 = vld [vmem:[#allocation206_spill] sm:$0xff]  ;;  %v8817_v51 = vld [vmem:[#allocation203_spill] sm:$0xff] }
 0x3b1   :  { %v1510_v46 = vsel %vm1506_vm15, %v8812_v16, %v8814_v56  ;;  %v1413_v54 = vsel %vm1409_vm6, %v1382_v8, 0.0  ;;  %v1320_v62 = vmul.f32 %v8811_v25, %v1288_v22  ;;  %v1456_v31 = vmul.f32 %v8815_v9, %v6230_v57  ;;  %v8818_v15 = vld [vmem:[#allocation209_spill] sm:$0xff] }
 0x3b2   :  { %8809 = vst [vmem:[#allocation72_spill] sm:$0xff] %v6527_v26  ;;  %v6550_v28 = vadd.f32 %v1829_v59, %v1720_v39  ;;  %v6552_v1 = vadd.f32 %v1830_v14, %v1721_v30  ;;  %v1511_v16 = vsel %vm1506_vm15, %v8817_v51, %v8816_v11  ;;  %v1507_v0 = vsel %vm1506_vm15, %v8816_v11, %v8818_v15  ;;  %v8821_v39 = vld [vmem:[#allocation27_spill] sm:$0xff]  ;;  %v8822_v30 = vld [vmem:[#allocation70_spill] sm:$0xff]  ;;  %v8824_v14 = vld [vmem:[#allocation9_spill] sm:$0xff] }
 0x3b3   :  { %8810 = vst [vmem:[#allocation2_spill] sm:$0xff] %v6530_v36  ;;  %v1347_v8 = vadd.f32 %v8820_v40, %v8819_v23  ;;  %v1348_v59 = vadd.f32 %v8822_v30, %v8821_v39  ;;  %v1457_v22 = vmul.f32 %v8815_v9, %v1425_v55  ;;  %vm8823_vm9 = vcmp.eq.s32.totalorder %v6216_v52, 1  ;;  %v8830_v39 = vld [vmem:[#allocation18_spill] sm:$0xff]  ;;  %v8837_v26 = vld [vmem:[#allocation67_spill] sm:$0xff] }
 0x3b4   :  { %v1555_v57 = vsel %vm8823_vm9, %v1514_v32, 0.0  ;;  %2125 = vrot.lane.b32.xlu2 %v8824_v14, %s3690_s6  ;;  %vm8825_vm12 = vcmp.eq.s32.totalorder %v6253_v4, 1  ;;  %v1444_v61 = vmul.f32 %v8826_v44, %v1412_v12  ;;  %v1445_v11 = vmul.f32 %v8826_v44, %v1413_v54  ;;  %vm8828_vm6 = vmmov %vm8823_vm9  ;;  %v8831_v30 = vld [vmem:[#allocation14_spill] sm:$0xff]  ;;  %v8833_v12 = vld [vmem:[#allocation39_spill] sm:$0xff] }
 0x3b5   :  { %v1556_v47 = vsel %vm8825_vm12, %v1510_v46, 0.0  ;;  %v1587_v23 = vmul.f32 %v8827_v6, %v1555_v57  ;;  %v6579_v40 = vpop.permute.xlu0 %1994  ;;  %1220 = vrot.lane.b32.xlu1 %v3849_v45, %s3677_s21  ;;  %v1543_v55 = vsel %vm8828_vm6, %v1511_v16, 0.0  ;;  %vm8829_vm3 = vmmov %vm8825_vm12  ;;  %vm8832_vm9 = vcmp.lt.s32.totalorder %v4143_v21, 2  ;;  %v8836_v14 = vld [vmem:[#allocation22_spill] sm:$0xff] }
 0x3b6   :  { %v1544_v32 = vsel %vm8829_vm3, %v1507_v0, 0.0  ;;  %v1642_v46 = vsel %vm8832_vm9, %v8831_v30, %v8830_v39  ;;  %vm8834_vm12 = vmmov %vm8832_vm9  ;;  %v6595_v57 = vpop.permute.xlu2 %1871  ;;  %v1335_v36 = vadd.f32 %v1319_v29, %v8836_v14  ;;  %v1336_v52 = vadd.f32 %v1320_v62, %v8837_v26  ;;  %v8839_v15 = vld [vmem:[#allocation198_spill] sm:$0xff]  ;;  %v8844_v29 = vld [vmem:[#allocation184_spill] sm:$0xff] }
 0x3b7   :  { %v1638_v54 = vsel %vm8834_vm12, %v8830_v39, %v8833_v12  ;;  %8835 = vst [vmem:[#allocation76_spill] sm:$0xff] %v6595_v57  ;;  %v1472_v16 = vadd.f32 %v1456_v31, %v1347_v8  ;;  %v1588_v4 = vmul.f32 %v8827_v6, %v1556_v47  ;;  %v1858_v0 = vpop.permute.xlu1 %1857  ;;  %v1473_v44 = vadd.f32 %v1457_v22, %v1348_v59  ;;  %vm8840_vm6 = vmmov %vm8832_vm9  ;;  %v8843_v12 = vld [vmem:[#allocation51_spill] sm:$0xff] }
 0x3b8   :  { %v1645_v51 = vsel %vm8840_vm6, %v8839_v15, %v8838_v50  ;;  %v1763_v39 = vsel %vm1762_vm4, %v8842_v18, %v8841_v37  ;;  %v1775_v26 = vsel %vm1762_vm4, %v8841_v37, %v8843_v12  ;;  %v1575_v62 = vmul.f32 %v8844_v29, %v1543_v55  ;;  %v8845_v15 = vld [vmem:[#allocation200_spill] sm:$0xff]  ;;  %vm8846_vm3 = vmmov %vm8840_vm6 }
 0x3b9   :  { %v1576_v47 = vmul.f32 %v8844_v29, %v1544_v32  ;;  %v1668_v31 = vsel %vm1664_vm0, %v1642_v46, 0.0  ;;  %v1669_v8 = vsel %vm1665_vm2, %v1638_v54, 0.0  ;;  %v1460_v59 = vadd.f32 %v1444_v61, %v1335_v36  ;;  %v8847_v46 = vld [vmem:[#allocation35_spill] sm:$0xff]  ;;  %v8848_v54 = vld [vmem:[#allocation181_spill] sm:$0xff]  ;;  %v8853_v12 = vld [vmem:[#allocation208_spill] sm:$0xff] }
 0x3ba   :  { %v1461_v22 = vadd.f32 %v1445_v11, %v1336_v52  ;;  %v1603_v14 = vadd.f32 %v1587_v23, %v1472_v16  ;;  %v1641_v18 = vsel %vm8846_vm3, %v8838_v50, %v8845_v15  ;;  %v1604_v35 = vadd.f32 %v1588_v4, %v1473_v44  ;;  %v8849_v36 = vld [vmem:[#allocation33_spill] sm:$0xff]  ;;  %v8850_v44 = vld [vmem:[#allocation196_spill] sm:$0xff]  ;;  %v8851_v16 = vld [vmem:[#allocation30_spill] sm:$0xff] }
 0x3bb   :  { %v1680_v37 = vsel %vm1664_vm0, %v1645_v51, 0.0  ;;  %v1793_v55 = vsel %vm1789_vm8, %v1763_v39, 0.0  ;;  %v1794_v32 = vsel %vm1790_vm13, %v1775_v26, 0.0  ;;  %v1766_v61 = vsel %vm1762_vm4, %v8848_v54, %v8847_v46  ;;  %v8852_v26 = vld [vmem:[#allocation4_spill] sm:$0xff] }
 0x3bc   :  { %v1778_v50 = vsel %vm1762_vm4, %v8847_v46, %v8849_v36  ;;  %v1700_v11 = vmul.f32 %v8850_v44, %v1668_v31  ;;  %v1701_v63 = vmul.f32 %v8850_v44, %v1669_v8  ;;  %1353 = vrot.lane.b32.xlu2 %v8421_v34, %s3678_s24  ;;  %v1681_v51 = vsel %vm1665_vm2, %v1641_v18, 0.0 }
 0x3bd   :  { %v1591_v23 = vadd.f32 %v1575_v62, %v1460_v59  ;;  %v1592_v52 = vadd.f32 %v1576_v47, %v1461_v22  ;;  %v1712_v4 = vmul.f32 %v8851_v16, %v1680_v37  ;;  %v1866_v39 = vpop.permute.xlu0 %1865  ;;  %1349 = vrot.lane.b32.xlu1 %v8852_v26, %s3678_s24  ;;  %v1713_v46 = vmul.f32 %v8851_v16, %v1681_v51 }
 0x3be   :  { %v1825_v31 = vmul.f32 %v8853_v12, %v1793_v55  ;;  %v1826_v8 = vmul.f32 %v8853_v12, %v1794_v32  ;;  %v1897_v44 = vsel %vm8319_vm11, %v1858_v0, %v1866_v39  ;;  %v1882_v29 = vpop.permute.xlu2 %1881  ;;  %v1805_v13 = vsel %vm1789_vm8, %v1766_v61, 0.0  ;;  %v8854_v32 = vld [vmem:[#allocation46_spill] sm:$0xff] }
 0x3bf   :  { %v1806_v18 = vsel %vm1790_vm13, %v1778_v50, 0.0  ;;  %v1922_v62 = vsel %vm8318_vm5, %v1897_v44, 0.0  ;;  %v1880_v47 = vpop.permute.xlu1 %1879  ;;  %v1901_v59 = vsel %vm8319_vm11, %v1882_v29, %v1858_v0  ;;  %v1716_v22 = vadd.f32 %v1700_v11, %v1591_v23 }
 0x3c0   :  { %v1717_v37 = vadd.f32 %v1701_v63, %v1592_v52  ;;  %v1888_v55 = vsel %vm8319_vm11, %v6595_v57, %v1880_v47  ;;  %v1900_v48 = vsel %vm8319_vm11, %v1880_v47, %v6514_v49  ;;  %v1837_v2 = vmul.f32 %v8854_v32, %v1805_v13  ;;  %v8857_v63 = vld [vmem:[#allocation12_spill] sm:$0xff]  ;;  %v8858_v47 = vld [vmem:[#allocation205_spill] sm:$0xff] }
 0x3c1   :  { %v1838_v61 = vmul.f32 %v8854_v32, %v1806_v18  ;;  %vm8855_vm0 = vcmp.eq.s32.totalorder %v6241_v27, 1  ;;  %vm8856_vm2 = vcmp.eq.s32.totalorder %v6243_v5, 1  ;;  %v1841_v44 = vadd.f32 %v1825_v31, %v1716_v22  ;;  %v8860_v22 = vld [vmem:[#allocation19_spill] sm:$0xff]  ;;  %v8879_v5 = vld [vmem:[#allocation21_spill] sm:$0xff] }
 0x3c2   :  { %v1920_v50 = vsel %vm8855_vm0, %v1888_v55, 0.0  ;;  %v1921_v0 = vsel %vm8856_vm2, %v1900_v48, 0.0  ;;  %v1842_v11 = vadd.f32 %v1826_v8, %v1717_v37  ;;  %v1728_v52 = vadd.f32 %v1712_v4, %v1603_v14  ;;  %v8859_v8 = vld [vmem:[#allocation59_spill] sm:$0xff]  ;;  %vm8872_vm9 = vmmov %vm8855_vm0 }
 0x3c3   :  { %v1952_v51 = vmul.f32 %v8857_v63, %v1920_v50  ;;  %v1953_v23 = vmul.f32 %v8857_v63, %v1921_v0  ;;  %v1729_v57 = vadd.f32 %v1713_v46, %v1604_v35  ;;  %v2018_v13 = vsel %vm2014_vm7, %v8858_v47, %v6450_v38  ;;  %v8865_v0 = vld [vmem:[#allocation45_spill] sm:$0xff]  ;;  %vm8873_vm12 = vmmov %vm8856_vm2  ;;  %v8890_v47 = vld [vmem:[#allocation155_spill] sm:$0xff] }
 0x3c4   :  { %v2030_v18 = vsel %vm2014_vm7, %v6450_v38, %v6398_v19  ;;  %2191 = vperm.xlu2 %3514, %v8859_v8   ;;  %v1853_v14 = vadd.f32 %v1837_v2, %v1728_v52  ;;  %vm8862_vm8 = vcmp.eq.s32.totalorder %v6417_v60, 1  ;;  %vm8863_vm13 = vcmp.eq.s32.totalorder %v6419_v53, 1  ;;  %v8870_v8 = vld [vmem:[#allocation32_spill] sm:$0xff] }
 0x3c5   :  { %v6680_v55 = vadd.f32 %v1952_v51, %v1841_v44  ;;  %v6682_v31 = vadd.f32 %v1953_v23, %v1842_v11  ;;  %1611 = vrot.lane.b32.xlu1 %v8860_v22, %s3682_s28  ;;  %v1854_v4 = vadd.f32 %v1838_v61, %v1729_v57  ;;  %v2057_v46 = vsel %vm8862_vm8, %v2018_v13, 0.0  ;;  %v8866_v11 = vld [vmem:[#allocation73_spill] sm:$0xff]  ;;  %v8877_v22 = vld [vmem:[#allocation43_spill] sm:$0xff]  ;;  %v8888_v19 = vld [vmem:[#allocation132_spill] sm:$0xff]  ;;  %v1991_v3 = vpop.permute.xlu0 %1990 }
 0x3c6   :  { %v6687_v35 = vpop.permute.xlu2 %2111  ;;  %v2058_v37 = vsel %vm8863_vm13, %v2030_v18, 0.0  ;;  %v1980_v44 = vadd.f32 %v8865_v0, %v1853_v14  ;;  %v8867_v57 = vld [vmem:[#allocation13_spill] sm:$0xff]  ;;  %v1893_v14 = vsel %vm8319_vm11, %v1866_v39, %v8870_v8  ;;  %v1925_v39 = vsel %vm8873_vm12, %v1901_v59, 0.0 }
 0x3c7   :  { %8861 = vst [vmem:[#allocation74_spill] sm:$0xff] %v6687_v35  ;;  %v6693_v38 = vpop.permute.xlu1 %2072  ;;  %v1981_v51 = vadd.f32 %v8866_v11, %v1854_v4  ;;  %v1889_v4 = vsel %vm8319_vm11, %v8870_v8, %v1882_v29  ;;  %vm8878_vm6 = vcmp.lt.s32.totalorder %v8877_v22, 14 }
 0x3c8   :  { %8864 = vst [vmem:[#allocation50_spill] sm:$0xff] %v6693_v38  ;;  %v2089_v48 = vmul.f32 %v6693_v38, %v2057_v46  ;;  %v2090_v50 = vmul.f32 %v6693_v38, %v2058_v37  ;;  %v8871_v46 = vld [vmem:[#allocation5_spill] sm:$0xff]  ;;  %vm2156_vm3 = vmand %vm8878_vm6, %vm6096_vm1  ;;  %vm8317_vm1 = vcmp.lt.s32.totalorder %v4143_v21, 94 }
 0x3ca   :  { %v6699_v23 = vadd.f32 %v2089_v48, %v1980_v44  ;;  %v6701_v2 = vadd.f32 %v2090_v50, %v1981_v51  ;;  %v1923_v48 = vsel %vm8308_vm10, %v1893_v14, 0.0  ;;  %v1924_v50 = vsel %vm8872_vm9, %v1889_v4, 0.0 }
 0x3cb   :  { %vm8889_vm9 = vcmp.lt.s32.totalorder %v4143_v21, 34  ;;  %vm8904_vm10 = vcmp.eq.s32.totalorder %v6419_v53, 1  ;;  %v8907_v53 = vld [vmem:[#allocation44_spill] sm:$0xff] }
 0x3cc   :  { %1478 = vrot.lane.b32.xlu2 %v8421_v34, %s3680_s27  ;;  %vm8891_vm12 = vmmov %vm8889_vm9 }
 0x3cd   :  { %1742 = vrot.lane.b32.xlu1 %v8867_v57, %s3684_s29 }
 0x3ce   :  { %v6707_v61 = vpop.permute.xlu2 %2127 }
 0x3cf   :  { %8868 = vst [vmem:[#allocation79_spill] sm:$0xff] %v6707_v61  ;;  %v6709_v52 = vpop.permute.xlu1 %2113 }
 0x3d0   :  { %8869 = vst [vmem:[#allocation78_spill] sm:$0xff] %v6709_v52 }
 0x3d4   :  { %1351 = vrot.lane.b32.xlu2 %v3849_v45, %s3678_s24 }
 0x3d5   :  { %1607 = vrot.lane.b32.xlu1 %v3849_v45, %s3682_s28  ;;  %v8883_v45 = vld [vmem:[#allocation34_spill] sm:$0xff] }
 0x3d6   :  { %v2138_v13 = vpop.permute.xlu2 %2137 }
 0x3d7   :  { %v2136_v18 = vpop.permute.xlu1 %2135 }
 0x3dc   :  { %1474 = vrot.lane.b32.xlu2 %v8852_v26, %s3680_s27  ;;  %v2143_v26 = vsel %vm8317_vm1, %v8883_v45, %v2138_v13 }
 0x3dd   :  { %1738 = vrot.lane.b32.xlu1 %v8871_v46, %s3684_s29 }
 0x3de   :  { %v6725_v37 = vpop.permute.xlu2 %1982 }
 0x3df   :  { %v1940_v0 = vpop.permute.xlu1 %1939 }
 0x3e0   :  { %v6733_v44 = vmul.f32 %v1940_v0, %v1922_v62  ;;  %v6735_v29 = vmul.f32 %v1940_v0, %v1923_v48  ;;  %v1956_v11 = vmul.f32 %v1940_v0, %v1924_v50  ;;  %v1957_v51 = vmul.f32 %v1940_v0, %v1925_v39  ;;  %v8882_v39 = vld [vmem:[#allocation42_spill] sm:$0xff] }
 0x3e1   :  { %v8880_v62 = vmov 0   ;;  %v1273_v0 = vperm.slane %v8882_v39, 0 }
 0x3e2   :  { %8874 = vst [vmem:[#allocation82_spill] sm:$0xff] %v6733_v44  ;;  %v6742_v14 = vadd.f32 %v1956_v11, %v6550_v28  ;;  %v6745_v27 = vadd.f32 %v1957_v51, %v6552_v1  ;;  %v6750_v59 = vsel %vm2156_vm3, 1, %v8880_v62  ;;  %v1274_v11 = vperm.slane %v8882_v39, 2  ;;  %v8892_v44 = vld [vmem:[#allocation144_spill] sm:$0xff] }
 0x3e3   :  { %8875 = vst [vmem:[#allocation80_spill] sm:$0xff] %v6735_v29  ;;  %v2160_v22 = vperm.slane %v6750_v59, 4  ;;  %v2161_v28 = vperm.slane %v6750_v59, 6  ;;  %v2142_v62 = vsel %vm8317_vm1, %v6707_v61, %v2136_v18  ;;  %v2155_v61 = vsel %vm8317_vm1, %v2138_v13, %v6709_v52 }
 0x3e4   :  { %1744 = vrot.lane.b32.xlu2 %v8879_v5, %s3684_s29 }
 0x3e5   :  { %1996 = vrot.lane.b32.xlu1 %v8879_v5, %s3688_s5  ;;  %v6760_v50 = vperm.slane %v2160_v22, 0  ;;  %v6762_v1 = vperm.slane %v2161_v28, 0  ;;  %v2154_v22 = vsel %vm8317_vm1, %v2136_v18, %v6687_v35  ;;  %v6783_v28 = vperm.slane %v1273_v0, 0  ;;  %v8884_v18 = vld [vmem:[#allocation10_spill] sm:$0xff] }
 0x3e6   :  { %v6754_v4 = vpop.permute.xlu2 %1998  ;;  %v8885_v0 = vld [vmem:[#allocation26_spill] sm:$0xff] }
 0x3e7   :  { %v6756_v48 = vpop.permute.xlu1 %1984  ;;  %vm2168_vm0 = vcmp.eq.s32.totalorder %v6760_v50, 1  ;;  %vm2169_vm2 = vcmp.eq.s32.totalorder %v6762_v1, 1  ;;  %v2032_v35 = vperm.slane %v8885_v0, 2  ;;  %vm1281_vm8 = vcmp.eq.s32.totalorder %v6783_v28, 1 }
 0x3e8   :  { %8881 = vst [vmem:[#allocation95_spill] sm:$0xff] %v6756_v48  ;;  %v2180_v39 = vsel %vm2168_vm0, %v2142_v62, 0.0  ;;  %v2181_v34 = vsel %vm2169_vm2, %v2154_v22, 0.0  ;;  %v8886_v62 = vld [vmem:[#allocation24_spill] sm:$0xff]  ;;  %v2184_v13 = vsel %vm2168_vm0, %v2143_v26, 0.0  ;;  %v2185_v52 = vsel %vm2169_vm2, %v2155_v61, 0.0 }
 0x3e9   :  { %v2212_v22 = vmul.f32 %v8886_v62, %v2180_v39  ;;  %v2213_v45 = vmul.f32 %v8886_v62, %v2181_v34  ;;  %v6827_v29 = vperm.slane %v2032_v35, 0  ;;  %v2019_v35 = vsel %vm2014_vm7, %v1991_v3, %v6754_v4 }
 0x3eb   :  { %vm8321_vm3 = vcmp.eq.s32.totalorder %v6827_v29, 1 }
 0x3ec   :  { %1867 = vrot.lane.b32.xlu2 %v8867_v57, %s3686_s30 }
 0x3ed   :  { %2119 = vrot.lane.b32.xlu1 %v8867_v57, %s3690_s6  ;;  %v6785_v57 = vperm.slane %v1274_v11, 0  ;;  %v2031_v11 = vperm.slane %v8885_v0, 0 }
 0x3ee   :  { %v6771_v51 = vpop.permute.xlu2 %2008 }
 0x3ef   :  { %v6773_v8 = vpop.permute.xlu1 %2006  ;;  %vm1282_vm13 = vcmp.eq.s32.totalorder %v6785_v57, 1  ;;  %v6825_v62 = vperm.slane %v2031_v11, 0  ;;  %v8893_v11 = vld [vmem:[#allocation146_spill] sm:$0xff] }
 0x3f1   :  { %vm8322_vm6 = vcmp.eq.s32.totalorder %v6825_v62, 1 }
 0x3f4   :  { %1740 = vrot.lane.b32.xlu2 %v8884_v18, %s3684_s29 }
 0x3f5   :  { %1992 = vrot.lane.b32.xlu1 %v8884_v18, %s3688_s5 }
 0x3f6   :  { %v1223_v38 = vpop.permute.xlu2 %1222 }
 0x3f7   :  { %v6811_v63 = vpop.permute.xlu1 %2199  ;;  %v1261_v18 = vsel %vm8889_vm9, %v1223_v38, %v8888_v19  ;;  %v1265_v49 = vsel %vm8891_vm12, %v8890_v47, %v1223_v38  ;;  %v2228_v47 = vadd.f32 %v2212_v22, %v6488_v24  ;;  %v2229_v38 = vadd.f32 %v2213_v45, %v6490_v58  ;;  %vm8897_vm12 = vmmov %vm8889_vm9 }
 0x3f8   :  { %8887 = vst [vmem:[#allocation93_spill] sm:$0xff] %v6811_v63  ;;  %v1293_v34 = vsel %vm1281_vm8, %v1265_v49, 0.0  ;;  %v1294_v39 = vsel %vm1282_vm13, %v1261_v18, 0.0  ;;  %v2216_v26 = vmul.f32 %v6811_v63, %v2184_v13  ;;  %v2217_v61 = vmul.f32 %v6811_v63, %v2185_v52 }
 0x3f9   :  { %v1325_v19 = vmul.f32 %v8892_v44, %v1293_v34  ;;  %v1326_v12 = vmul.f32 %v8892_v44, %v1294_v39  ;;  %v2023_v52 = vsel %vm2014_vm7, %v6725_v37, %v1991_v3  ;;  %v8894_v44 = vld [vmem:[#allocation147_spill] sm:$0xff]  ;;  %v2158_v58 = vperm.slane %v6750_v59, 0 }
 0x3fa   :  { %v2232_v49 = vadd.f32 %v2216_v26, %v6699_v23  ;;  %v2233_v18 = vadd.f32 %v2217_v61, %v6701_v2  ;;  %v2043_v3 = vsel %vm8322_vm6, %v2023_v52, 0.0  ;;  %v2044_v23 = vsel %vm8321_vm3, %v2019_v35, 0.0  ;;  %v8895_v26 = vld [vmem:[#allocation152_spill] sm:$0xff]  ;;  %v8898_v52 = vld [vmem:[#allocation158_spill] sm:$0xff] }
 0x3fb   :  { %v6842_v13 = vadd.f32 %v1325_v19, %v8893_v11  ;;  %v6845_v34 = vadd.f32 %v1326_v12, %v8894_v44  ;;  %v8896_v19 = vld [vmem:[#allocation153_spill] sm:$0xff]  ;;  %v8899_v44 = vld [vmem:[#allocation148_spill] sm:$0xff]  ;;  %v3693_v63 = vmov 18  }
 0x3fc   :  { %1863 = vrot.lane.b32.xlu2 %v8871_v46, %s3686_s30  ;;  %v2245_v45 = vpack.c.bf16 %v2232_v49, %v2228_v47  ;;  %v2246_v24 = vpack.c.bf16 %v2233_v18, %v2229_v38  ;;  %v6870_v18 = vperm.slane %v2158_v58, 0  ;;  %3515 = vset.pattern.permute.xlu1 %v3693_v63 }
 0x3fd   :  { %3517 = vset.pattern.permute.xlu0 %v3693_v63  ;;  %2248 = vperm.xlu1 %3515, %v6433_v7  }
 0x3fe   :  { %2323 = vmatpush.bf16.msrb.mxu2 %v2245_v45  ;;  %2342 = vmatpush.bf16.msrb.mxu3 %v2246_v24  ;;  %v2061_v12 = vpop.permute.xlu2 %2060  ;;  %v8900_v24 = vld [vmem:[#allocation149_spill] sm:$0xff] }
 0x3ff   :  { %v1225_v2 = vpop.permute.xlu1 %1224  ;;  %v6856_v22 = vmul.f32 %v2061_v12, %v2043_v3  ;;  %v6858_v39 = vmul.f32 %v2061_v12, %v2044_v23  ;;  %v2159_v23 = vperm.slane %v6750_v59, 2  ;;  %3516 = vset.pattern.permute.xlu2 %v3693_v63 }
 0x400   :  { %v1262_v61 = vsel %vm8889_vm9, %v1225_v2, %v8895_v26  ;;  %v1266_v47 = vsel %vm8897_vm12, %v8896_v19, %v1225_v2  ;;  %vm8307_vm9 = vcmp.eq.s32.totalorder %v6870_v18, 1  ;;  %v2118_v2 = vpop.permute.xlu0 %2117 }
 0x401   :  { %v1297_v49 = vsel %vm1281_vm8, %v1266_v47, 0.0  ;;  %v1298_v38 = vsel %vm1282_vm13, %v1262_v61, 0.0  ;;  %v6890_v47 = vperm.slane %v2159_v23, 0 }
 0x402   :  { %v1329_v35 = vmul.f32 %v8898_v52, %v1297_v49  ;;  %v1330_v11 = vmul.f32 %v8898_v52, %v1298_v38 }
 0x403   :  { %vm8316_vm12 = vcmp.eq.s32.totalorder %v6890_v47, 1 }
 0x404   :  { %v6875_v45 = vadd.f32 %v1329_v35, %v8899_v44  ;;  %v6878_v3 = vadd.f32 %v1330_v11, %v8900_v24  ;;  %2121 = vrot.lane.b32.xlu2 %v8879_v5, %s3690_s6  ;;  %v8902_v35 = vld [vmem:[#allocation38_spill] sm:$0xff]  ;;  %v2028_v44 = vsel %vm2014_vm7, %v6771_v51, %v6756_v48 }
 0x405   :  { %v2016_v11 = vsel %vm2014_vm7, %v8902_v35, %v6771_v51  ;;  %v2050_v23 = vsel %vm8904_vm10, %v2028_v44, 0.0  ;;  %v8905_v51 = vld [vmem:[#allocation49_spill] sm:$0xff] }
 0x406   :  { %v2110_v58 = vpop.permute.xlu2 %2109  ;;  %v8906_v35 = vld [vmem:[#allocation41_spill] sm:$0xff] }
 0x407   :  { %v6884_v26 = vpop.permute.xlu1 %2107  ;;  %v2149_v61 = vsel %vm8317_vm1, %v2110_v58, %v2118_v2 }
 0x408   :  { %8901 = vst [vmem:[#allocation86_spill] sm:$0xff] %v6884_v26  ;;  %v2174_v19 = vsel %vm8307_vm9, %v2149_v61, 0.0  ;;  %vm8903_vm9 = vcmp.eq.s32.totalorder %v6417_v60, 1  ;;  %v2015_v61 = vsel %vm2014_vm7, %v6754_v4, %v6773_v8  ;;  %v2152_v4 = vsel %vm8317_vm1, %v8906_v35, %v6884_v26 }
 0x409   :  { %v2049_v24 = vsel %vm8903_vm9, %v2016_v11, 0.0  ;;  %v2082_v11 = vmul.f32 %v8905_v51, %v2050_v23  ;;  %v2045_v44 = vsel %vm8903_vm9, %v2015_v61, 0.0  ;;  %v1398_v61 = vperm.slane %v8907_v53, 0 }
 0x40b   :  { %v2098_v26 = vadd.f32 %v2082_v11, %v6745_v27 }
 0x40c   :  { %2115 = vrot.lane.b32.xlu2 %v8871_v46, %s3690_s6  ;;  %v2081_v46 = vmul.f32 %v8905_v51, %v2049_v24  ;;  %v2077_v24 = vmul.f32 %v2061_v12, %v2045_v44 }
 0x40e   :  { %v2126_v49 = vpop.permute.xlu2 %2125  ;;  %v2097_v51 = vadd.f32 %v2081_v46, %v6742_v14  ;;  %v3633_v46 = vld [vmem:[%s7926_s3 + $0x10] sm:$0xff]  ;;  %v2093_v1 = vadd.f32 %v2077_v24, %v6680_v55  ;;  %v1655_v55 = vperm.slane %v8907_v53, 3 }
 0x40f   :  { %v6895_v38 = vpop.permute.xlu1 %2123  ;;  %v2145_v59 = vsel %vm8317_vm1, %v2118_v2, %v2126_v49  ;;  %2256 = vperm.xlu0 %3517, %v3633_v46  }
 0x410   :  { %v2175_v52 = vsel %vm8316_vm12, %v2145_v59, 0.0  ;;  %v2027_v59 = vsel %vm2014_vm7, %v6773_v8, %v6725_v37  ;;  %v2140_v37 = vsel %vm8317_vm1, %v6895_v38, %v8906_v35  ;;  %v2173_v35 = vsel %vm2169_vm2, %v2152_v4, 0.0 }
 0x411   :  { %v2046_v48 = vsel %vm8904_vm10, %v2027_v59, 0.0  ;;  %v1399_v59 = vperm.slane %v8907_v53, 2 }
 0x412   :  { %v2078_v23 = vmul.f32 %v2061_v12, %v2046_v48 }
 0x414   :  { %v2094_v7 = vadd.f32 %v2078_v23, %v6682_v31  ;;  %v6974_v31 = vperm.slane %v1398_v61, 0  ;;  %v6976_v23 = vperm.slane %v1399_v59, 0  ;;  %v8912_v61 = vld [vmem:[#allocation174_spill] sm:$0xff] }
 0x416   :  { %v6913_v2 = vpop.permute.xlu2 %1353  ;;  %vm1406_vm9 = vcmp.eq.s32.totalorder %v6974_v31, 1  ;;  %vm1407_vm10 = vcmp.eq.s32.totalorder %v6976_v23, 1 }
 0x417   :  { %v2134_v5 = vpop.permute.xlu1 %2133 }
 0x418   :  { %v2141_v8 = vsel %vm8317_vm1, %v2126_v49, %v2134_v5  ;;  %v2153_v60 = vsel %vm8317_vm1, %v2134_v5, %v2110_v58  ;;  %v2172_v49 = vsel %vm2168_vm0, %v2140_v37, 0.0  ;;  %v3634_v37 = vld [vmem:[%s7926_s3 + $0x8] sm:$0xff] }
 0x419   :  { %v2176_v5 = vsel %vm2168_vm0, %v2141_v8, 0.0  ;;  %v2177_v48 = vsel %vm2169_vm2, %v2153_v60, 0.0  ;;  %2252 = vperm.xlu2 %3516, %v3634_v37   ;;  %v8908_v8 = vld [vmem:[#allocation52_spill] sm:$0xff]  ;;  %vm8911_vm0 = vcmp.lt.s32.totalorder %v4143_v21, 34 }
 0x41a   :  { %v1529_v60 = vperm.slane %v8908_v8, 0  ;;  %v1530_v63 = vperm.slane %v8908_v8, 2  ;;  %vm8913_vm2 = vmmov %vm8911_vm0  ;;  %v8915_v37 = vld [vmem:[#allocation160_spill] sm:$0xff]  ;;  %v8916_v8 = vld [vmem:[#allocation62_spill] sm:$0xff] }
 0x41c   :  { %v6980_v46 = vperm.slane %v1530_v63, 0  ;;  %v8917_v63 = vld [vmem:[#allocation162_spill] sm:$0xff] }
 0x41e   :  { %v2192_v12 = vpop.permute.xlu2 %2191  ;;  %vm1538_vm1 = vcmp.eq.s32.totalorder %v6980_v46, 1 }
 0x41f   :  { %v6957_v14 = vpop.permute.xlu1 %2187  ;;  %v2208_v27 = vmul.f32 %v2192_v12, %v2176_v5  ;;  %v2209_v58 = vmul.f32 %v2192_v12, %v2177_v48  ;;  %v6959_v11 = vmul.f32 %v2192_v12, %v2174_v19  ;;  %v6961_v50 = vmul.f32 %v2192_v12, %v2175_v52 }
 0x420   :  { %v2204_v44 = vmul.f32 %v6957_v14, %v2172_v49  ;;  %v2205_v4 = vmul.f32 %v6957_v14, %v2173_v35  ;;  %v1654_v5 = vperm.slane %v8907_v53, 1  ;;  %v6978_v12 = vperm.slane %v1529_v60, 0 }
 0x421   :  { %v2224_v19 = vadd.f32 %v2208_v27, %v2097_v51  ;;  %v2225_v52 = vadd.f32 %v2209_v58, %v2098_v26  ;;  %v6985_v26 = vld [vmem:[%s7927_s2 + $0x10] sm:$0xff]  ;;  %v8909_v51 = vld [vmem:[#allocation165_spill] sm:$0xff]  ;;  %v1393_v60 = vsel %vm1381_vm14, %v8916_v8, %v8915_v37 }
 0x422   :  { %v2220_v24 = vadd.f32 %v2204_v44, %v2093_v1  ;;  %v2221_v49 = vadd.f32 %v2205_v4, %v2094_v7  ;;  %v8910_v27 = vld [vmem:[#allocation60_spill] sm:$0xff]  ;;  %v6995_v58 = vperm.slane %v1654_v5, 1  ;;  %v6997_v1 = vperm.slane %v1655_v55, 1  ;;  %v7004_v4 = vld [vmem:[%s7926_s3 + $0x18] sm:$0xff] }
 0x423   :  { %v1259_v53 = vsel %vm8911_vm0, %v8910_v27, %v8909_v51  ;;  %v1263_v59 = vsel %vm8913_vm2, %v8912_v61, %v8910_v27  ;;  %8914 = vst [vmem:[#allocation81_spill] sm:$0xff] %v7004_v4  ;;  %2260 = vperm.xlu1 %3515, %v7004_v4   ;;  %vm8918_vm0 = vcmask 261120   ;;  %vm1537_vm12 = vcmp.eq.s32.totalorder %v6978_v12, 1  ;;  %v8922_v61 = vld [vmem:[#allocation68_spill] sm:$0xff]  ;;  %v8924_v37 = vld [vmem:[#allocation201_spill] sm:$0xff] }
 0x424   :  { %v2241_v35 = vpack.c.bf16 %v2224_v19, %v2220_v24  ;;  %v2242_v48 = vpack.c.bf16 %v2225_v52, %v2221_v49  ;;  %v1397_v19 = vsel %vm1381_vm14, %v8917_v63, %v8916_v8  ;;  %v1285_v52 = vsel %vm1281_vm8, %v1263_v59, 0.0  ;;  %vm8919_vm2 = vmmov %vm8918_vm0  ;;  %v8920_v49 = vld [vmem:[#allocation66_spill] sm:$0xff] }
 0x425   :  { %v1286_v5 = vsel %vm1282_vm13, %v1259_v53, 0.0  ;;  %vm1662_vm5 = vcmp.eq.s32.totalorder %v6995_v58, 1  ;;  %vm1663_vm11 = vcmp.eq.s32.totalorder %v6997_v1, 1  ;;  %v1422_v55 = vsel %vm1406_vm9, %v1397_v19, 0.0  ;;  %v8921_v53 = vld [vmem:[#allocation194_spill] sm:$0xff]  ;;  %v8981_v58 = vld [vmem:[#allocation65_spill] sm:$0xff] }
 0x426   :  { %2324 = vmatpush.bf16.msrb.mxu2 %v2241_v35  ;;  %2343 = vmatpush.bf16.msrb.mxu3 %v2242_v48  ;;  %v1479_v44 = vpop.permute.xlu2 %1478  ;;  %v1423_v24 = vsel %vm1407_vm10, %v1393_v60, 0.0  ;;  %v1518_v35 = vsel %vm1506_vm15, %v8920_v49, %v8813_v10  ;;  %v1522_v48 = vsel %vm1506_vm15, %v8814_v56, %v8920_v49  ;;  %v1317_v51 = vmul.f32 %v8811_v25, %v1285_v52  ;;  %v8926_v10 = vld [vmem:[#allocation156_spill] sm:$0xff]  ;;  %v8927_v56 = vld [vmem:[#allocation163_spill] sm:$0xff] }
 0x427   :  { %v6999_v7 = vpop.permute.xlu1 %1220  ;;  %v1318_v27 = vmul.f32 %v8811_v25, %v1286_v5  ;;  %v1392_v60 = vsel %vm1381_vm14, %v6913_v2, %v8926_v10  ;;  %v1396_v25 = vsel %vm1381_vm14, %v8927_v56, %v6913_v2  ;;  %v1553_v63 = vsel %vm1537_vm12, %v1522_v48, 0.0  ;;  %v8928_v52 = vld [vmem:[#allocation71_spill] sm:$0xff]  ;;  %v8929_v10 = vld [vmem:[#allocation141_spill] sm:$0xff] }
 0x428   :  { %v1554_v19 = vsel %vm1538_vm1, %v1518_v35, 0.0  ;;  %v1516_v5 = vsel %vm1506_vm15, %v8928_v52, %v8793_v33  ;;  %v1520_v49 = vsel %vm1506_vm15, %v8794_v17, %v8928_v52  ;;  %v1455_v2 = vmul.f32 %v8815_v9, %v1423_v24  ;;  %v8930_v33 = vld [vmem:[#allocation142_spill] sm:$0xff]  ;;  %v8982_v1 = vld [vmem:[#allocation51_spill] sm:$0xff] }
 0x429   :  { %3361 = vmatmul.msk.bf16.vlgmr.msrb.gmra.mxu2 %vm8918_vm0, %v6985_v26  ;;  %3363 = vmatmul.msk.bf16.vlgmr.msrb.gmra.mxu3 %vm8919_vm2, %v6985_v26  ;;  %vm8923_vm0 = vcmp.lt.s32.totalorder %v4143_v21, 2  ;;  %v7078_v56 = vadd.f32 %v1317_v51, %v8929_v10  ;;  %v7081_v4 = vadd.f32 %v1318_v27, %v8930_v33  ;;  %v1418_v17 = vsel %vm1406_vm9, %v1396_v25, 0.0  ;;  %v8932_v25 = vld [vmem:[#allocation161_spill] sm:$0xff]  ;;  %v8935_v33 = vld [vmem:[#allocation58_spill] sm:$0xff] }
 0x42a   :  { %v1648_v59 = vsel %vm8923_vm0, %v8922_v61, %v8921_v53  ;;  %vm8925_vm2 = vmmov %vm8923_vm0  ;;  %v1586_v24 = vmul.f32 %v8827_v6, %v1554_v19  ;;  %v1546_v51 = vsel %vm1538_vm1, %v1516_v5, 0.0  ;;  %v8933_v5 = vld [vmem:[#allocation176_spill] sm:$0xff] }
 0x42b   :  { %v1652_v8 = vsel %vm8925_vm2, %v8924_v37, %v8922_v61  ;;  %v1454_v61 = vmul.f32 %v8815_v9, %v1422_v55  ;;  %v1675_v35 = vsel %vm1663_vm11, %v1648_v59, 0.0  ;;  %v1419_v55 = vsel %vm1407_vm10, %v1392_v60, 0.0  ;;  %vm8937_vm2 = vmmov %vm8923_vm0 }
 0x42c   :  { %v1674_v48 = vsel %vm1662_vm5, %v1652_v8, 0.0  ;;  %v1585_v9 = vmul.f32 %v8827_v6, %v1553_v63  ;;  %v1545_v59 = vsel %vm1537_vm12, %v1520_v49, 0.0  ;;  %v8931_v8 = vld [vmem:[#allocation187_spill] sm:$0xff]  ;;  %v2021_v60 = vsel %vm2014_vm7, %v6579_v40, %v6384_v43 }
 0x42d   :  { %v7094_v52 = vmul.f32 %v8931_v8, %v1674_v48  ;;  %v7097_v27 = vmul.f32 %v8931_v8, %v1675_v35  ;;  %v2025_v6 = vsel %vm2014_vm7, %v6310_v20, %v6579_v40  ;;  %v1450_v63 = vmul.f32 %v8932_v25, %v1418_v17  ;;  %v8934_v48 = vld [vmem:[#allocation183_spill] sm:$0xff] }
 0x42e   :  { %v1352_v53 = vpop.permute.xlu2 %1351  ;;  %v1451_v19 = vmul.f32 %v8932_v25, %v1419_v55  ;;  %v1517_v49 = vsel %vm1506_vm15, %v1479_v44, %v8933_v5  ;;  %v1521_v35 = vsel %vm1506_vm15, %v8934_v48, %v1479_v44  ;;  %v7116_v10 = vmul.f32 %v5690_v42, %v1545_v59  ;;  %v8936_v55 = vld [vmem:[#allocation39_spill] sm:$0xff] }
 0x42f   :  { %v1350_v37 = vpop.permute.xlu1 %1349  ;;  %v7119_v43 = vmul.f32 %v5690_v42, %v1546_v51  ;;  %v1779_v20 = vperm.slane %v8885_v0, 1  ;;  %v1780_v40 = vperm.slane %v8885_v0, 3  ;;  %v7127_v17 = vsel %vm8923_vm0, %v8935_v33, %v8831_v30  ;;  %v7146_v0 = vld [vmem:[%s7927_s2 + $0x18] sm:$0xff]  ;;  %v8939_v48 = vld [vmem:[#allocation171_spill] sm:$0xff] }
 0x430   :  { %v7133_v44 = vsel %vm8937_vm2, %v8936_v55, %v8935_v33  ;;  %v7137_v42 = vsel %vm8322_vm6, %v2025_v6, 0.0  ;;  %v7141_v59 = vsel %vm8321_vm3, %v2021_v60, 0.0  ;;  %8938 = vst [vmem:[#allocation53_spill] sm:$0xff] %v7146_v0  ;;  %v1470_v30 = vadd.f32 %v1454_v61, %v6875_v45  ;;  %v8941_v45 = vld [vmem:[#allocation173_spill] sm:$0xff] }
 0x431   :  { %v1471_v51 = vadd.f32 %v1455_v2, %v6878_v3  ;;  %v1549_v8 = vsel %vm1537_vm12, %v1521_v35, 0.0  ;;  %v1550_v6 = vsel %vm1538_vm1, %v1517_v49, 0.0  ;;  %v1466_v5 = vadd.f32 %v1450_v63, %v6842_v13  ;;  %v8943_v2 = vld [vmem:[#allocation198_spill] sm:$0xff] }
 0x432   :  { %v1467_v60 = vadd.f32 %v1451_v19, %v6845_v34  ;;  %vm8940_vm0 = vcmp.lt.s32.totalorder %v4143_v21, 34  ;;  %vm8944_vm3 = vcmp.lt.s32.totalorder %v4143_v21, 2  ;;  %v7170_v34 = vperm.slane %v1779_v20, 1  ;;  %v8946_v19 = vld [vmem:[#allocation175_spill] sm:$0xff] }
 0x433   :  { %v1260_v33 = vsel %vm8940_vm0, %v6999_v7, %v8939_v48  ;;  %vm8942_vm2 = vmmov %vm8940_vm0  ;;  %v7172_v63 = vperm.slane %v1780_v40, 1  ;;  %v1581_v35 = vmul.f32 %v8946_v19, %v1549_v8  ;;  %v1582_v55 = vmul.f32 %v8946_v19, %v1550_v6  ;;  %v8949_v40 = vld [vmem:[#allocation189_spill] sm:$0xff]  ;;  %v8950_v6 = vld [vmem:[#allocation191_spill] sm:$0xff] }
 0x434   :  { %v1264_v3 = vsel %vm8942_vm2, %v8941_v45, %v6999_v7  ;;  %vm8945_vm6 = vmmov %vm8944_vm3  ;;  %v1290_v20 = vsel %vm1282_vm13, %v1260_v33, 0.0  ;;  %v1391_v8 = vsel %vm1381_vm14, %v1352_v53, %v8949_v40  ;;  %v1395_v45 = vsel %vm1381_vm14, %v8950_v6, %v1352_v53  ;;  %v8953_v19 = vld [vmem:[#allocation186_spill] sm:$0xff] }
 0x435   :  { %v1601_v33 = vadd.f32 %v1585_v9, %v1470_v30  ;;  %vm1788_vm13 = vcmp.eq.s32.totalorder %v7172_v63, 1  ;;  %v1322_v40 = vmul.f32 %v8953_v19, %v1290_v20  ;;  %v1597_v6 = vadd.f32 %v1581_v35, %v1466_v5  ;;  %v8954_v35 = vld [vmem:[#allocation61_spill] sm:$0xff]  ;;  %v8987_v63 = vld [vmem:[#allocation80_spill] sm:$0xff] }
 0x436   :  { %v1475_v25 = vpop.permute.xlu2 %1474  ;;  %v1415_v9 = vsel %vm1407_vm10, %v1391_v8, 0.0  ;;  %vm8996_vm2 = vcmp.eq.s32.totalorder %v6825_v62, 1 }
 0x437   :  { %v1612_v61 = vpop.permute.xlu1 %1611 }
 0x438   :  { %v1649_v49 = vsel %vm8944_vm3, %v1612_v61, %v8943_v2  ;;  %v1653_v13 = vsel %vm8945_vm6, %v8845_v15, %v1612_v61  ;;  %vm8947_vm3 = vcmask 261120   ;;  %v1289_v15 = vsel %vm1281_vm8, %v1264_v3, 0.0  ;;  %v8951_v61 = vld [vmem:[#allocation185_spill] sm:$0xff] }
 0x439   :  { %v1678_v7 = vsel %vm1662_vm5, %v1653_v13, 0.0  ;;  %v1679_v48 = vsel %vm1663_vm11, %v1649_v49, 0.0  ;;  %3362 = vmatmul.msk.bf16.gmra.mxu2 %vm8947_vm3, %v7146_v0  ;;  %vm8948_vm0 = vmmov %vm8947_vm3  ;;  %v1390_v2 = vsel %vm1381_vm14, %v1350_v37, %v8951_v61  ;;  %v8952_v49 = vld [vmem:[#allocation192_spill] sm:$0xff]  ;;  %v1602_v13 = vadd.f32 %v1586_v24, %v1471_v51 }
 0x43a   :  { %3364 = vmatmul.msk.bf16.gmra.mxu3 %vm8948_vm0, %v7146_v0  ;;  %v1394_v28 = vsel %vm1381_vm14, %v8952_v49, %v1350_v37  ;;  %v1710_v3 = vmul.f32 %v8851_v16, %v1678_v7  ;;  %v1711_v57 = vmul.f32 %v8851_v16, %v1679_v48  ;;  %vm1787_vm8 = vcmp.eq.s32.totalorder %v7170_v34, 1 }
 0x43b   :  { %v1321_v53 = vmul.f32 %v8953_v19, %v1289_v15  ;;  %v1598_v61 = vadd.f32 %v1582_v55, %v1467_v60  ;;  %v1410_v0 = vsel %vm1406_vm9, %v1394_v28, 0.0  ;;  %v1411_v37 = vsel %vm1407_vm10, %v1390_v2, 0.0  ;;  %v8955_v55 = vld [vmem:[#allocation29_spill] sm:$0xff]  ;;  %v8957_v28 = vld [vmem:[#allocation203_spill] sm:$0xff] }
 0x43c   :  { %v1414_v16 = vsel %vm1406_vm9, %v1395_v45, 0.0  ;;  %v1726_v30 = vadd.f32 %v1710_v3, %v1601_v33  ;;  %v1727_v51 = vadd.f32 %v1711_v57, %v1602_v13  ;;  %v8956_v45 = vld [vmem:[#allocation204_spill] sm:$0xff]  ;;  %v1515_v3 = vsel %vm1506_vm15, %v1475_v25, %v8957_v28  ;;  %v8958_v57 = vld [vmem:[#allocation209_spill] sm:$0xff]  ;;  %v8959_v13 = vld [vmem:[#allocation199_spill] sm:$0xff] }
 0x43d   :  { %v1446_v2 = vmul.f32 %v8956_v45, %v1414_v16  ;;  %v1447_v49 = vmul.f32 %v8956_v45, %v1415_v9  ;;  %v1519_v33 = vsel %vm1506_vm15, %v8958_v57, %v1475_v25  ;;  %v1722_v9 = vadd.f32 %v7094_v52, %v1597_v6  ;;  %v8973_v28 = vld [vmem:[#allocation77_spill] sm:$0xff] }
 0x43e   :  { %v1745_v24 = vpop.permute.xlu2 %1744  ;;  %v1542_v52 = vsel %vm1538_vm1, %v1515_v3, 0.0  ;;  %vm8966_vm14 = vcmp.lt.s32.totalorder %v4143_v21, 98  ;;  %vm8972_vm1 = vcmp.eq.s32.totalorder %v6456_v41, 1  ;;  %vm8974_vm9 = vcmp.eq.s32.totalorder %v8973_v28, 1 }
 0x43f   :  { %v1743_v7 = vpop.permute.xlu1 %1742  ;;  %v1770_v5 = vsel %vm1762_vm4, %v1745_v24, %v8848_v54  ;;  %v1774_v60 = vsel %vm1762_vm4, %v8849_v36, %v1745_v24  ;;  %vm8968_vm15 = vmmov %vm8966_vm14  ;;  %vm8997_vm3 = vcmp.eq.s32.totalorder %v6827_v29, 1  ;;  %vm9001_vm0 = vcmp.lt.s32.totalorder %v4143_v21, 94  ;;  %v9023_v21 = vld [vmem:[#allocation49_spill] sm:$0xff] }
 0x440   :  { %v1769_v31 = vsel %vm1762_vm4, %v1743_v7, %v8954_v35  ;;  %v1773_v23 = vsel %vm1762_vm4, %v8955_v55, %v1743_v7  ;;  %v1803_v48 = vsel %vm1787_vm8, %v1774_v60, 0.0  ;;  %v1804_v15 = vsel %vm1788_vm13, %v1770_v5, 0.0  ;;  %v8960_v60 = vld [vmem:[#allocation168_spill] sm:$0xff]  ;;  %v8961_v35 = vld [vmem:[#allocation169_spill] sm:$0xff]  ;;  %vm8995_vm10 = vmmov %vm8974_vm9 }
 0x441   :  { %v1799_v54 = vsel %vm1787_vm8, %v1773_v23, 0.0  ;;  %v1800_v36 = vsel %vm1788_vm13, %v1769_v31, 0.0  ;;  %v1835_v20 = vmul.f32 %v8854_v32, %v1803_v48  ;;  %v1836_v8 = vmul.f32 %v8854_v32, %v1804_v15  ;;  %v8962_v55 = vld [vmem:[#allocation172_spill] sm:$0xff]  ;;  %v9026_v29 = vld [vmem:[#allocation53_spill] sm:$0xff] }
 0x442   :  { %v1831_v19 = vmul.f32 %v8959_v13, %v1799_v54  ;;  %v1832_v24 = vmul.f32 %v8959_v13, %v1800_v36  ;;  %v1337_v32 = vadd.f32 %v1321_v53, %v8960_v60  ;;  %v1338_v16 = vadd.f32 %v1322_v40, %v8961_v35  ;;  %v8963_v15 = vld [vmem:[#allocation72_spill] sm:$0xff]  ;;  %v8964_v54 = vld [vmem:[#allocation2_spill] sm:$0xff]  ;;  %v8967_v36 = vld [vmem:[#allocation37_spill] sm:$0xff] }
 0x443   :  { %v1851_v7 = vadd.f32 %v1835_v20, %v1726_v30  ;;  %v1852_v5 = vadd.f32 %v1836_v8, %v1727_v51  ;;  %v1723_v31 = vadd.f32 %v7097_v27, %v1598_v61  ;;  %v1442_v23 = vmul.f32 %v8962_v55, %v1410_v0  ;;  %v8965_v61 = vld [vmem:[#allocation20_spill] sm:$0xff]  ;;  %v8975_v13 = vld [vmem:[#allocation210_spill] sm:$0xff] }
 0x444   :  { %v1443_v48 = vmul.f32 %v8962_v55, %v1411_v37  ;;  %v1462_v30 = vadd.f32 %v1446_v2, %v1337_v32  ;;  %v1463_v51 = vadd.f32 %v1447_v49, %v1338_v16  ;;  %v1541_v53 = vsel %vm1537_vm12, %v1519_v33, 0.0  ;;  %v8969_v8 = vld [vmem:[#allocation16_spill] sm:$0xff]  ;;  %vm8971_vm12 = vmmov %vm8945_vm6 }
 0x445   :  { %v7253_v25 = vadd.f32 %v8963_v15, %v1851_v7  ;;  %v7256_v45 = vadd.f32 %v8964_v54, %v1852_v5  ;;  %v1847_v27 = vadd.f32 %v1831_v19, %v1722_v9  ;;  %v1848_v6 = vadd.f32 %v1832_v24, %v1723_v31  ;;  %v8970_v2 = vld [vmem:[#allocation40_spill] sm:$0xff] }
 0x446   :  { %v1868_v40 = vpop.permute.xlu2 %1867  ;;  %v8976_v7 = vld [vmem:[#allocation36_spill] sm:$0xff] }
 0x447   :  { %v1608_v0 = vpop.permute.xlu1 %1607  ;;  %v1894_v37 = vsel %vm8966_vm14, %v1868_v40, %v8965_v61  ;;  %v1898_v20 = vsel %vm8968_vm15, %v8967_v36, %v1868_v40  ;;  %v2083_v5 = vmul.f32 %v8976_v7, %v7137_v42  ;;  %v2084_v60 = vmul.f32 %v8976_v7, %v7141_v59  ;;  %v8977_v32 = vld [vmem:[#allocation184_spill] sm:$0xff] }
 0x448   :  { %v1647_v12 = vsel %vm8945_vm6, %v1608_v0, %v8969_v8  ;;  %v1651_v46 = vsel %vm8971_vm12, %v8970_v2, %v1608_v0  ;;  %v1926_v49 = vsel %vm8972_vm1, %v1898_v20, 0.0  ;;  %v1927_v3 = vsel %vm8974_vm9, %v1894_v37, 0.0  ;;  %v8978_v9 = vld [vmem:[#allocation28_spill] sm:$0xff]  ;;  %v8983_v2 = vld [vmem:[#allocation54_spill] sm:$0xff]  ;;  %vm9014_vm9 = vmmov %vm9001_vm0 }
 0x449   :  { %v1670_v57 = vsel %vm1662_vm5, %v1651_v46, 0.0  ;;  %v1671_v33 = vsel %vm1663_vm11, %v1647_v12, 0.0  ;;  %v1958_v19 = vmul.f32 %v8975_v13, %v1926_v49  ;;  %v1959_v24 = vmul.f32 %v8975_v13, %v1927_v3  ;;  %v8984_v3 = vld [vmem:[#allocation196_spill] sm:$0xff] }
 0x44a   :  { %v1573_v35 = vmul.f32 %v8977_v32, %v1541_v53  ;;  %v1574_v16 = vmul.f32 %v8977_v32, %v1542_v52  ;;  %v1702_v31 = vmul.f32 %v8978_v9, %v1670_v57  ;;  %v1703_v55 = vmul.f32 %v8978_v9, %v1671_v33  ;;  %v8985_v13 = vld [vmem:[#allocation208_spill] sm:$0xff]  ;;  %v8986_v32 = vld [vmem:[#allocation82_spill] sm:$0xff] }
 0x44b   :  { %v1974_v15 = vadd.f32 %v1958_v19, %v1847_v27  ;;  %v1975_v54 = vadd.f32 %v1959_v24, %v1848_v6  ;;  %v1458_v40 = vadd.f32 %v1442_v23, %v7078_v56  ;;  %v1459_v0 = vadd.f32 %v1443_v48, %v7081_v4 }
 0x44c   :  { %v1593_v61 = vadd.f32 %v7116_v10, %v1462_v30  ;;  %v1594_v42 = vadd.f32 %v7119_v43, %v1463_v51  ;;  %v1666_v53 = vsel %vm1662_vm5, %v7133_v44, 0.0  ;;  %v1667_v52 = vsel %vm1663_vm11, %v7127_v17, 0.0  ;;  %v8979_v30 = vld [vmem:[#allocation202_spill] sm:$0xff]  ;;  %v8980_v51 = vld [vmem:[#allocation48_spill] sm:$0xff]  ;;  %vm8989_vm11 = vmmov %vm8966_vm14 }
 0x44d   :  { %v7296_v37 = vadd.f32 %v2083_v5, %v1974_v15  ;;  %v7298_v59 = vadd.f32 %v2084_v60, %v1975_v54  ;;  %v1589_v27 = vadd.f32 %v1573_v35, %v1458_v40  ;;  %v1590_v56 = vadd.f32 %v1574_v16, %v1459_v0  ;;  %v8988_v54 = vld [vmem:[#allocation76_spill] sm:$0xff]  ;;  %v8990_v0 = vld [vmem:[#allocation3_spill] sm:$0xff]  ;;  %vm8994_vm5 = vmmov %vm8972_vm1 }
 0x44e   :  { %v1741_v23 = vpop.permute.xlu2 %1740  ;;  %v1718_v4 = vadd.f32 %v1702_v31, %v1593_v61  ;;  %v1719_v48 = vadd.f32 %v1703_v55, %v1594_v42  ;;  %v1698_v57 = vmul.f32 %v8984_v3, %v1666_v53  ;;  %v1699_v33 = vmul.f32 %v8984_v3, %v1667_v52  ;;  %v8992_v42 = vld [vmem:[#allocation205_spill] sm:$0xff]  ;;  %v8993_v52 = vld [vmem:[#allocation75_spill] sm:$0xff]  ;;  %vm9007_vm14 = vmmov %vm9001_vm0 }
 0x44f   :  { %v1739_v10 = vpop.permute.xlu1 %1738  ;;  %v1768_v43 = vsel %vm1762_vm4, %v1741_v23, %v8979_v30  ;;  %v1772_v6 = vsel %vm1762_vm4, %v8980_v51, %v1741_v23  ;;  %v8999_v51 = vld [vmem:[#allocation50_spill] sm:$0xff]  ;;  %v9004_v3 = vld [vmem:[#allocation79_spill] sm:$0xff]  ;;  %vm9008_vm15 = vcmp.eq.s32.totalorder %v6870_v18, 1  ;;  %vm9009_vm6 = vcmp.eq.s32.totalorder %v6890_v47, 1 }
 0x450   :  { %v1767_v44 = vsel %vm1762_vm4, %v1739_v10, %v8981_v58  ;;  %v1771_v17 = vsel %vm1762_vm4, %v8982_v1, %v1739_v10  ;;  %v1795_v36 = vsel %vm1787_vm8, %v1772_v6, 0.0  ;;  %v1796_v20 = vsel %vm1788_vm13, %v1768_v43, 0.0  ;;  %vm8991_vm4 = vmmov %vm8989_vm11  ;;  %v8998_v10 = vld [vmem:[#allocation12_spill] sm:$0xff] }
 0x451   :  { %v1791_v8 = vsel %vm1787_vm8, %v1771_v17, 0.0  ;;  %v1792_v12 = vsel %vm1788_vm13, %v1767_v44, 0.0  ;;  %v1827_v46 = vmul.f32 %v8983_v2, %v1795_v36  ;;  %v1828_v49 = vmul.f32 %v8983_v2, %v1796_v20  ;;  %v9000_v20 = vld [vmem:[#allocation34_spill] sm:$0xff]  ;;  %vm9003_vm8 = vmmov %vm9001_vm0 }
 0x452   :  { %v1823_v19 = vmul.f32 %v8985_v13, %v1791_v8  ;;  %v1824_v24 = vmul.f32 %v8985_v13, %v1792_v12  ;;  %v1714_v60 = vadd.f32 %v1698_v57, %v1589_v27  ;;  %v1715_v34 = vadd.f32 %v1699_v33, %v1590_v56  ;;  %v9002_v12 = vld [vmem:[#allocation78_spill] sm:$0xff]  ;;  %vm9005_vm13 = vmmov %vm9001_vm0 }
 0x453   :  { %v1843_v7 = vadd.f32 %v1827_v46, %v1718_v4  ;;  %v1844_v5 = vadd.f32 %v1828_v49, %v1719_v48  ;;  %v9006_v57 = vld [vmem:[#allocation74_spill] sm:$0xff]  ;;  %vm9010_vm12 = vmmov %vm9008_vm15 }
 0x454   :  { %v1839_v31 = vadd.f32 %v1823_v19, %v1714_v60  ;;  %v1840_v55 = vadd.f32 %v1824_v24, %v1715_v34  ;;  %vm9011_vm1 = vmmov %vm9009_vm6 }
 0x455   :  { %v1970_v35 = vadd.f32 %v8986_v32, %v1843_v7  ;;  %v1971_v16 = vadd.f32 %v8987_v63, %v1844_v5  ;;  %v9013_v5 = vld [vmem:[#allocation24_spill] sm:$0xff] }
 0x456   :  { %v1864_v9 = vpop.permute.xlu2 %1863 }
 0x457   :  { %v1997_v15 = vpop.permute.xlu1 %1996  ;;  %v1892_v40 = vsel %vm8989_vm11, %v1864_v9, %v8988_v54  ;;  %v1896_v61 = vsel %vm8991_vm4, %v8990_v0, %v1864_v9  ;;  %vm9016_vm11 = vmmov %vm9001_vm0 }
 0x458   :  { %v2022_v53 = vsel %vm2014_vm7, %v1997_v15, %v8992_v42  ;;  %v2026_v27 = vsel %vm2014_vm7, %v8993_v52, %v1997_v15  ;;  %v1918_v56 = vsel %vm8994_vm5, %v1896_v61, 0.0  ;;  %v1919_v23 = vsel %vm8995_vm10, %v1892_v40, 0.0  ;;  %v9015_v61 = vld [vmem:[#allocation86_spill] sm:$0xff]  ;;  %vm9019_vm4 = vmmov %vm9010_vm12 }
 0x459   :  { %v2055_v4 = vsel %vm8996_vm2, %v2026_v27, 0.0  ;;  %v2056_v48 = vsel %vm8997_vm3, %v2022_v53, 0.0  ;;  %v1950_v30 = vmul.f32 %v8998_v10, %v1918_v56  ;;  %v1951_v43 = vmul.f32 %v8998_v10, %v1919_v23  ;;  %v9017_v53 = vld [vmem:[#allocation38_spill] sm:$0xff]  ;;  %v9018_v27 = vld [vmem:[#allocation95_spill] sm:$0xff]  ;;  %vm9020_vm5 = vmmov %vm9011_vm1 }
 0x45a   :  { %v2087_v6 = vmul.f32 %v8999_v51, %v2055_v4  ;;  %v2088_v58 = vmul.f32 %v8999_v51, %v2056_v48  ;;  %vm9021_vm10 = vmmov %vm8996_vm2 }
 0x45b   :  { %v1966_v44 = vadd.f32 %v1950_v30, %v1839_v31  ;;  %v1967_v41 = vadd.f32 %v1951_v43, %v1840_v55  ;;  %vm9022_vm2 = vmmov %vm8997_vm3 }
 0x45c   :  { %v2103_v46 = vadd.f32 %v2087_v6, %v7253_v25  ;;  %v2104_v49 = vadd.f32 %v2088_v58, %v7256_v45  ;;  %v9012_v45 = vld [vmem:[#allocation93_spill] sm:$0xff] }
 0x45d   :  { %v2091_v1 = vadd.f32 %v6856_v22, %v1966_v44  ;;  %v2092_v28 = vadd.f32 %v6858_v39, %v1967_v41 }
 0x45e   :  { %v2122_v17 = vpop.permute.xlu2 %2121 }
 0x45f   :  { %v2120_v36 = vpop.permute.xlu1 %2119  ;;  %v2147_v8 = vsel %vm9001_vm0, %v2122_v17, %v9000_v20  ;;  %v2151_v2 = vsel %vm9003_vm8, %v9002_v12, %v2122_v17 }
 0x460   :  { %v2146_v22 = vsel %vm9005_vm13, %v2120_v36, %v9004_v3  ;;  %v2150_v39 = vsel %vm9007_vm14, %v9006_v57, %v2120_v36  ;;  %v2182_v33 = vsel %vm9008_vm15, %v2151_v2, 0.0  ;;  %v2183_v13 = vsel %vm9009_vm6, %v2147_v8, 0.0 }
 0x461   :  { %v2178_v19 = vsel %vm9010_vm12, %v2150_v39, 0.0  ;;  %v2179_v25 = vsel %vm9011_vm1, %v2146_v22, 0.0  ;;  %v2214_v24 = vmul.f32 %v9012_v45, %v2182_v33  ;;  %v2215_v7 = vmul.f32 %v9012_v45, %v2183_v13 }
 0x462   :  { %v2210_v60 = vmul.f32 %v9013_v5, %v2178_v19  ;;  %v2211_v34 = vmul.f32 %v9013_v5, %v2179_v25  ;;  %vm2542_vm14 = vcmask 244912   ;;  %vm2586_vm15 = vcmask 64512  }
 0x463   :  { %v2230_v32 = vadd.f32 %v2214_v24, %v2103_v46  ;;  %v2231_v63 = vadd.f32 %v2215_v7, %v2104_v49 }
 0x464   :  { %v2226_v9 = vadd.f32 %v2210_v60, %v7296_v37  ;;  %v2227_v31 = vadd.f32 %v2211_v34, %v7298_v59 }
 0x466   :  { %v2116_v55 = vpop.permute.xlu2 %2115  ;;  %v2243_v15 = vpack.c.bf16 %v2230_v32, %v2226_v9  ;;  %v2244_v54 = vpack.c.bf16 %v2231_v63, %v2227_v31 }
 0x467   :  { %v1993_v40 = vpop.permute.xlu1 %1992  ;;  %v2144_v0 = vsel %vm9014_vm9, %v2116_v55, %v6895_v38  ;;  %v2148_v42 = vsel %vm9016_vm11, %v9015_v61, %v2116_v55 }
 0x468   :  { %v2020_v52 = vsel %vm2014_vm7, %v1993_v40, %v9017_v53  ;;  %v2024_v37 = vsel %vm2014_vm7, %v9018_v27, %v1993_v40  ;;  %v2170_v59 = vsel %vm9019_vm4, %v2148_v42, 0.0  ;;  %v2171_v56 = vsel %vm9020_vm5, %v2144_v0, 0.0  ;;  %2285 = vmatpush.bf16.msrb.mxu0 %v2243_v15  ;;  %2304 = vmatpush.bf16.msrb.mxu1 %v2244_v54 }
 0x469   :  { %v2047_v38 = vsel %vm9021_vm10, %v2024_v37, 0.0  ;;  %v2048_v23 = vsel %vm9022_vm2, %v2020_v52, 0.0  ;;  %v2202_v4 = vmul.f32 %v6957_v14, %v2170_v59  ;;  %v2203_v48 = vmul.f32 %v6957_v14, %v2171_v56 }
 0x46a   :  { %v2079_v10 = vmul.f32 %v9023_v21, %v2047_v38  ;;  %v2080_v18 = vmul.f32 %v9023_v21, %v2048_v23  ;;  %vm9024_vm7 = vcmask 261120  }
 0x46b   :  { %v2218_v30 = vadd.f32 %v2202_v4, %v2091_v1  ;;  %v2219_v43 = vadd.f32 %v2203_v48, %v2092_v28  ;;  %vm9025_vm3 = vmmov %vm9024_vm7 }
 0x46c   :  { %v2095_v47 = vadd.f32 %v2079_v10, %v1970_v35  ;;  %v2096_v51 = vadd.f32 %v2080_v18, %v1971_v16  ;;  %vm9027_vm0 = vmmov %vm9025_vm3 }
 0x46d   :  { %vm9028_vm8 = vmmov %vm9027_vm0 }
 0x46e   :  { %v2222_v6 = vadd.f32 %v6959_v11, %v2095_v47  ;;  %v2223_v62 = vadd.f32 %v6961_v50, %v2096_v51 }
 0x46f   :  { %v7422_v14 = vpop.permute.xlu1 %2248 }
 0x470   :  { %v2239_v58 = vpack.c.bf16 %v2222_v6, %v2218_v30  ;;  %v2240_v44 = vpack.c.bf16 %v2223_v62, %v2219_v43  ;;  %v9029_v43 = vld [vmem:[#allocation7_spill] sm:$0xff] }
 0x472   :  { %2286 = vmatpush.bf16.msrb.mxu0 %v2239_v58  ;;  %2305 = vmatpush.bf16.msrb.mxu1 %v2240_v44 }
 0x473   :  { %v7426_v36 = vpop.permute.xlu2 %2252 }
 0x475   :  { %3357 = vmatmul.msk.bf16.vlgmr.msrb.gmra.mxu0 %vm9024_vm7, %v6985_v26  ;;  %3359 = vmatmul.msk.bf16.vlgmr.msrb.gmra.mxu1 %vm9025_vm3, %v6985_v26 }
 0x481   :  { %v7440_v25 = vpop.permute.xlu0 %2256 }
 0x485   :  { %3358 = vmatmul.msk.bf16.gmra.mxu0 %vm9027_vm0, %v9026_v29  ;;  %3360 = vmatmul.msk.bf16.gmra.mxu1 %vm9028_vm8, %v9026_v29 }
 0x495   :  { %v7456_v52 = vpop.permute.xlu1 %2260 }
 0x4ac   :  { %v2326_v11 = vpop.f32.mrf.mxu2  ;;  %v2345_v50 = vpop.f32.mrf.mxu3 }
 0x4ad   :  { %v2327_v35 = vadd.f32 %v2326_v11, %v7422_v14  ;;  %v2346_v16 = vadd.f32 %v2345_v50, %v7422_v14  ;;  %v9030_v11 = vld [vmem:[#allocation6_spill] sm:$0xff] }
 0x4af   :  { %v2357_v41 = vmul.f32 %v2327_v35, %v2327_v35  ;;  %v2358_v1 = vmul.f32 %v2346_v16, %v2346_v16 }
 0x4b1   :  { %v2373_v28 = vmul.f32 %v2357_v41, %v2327_v35  ;;  %v2374_v17 = vmul.f32 %v2358_v1, %v2346_v16 }
 0x4b3   :  { %v2389_v26 = vmul.f32 0.044715, %v2373_v28  ;;  %v2390_v20 = vmul.f32 0.044715, %v2374_v17 }
 0x4b4   :  { %v2328_v8 = vpop.f32.mrf.mxu2  ;;  %v2347_v12 = vpop.f32.mrf.mxu3 }
 0x4b5   :  { %v2405_v2 = vadd.f32 %v2389_v26, %v2327_v35  ;;  %v2406_v46 = vadd.f32 %v2390_v20, %v2346_v16  ;;  %v7429_v49 = vadd.f32 %v2328_v8, %v7426_v36  ;;  %v7432_v3 = vadd.f32 %v2347_v12, %v7426_v36 }
 0x4b7   :  { %v2421_v22 = vmul.f32 0.7978846, %v2405_v2  ;;  %v2422_v57 = vmul.f32 0.7978846, %v2406_v46  ;;  %v2361_v39 = vmul.f32 %v7429_v49, %v7429_v49  ;;  %v2362_v33 = vmul.f32 %v7432_v3, %v7432_v3 }
 0x4b9   :  { %3527 = vtanh.f32 %v2421_v22  ;;  %v2377_v13 = vmul.f32 %v2361_v39, %v7429_v49  ;;  %v2378_v19 = vmul.f32 %v2362_v33, %v7432_v3 }
 0x4ba   :  { %3529 = vtanh.f32 %v2422_v57  ;;  %v9031_v57 = vld [vmem:[#allocation9_spill] sm:$0xff] }
 0x4bb   :  { %v2393_v45 = vmul.f32 0.044715, %v2377_v13  ;;  %v2394_v24 = vmul.f32 0.044715, %v2378_v19 }
 0x4bc   :  { %v2331_v7 = vpop.f32.mrf.mxu2 }
 0x4bd   :  { %v2350_v5 = vpop.f32.mrf.mxu3  ;;  %v7443_v60 = vadd.f32 %v2331_v7, %v7440_v25  ;;  %v2409_v32 = vadd.f32 %v2393_v45, %v7429_v49  ;;  %v2410_v63 = vadd.f32 %v2394_v24, %v7432_v3  ;;  %v9032_v45 = vld [vmem:[#allocation11_spill] sm:$0xff] }
 0x4be   :  { %v7446_v34 = vadd.f32 %v2350_v5, %v7440_v25 }
 0x4bf   :  { %v3528_v9 = vpop.eup %3527  ;;  %v2365_v31 = vmul.f32 %v7443_v60, %v7443_v60  ;;  %v2425_v15 = vmul.f32 0.7978846, %v2409_v32  ;;  %v2426_v54 = vmul.f32 0.7978846, %v2410_v63 }
 0x4c0   :  { %v2366_v55 = vmul.f32 %v7446_v34, %v7446_v34  ;;  %v3530_v40 = vpop.eup %3529  ;;  %v2453_v0 = vadd.f32 1.0, %v3528_v9 }
 0x4c1   :  { %v2381_v61 = vmul.f32 %v2365_v31, %v7443_v60  ;;  %v2454_v53 = vadd.f32 1.0, %v3530_v40  ;;  %3531 = vtanh.f32 %v2425_v15  ;;  %v9034_v40 = vld [vmem:[#allocation23_spill] sm:$0xff] }
 0x4c2   :  { %v2382_v42 = vmul.f32 %v2366_v55, %v7446_v34  ;;  %v2469_v27 = vmul.f32 0.5, %v2453_v0  ;;  %3533 = vtanh.f32 %v2426_v54  ;;  %v9033_v55 = vld [vmem:[#allocation15_spill] sm:$0xff] }
 0x4c3   :  { %v2397_v37 = vmul.f32 0.044715, %v2381_v61  ;;  %v2470_v56 = vmul.f32 0.5, %v2454_v53 }
 0x4c4   :  { %v2398_v59 = vmul.f32 0.044715, %v2382_v42  ;;  %v2333_v38 = vpop.f32.mrf.mxu2  ;;  %v2485_v4 = vmul.f32 %v2469_v27, %v2327_v35 }
 0x4c5   :  { %v2352_v23 = vpop.f32.mrf.mxu3  ;;  %v2413_v48 = vadd.f32 %v2397_v37, %v7443_v60  ;;  %v2334_v10 = vadd.f32 %v2333_v38, %v7456_v52  ;;  %v2486_v30 = vmul.f32 %v2470_v56, %v2346_v16  ;;  %v9035_v38 = vld [vmem:[#allocation31_spill] sm:$0xff] }
 0x4c6   :  { %v2414_v21 = vadd.f32 %v2398_v59, %v7446_v34  ;;  %v2353_v18 = vadd.f32 %v2352_v23, %v7456_v52  ;;  %v7463_v47 = vadd.f32 %v2485_v4, %v9029_v43  ;;  %v9036_v23 = vld [vmem:[#allocation25_spill] sm:$0xff] }
 0x4c7   :  { %v3532_v51 = vpop.eup %3531  ;;  %v2429_v6 = vmul.f32 0.7978846, %v2413_v48  ;;  %v2369_v58 = vmul.f32 %v2334_v10, %v2334_v10  ;;  %v7466_v50 = vadd.f32 %v2486_v30, %v9030_v11 }
 0x4c8   :  { %v2430_v62 = vmul.f32 0.7978846, %v2414_v21  ;;  %v2370_v44 = vmul.f32 %v2353_v18, %v2353_v18  ;;  %v3534_v29 = vpop.eup %3533  ;;  %v2457_v35 = vadd.f32 1.0, %v3532_v51 }
 0x4c9   :  { %3535 = vtanh.f32 %v2429_v6  ;;  %v2385_v41 = vmul.f32 %v2369_v58, %v2334_v10  ;;  %v2458_v28 = vadd.f32 1.0, %v3534_v29  ;;  %v2707_v16 = vadd.f32 %v7466_v50, %v7463_v47 }
 0x4ca   :  { %v2386_v1 = vmul.f32 %v2370_v44, %v2353_v18  ;;  %3537 = vtanh.f32 %v2430_v62  ;;  %v2473_v17 = vmul.f32 0.5, %v2457_v35 }
 0x4cb   :  { %v2401_v26 = vmul.f32 0.044715, %v2385_v41  ;;  %v2474_v8 = vmul.f32 0.5, %v2458_v28  ;;  %2708 = vadd.xlane.f32.xlu2 %v2707_v16 }
 0x4cc   :  { %v2402_v20 = vmul.f32 0.044715, %v2386_v1  ;;  %v2489_v12 = vmul.f32 %v2473_v17, %v7429_v49 }
 0x4cd   :  { %v2417_v2 = vadd.f32 %v2401_v26, %v2334_v10  ;;  %v2490_v22 = vmul.f32 %v2474_v8, %v7432_v3 }
 0x4ce   :  { %v2418_v46 = vadd.f32 %v2402_v20, %v2353_v18  ;;  %v7473_v39 = vadd.f32 %v2489_v12, %v9031_v57 }
 0x4cf   :  { %v3536_v33 = vpop.eup %3535  ;;  %v2433_v13 = vmul.f32 0.7978846, %v2417_v2  ;;  %v7476_v24 = vadd.f32 %v2490_v22, %v9032_v45 }
 0x4d0   :  { %v2434_v19 = vmul.f32 0.7978846, %v2418_v46  ;;  %v3538_v7 = vpop.eup %3537  ;;  %v2461_v5 = vadd.f32 1.0, %v3536_v33 }
 0x4d1   :  { %3539 = vtanh.f32 %v2433_v13  ;;  %v2710_v32 = vadd.f32 %v7476_v24, %v7473_v39  ;;  %v2462_v49 = vadd.f32 1.0, %v3538_v7 }
 0x4d2   :  { %3541 = vtanh.f32 %v2434_v19  ;;  %v2477_v63 = vmul.f32 0.5, %v2461_v5 }
 0x4d3   :  { %2711 = vadd.xlane.f32.xlu1 %v2710_v32  ;;  %v2478_v3 = vmul.f32 0.5, %v2462_v49 }
 0x4d4   :  { %v2493_v9 = vmul.f32 %v2477_v63, %v7443_v60 }
 0x4d5   :  { %v2494_v31 = vmul.f32 %v2478_v3, %v7446_v34 }
 0x4d6   :  { %v7483_v15 = vadd.f32 %v2493_v9, %v9033_v55 }
 0x4d7   :  { %v3540_v54 = vpop.eup %3539  ;;  %v7486_v0 = vadd.f32 %v2494_v31, %v9034_v40 }
 0x4d8   :  { %v3542_v61 = vpop.eup %3541  ;;  %v2465_v42 = vadd.f32 1.0, %v3540_v54 }
 0x4d9   :  { %v2713_v53 = vadd.f32 %v7486_v0, %v7483_v15  ;;  %v2466_v27 = vadd.f32 1.0, %v3542_v61 }
 0x4da   :  { %v2481_v37 = vmul.f32 0.5, %v2465_v42 }
 0x4db   :  { %2714 = vadd.xlane.f32.xlu0 %v2713_v53  ;;  %v2482_v59 = vmul.f32 0.5, %v2466_v27 }
 0x4dc   :  { %v2497_v56 = vmul.f32 %v2481_v37, %v2334_v10 }
 0x4dd   :  { %v2498_v60 = vmul.f32 %v2482_v59, %v2353_v18 }
 0x4de   :  { %v7491_v34 = vadd.f32 %v2497_v56, %v9035_v38  ;;  %v9037_v38 = vld [vmem:[#allocation4_spill] sm:$0xff] }
 0x4df   :  { %v7494_v4 = vadd.f32 %v2498_v60, %v9036_v23 }
 0x4e1   :  { %v2716_v48 = vadd.f32 %v7494_v4, %v7491_v34 }
 0x4e3   :  { %2717 = vadd.xlane.f32.xlu2 %v2716_v48 }
 0x4f2   :  { %v2288_v21 = vpop.f32.mrf.mxu0  ;;  %v2307_v30 = vpop.f32.mrf.mxu1 }
 0x4f3   :  { %v2289_v43 = vadd.f32 %v2288_v21, %v7422_v14  ;;  %v2308_v51 = vadd.f32 %v2307_v30, %v7422_v14 }
 0x4f5   :  { %v2355_v6 = vmul.f32 %v2289_v43, %v2289_v43  ;;  %v2356_v62 = vmul.f32 %v2308_v51, %v2308_v51 }
 0x4f7   :  { %v2371_v10 = vmul.f32 %v2355_v6, %v2289_v43  ;;  %v2372_v18 = vmul.f32 %v2356_v62, %v2308_v51 }
 0x4f9   :  { %v2387_v58 = vmul.f32 0.044715, %v2371_v10  ;;  %v2388_v44 = vmul.f32 0.044715, %v2372_v18  ;;  %v9038_v18 = vld [vmem:[#allocation5_spill] sm:$0xff] }
 0x4fa   :  { %v2290_v29 = vpop.f32.mrf.mxu0  ;;  %v2309_v11 = vpop.f32.mrf.mxu1 }
 0x4fb   :  { %v2403_v35 = vadd.f32 %v2387_v58, %v2289_v43  ;;  %v2404_v41 = vadd.f32 %v2388_v44, %v2308_v51  ;;  %v2291_v1 = vadd.f32 %v2290_v29, %v7426_v36  ;;  %v7502_v28 = vadd.f32 %v2309_v11, %v7426_v36 }
 0x4fd   :  { %v2419_v16 = vmul.f32 0.7978846, %v2403_v35  ;;  %v2420_v17 = vmul.f32 0.7978846, %v2404_v41  ;;  %v2359_v26 = vmul.f32 %v2291_v1, %v2291_v1  ;;  %v2360_v14 = vmul.f32 %v7502_v28, %v7502_v28 }
 0x4ff   :  { %3543 = vtanh.f32 %v2419_v16  ;;  %v2375_v20 = vmul.f32 %v2359_v26, %v2291_v1  ;;  %v2376_v8 = vmul.f32 %v2360_v14, %v7502_v28 }
 0x500   :  { %3545 = vtanh.f32 %v2420_v17 }
 0x501   :  { %v2391_v12 = vmul.f32 0.044715, %v2375_v20  ;;  %v2392_v2 = vmul.f32 0.044715, %v2376_v8  ;;  %v9039_v8 = vld [vmem:[#allocation8_spill] sm:$0xff] }
 0x502   :  { %v2293_v46 = vpop.f32.mrf.mxu0  ;;  %v2312_v22 = vpop.f32.mrf.mxu1 }
 0x503   :  { %v2407_v57 = vadd.f32 %v2391_v12, %v2291_v1  ;;  %v2408_v33 = vadd.f32 %v2392_v2, %v7502_v28  ;;  %v7509_v36 = vadd.f32 %v2293_v46, %v7440_v25  ;;  %v7512_v13 = vadd.f32 %v2312_v22, %v7440_v25 }
 0x505   :  { %v3544_v19 = vpop.eup %3543  ;;  %v2423_v45 = vmul.f32 0.7978846, %v2407_v57  ;;  %v2424_v7 = vmul.f32 0.7978846, %v2408_v33  ;;  %v2363_v5 = vmul.f32 %v7509_v36, %v7509_v36  ;;  %v2364_v32 = vmul.f32 %v7512_v13, %v7512_v13  ;;  %v9040_v57 = vld [vmem:[#allocation10_spill] sm:$0xff] }
 0x506   :  { %v3546_v49 = vpop.eup %3545  ;;  %v2451_v63 = vadd.f32 1.0, %v3544_v19 }
 0x507   :  { %3547 = vtanh.f32 %v2423_v45  ;;  %v2379_v3 = vmul.f32 %v2363_v5, %v7509_v36  ;;  %v2380_v9 = vmul.f32 %v2364_v32, %v7512_v13  ;;  %v2452_v31 = vadd.f32 1.0, %v3546_v49 }
 0x508   :  { %3549 = vtanh.f32 %v2424_v7  ;;  %v2467_v25 = vmul.f32 0.5, %v2451_v63  ;;  %v9041_v63 = vld [vmem:[#allocation17_spill] sm:$0xff] }
 0x509   :  { %v2395_v55 = vmul.f32 0.044715, %v2379_v3  ;;  %v2396_v54 = vmul.f32 0.044715, %v2380_v9  ;;  %v2468_v40 = vmul.f32 0.5, %v2452_v31  ;;  %v9042_v31 = vld [vmem:[#allocation13_spill] sm:$0xff] }
 0x50a   :  { %v2295_v61 = vpop.f32.mrf.mxu0  ;;  %v2314_v42 = vpop.f32.mrf.mxu1  ;;  %v2483_v53 = vmul.f32 %v2467_v25, %v2289_v43 }
 0x50b   :  { %v2411_v27 = vadd.f32 %v2395_v55, %v7509_v36  ;;  %v2412_v37 = vadd.f32 %v2396_v54, %v7512_v13  ;;  %v2296_v59 = vadd.f32 %v2295_v61, %v7456_v52  ;;  %v2315_v56 = vadd.f32 %v2314_v42, %v7456_v52 }
 0x50c   :  { %v2484_v60 = vmul.f32 %v2468_v40, %v2308_v51  ;;  %v7525_v23 = vadd.f32 %v2483_v53, %v9037_v38 }
 0x50d   :  { %v3548_v48 = vpop.eup %3547  ;;  %v2427_v21 = vmul.f32 0.7978846, %v2411_v27  ;;  %v2428_v30 = vmul.f32 0.7978846, %v2412_v37  ;;  %v2367_v6 = vmul.f32 %v2296_v59, %v2296_v59  ;;  %v2368_v62 = vmul.f32 %v2315_v56, %v2315_v56  ;;  %v9043_v37 = vld [vmem:[#allocation19_spill] sm:$0xff] }
 0x50e   :  { %v3550_v10 = vpop.eup %3549  ;;  %v7528_v43 = vadd.f32 %v2484_v60, %v9038_v18  ;;  %v2455_v58 = vadd.f32 1.0, %v3548_v48  ;;  %v9044_v60 = vld [vmem:[#allocation21_spill] sm:$0xff] }
 0x50f   :  { %3551 = vtanh.f32 %v2427_v21  ;;  %v2383_v44 = vmul.f32 %v2367_v6, %v2296_v59  ;;  %v2384_v29 = vmul.f32 %v2368_v62, %v2315_v56  ;;  %v2456_v11 = vadd.f32 1.0, %v3550_v10  ;;  %v7562_v21 = vld [vmem:[%s7926_s3] sm:$0xff] }
 0x510   :  { %3553 = vtanh.f32 %v2428_v30  ;;  %v2515_v52 = vadd.f32 %v7528_v43, %v7525_v23  ;;  %v2471_v51 = vmul.f32 0.5, %v2455_v58 }
 0x511   :  { %v2399_v35 = vmul.f32 0.044715, %v2383_v44  ;;  %v2400_v41 = vmul.f32 0.044715, %v2384_v29  ;;  %v2472_v16 = vmul.f32 0.5, %v2456_v11 }
 0x512   :  { %2516 = vadd.xlane.f32.xlu2 %v2515_v52  ;;  %v2487_v17 = vmul.f32 %v2471_v51, %v2291_v1 }
 0x513   :  { %v2415_v26 = vadd.f32 %v2399_v35, %v2296_v59  ;;  %v2416_v14 = vadd.f32 %v2400_v41, %v2315_v56  ;;  %v2488_v20 = vmul.f32 %v2472_v16, %v7502_v28  ;;  %v7569_v41 = vld [vmem:[%s7926_s3 + $0x8] sm:$0xff] }
 0x514   :  { %v7534_v12 = vadd.f32 %v2487_v17, %v9039_v8 }
 0x515   :  { %v3552_v2 = vpop.eup %3551  ;;  %v2431_v46 = vmul.f32 0.7978846, %v2415_v26  ;;  %v2432_v22 = vmul.f32 0.7978846, %v2416_v14  ;;  %v7537_v33 = vadd.f32 %v2488_v20, %v9040_v57  ;;  %v7576_v14 = vld [vmem:[%s7926_s3 + $0x10] sm:$0xff] }
 0x516   :  { %v3554_v19 = vpop.eup %3553  ;;  %v2459_v45 = vadd.f32 1.0, %v3552_v2  ;;  %v9045_v2 = vld [vmem:[#allocation81_spill] sm:$0xff] }
 0x517   :  { %3555 = vtanh.f32 %v2431_v46  ;;  %v2518_v7 = vadd.f32 %v7537_v33, %v7534_v12  ;;  %v2460_v1 = vadd.f32 1.0, %v3554_v19 }
 0x518   :  { %3557 = vtanh.f32 %v2432_v22  ;;  %v2475_v5 = vmul.f32 0.5, %v2459_v45 }
 0x519   :  { %2519 = vadd.xlane.f32.xlu1 %v2518_v7  ;;  %v2476_v28 = vmul.f32 0.5, %v2460_v1 }
 0x51a   :  { %v2491_v32 = vmul.f32 %v2475_v5, %v7509_v36 }
 0x51b   :  { %v2492_v49 = vmul.f32 %v2476_v28, %v7512_v13 }
 0x51c   :  { %v7544_v3 = vadd.f32 %v2491_v32, %v9041_v63 }
 0x51d   :  { %v3556_v9 = vpop.eup %3555  ;;  %v7547_v25 = vadd.f32 %v2492_v49, %v9042_v31 }
 0x51e   :  { %v3558_v55 = vpop.eup %3557  ;;  %v2463_v54 = vadd.f32 1.0, %v3556_v9 }
 0x51f   :  { %v2521_v40 = vadd.f32 %v7547_v25, %v7544_v3  ;;  %v2464_v61 = vadd.f32 1.0, %v3558_v55 }
 0x520   :  { %v2479_v42 = vmul.f32 0.5, %v2463_v54 }
 0x521   :  { %2522 = vadd.xlane.f32.xlu2 %v2521_v40  ;;  %v2480_v53 = vmul.f32 0.5, %v2464_v61 }
 0x522   :  { %v2495_v27 = vmul.f32 %v2479_v42, %v2296_v59  ;;  %v3694_v59 = vmov 256.0  }
 0x523   :  { %v2496_v36 = vmul.f32 %v2480_v53, %v2315_v56  ;;  %3559 = vrcp.f32 %v3694_v59 }
 0x524   :  { %v7552_v13 = vadd.f32 %v2495_v27, %v9043_v37 }
 0x525   :  { %v7555_v38 = vadd.f32 %v2496_v36, %v9044_v60 }
 0x527   :  { %v2524_v48 = vadd.f32 %v7555_v38, %v7552_v13 }
 0x529   :  { %2525 = vadd.xlane.f32.xlu0 %v2524_v48  ;;  %v3560_v56 = vpop.eup %3559 }
 0x52a   :  { %v2528_v30 = vmul.f32 256.0, %v3560_v56  ;;  %vm2532_vm13 = vweird.f32 %v3560_v56 }
 0x52c   :  { %v2529_v6 = vsub.f32 1.0, %v2528_v30 }
 0x52e   :  { %v2530_v62 = vmul.f32 %v3560_v56, %v2529_v6 }
 0x530   :  { %v2531_v18 = vadd.f32 %v3560_v56, %v2530_v62 }
 0x532   :  { %2556 = vrot.lane.b32.xlu1 %v7562_v21, %s3673_s15  ;;  %v2533_v44 = vsel %vm2532_vm13, %v3560_v56, %v2531_v18  ;;  %v7593_v56 = vld [vmem:[%s7926_s3 + $0x18] sm:$0xff] }
 0x53e   :  { %v2709_v10 = vpop.xlane.xlu2 %2708 }
 0x53f   :  { %v2719_v51 = vmul.f32 %v2709_v10, %v2533_v44 }
 0x541   :  { %v2723_v26 = vmul.f32 %v7562_v21, %v2719_v51 }
 0x543   :  { %v2727_v22 = vsel %vm2542_vm14, %v2723_v26, 0.0 }
 0x546   :  { %v2712_v58 = vpop.xlane.xlu1 %2711 }
 0x547   :  { %v2720_v11 = vmul.f32 %v2712_v58, %v2533_v44 }
 0x549   :  { %v2724_v16 = vmul.f32 %v7569_v41, %v2720_v11 }
 0x54b   :  { %v2728_v8 = vsel %vm2542_vm14, %v2724_v16, 0.0 }
 0x54c   :  { %v2729_v19 = vadd.f32 %v2728_v8, %v2727_v22 }
 0x54e   :  { %v2715_v29 = vpop.xlane.xlu0 %2714 }
 0x54f   :  { %v2721_v35 = vmul.f32 %v2715_v29, %v2533_v44 }
 0x551   :  { %v2725_v20 = vmul.f32 %v7576_v14, %v2721_v35 }
 0x553   :  { %v2730_v57 = vsel %vm2542_vm14, %v2725_v20, 0.0 }
 0x554   :  { %v2731_v7 = vadd.f32 %v2730_v57, %v2729_v19 }
 0x556   :  { %v2718_v52 = vpop.xlane.xlu2 %2717 }
 0x557   :  { %v2722_v17 = vmul.f32 %v2718_v52, %v2533_v44 }
 0x559   :  { %v2726_v46 = vmul.f32 %v9045_v2, %v2722_v17 }
 0x55b   :  { %v2732_v45 = vsel %vm2542_vm14, %v2726_v46, 0.0 }
 0x55c   :  { %v2733_v1 = vadd.f32 %v2732_v45, %v2731_v7 }
 0x55e   :  { %v2734_v28 = vrot.slane %v2733_v1, 4 }
 0x560   :  { %v2735_v49 = vadd.f32 %v2734_v28, %v2733_v1 }
 0x562   :  { %v2736_v40 = vrot.slane %v2735_v49, 2 }
 0x564   :  { %v2737_v27 = vadd.f32 %v2736_v40, %v2735_v49 }
 0x566   :  { %v2738_v6 = vrot.slane %v2737_v27, 1 }
 0x568   :  { %v2739_v58 = vadd.f32 %v2738_v6, %v2737_v27 }
 0x585   :  { %v2517_v5 = vpop.xlane.xlu2 %2516 }
 0x586   :  { %v2534_v31 = vmul.f32 %v2533_v44, %v2517_v5 }
 0x588   :  { %v2538_v61 = vmul.f32 %v7562_v21, %v2534_v31 }
 0x58a   :  { %v2543_v37 = vsel %vm2542_vm14, %v2538_v61, 0.0 }
 0x58c   :  { %v2520_v32 = vpop.xlane.xlu1 %2519 }
 0x58d   :  { %v2535_v63 = vmul.f32 %v2533_v44, %v2520_v32 }
 0x58f   :  { %v2539_v54 = vmul.f32 %v7569_v41, %v2535_v63 }
 0x591   :  { %v2544_v53 = vsel %vm2542_vm14, %v2539_v54, 0.0 }
 0x592   :  { %v2545_v59 = vadd.f32 %v2544_v53, %v2543_v37 }
 0x594   :  { %v2523_v9 = vpop.xlane.xlu2 %2522 }
 0x595   :  { %v2536_v55 = vmul.f32 %v2533_v44, %v2523_v9 }
 0x597   :  { %v2540_v42 = vmul.f32 %v7576_v14, %v2536_v55 }
 0x599   :  { %v2546_v60 = vsel %vm2542_vm14, %v2540_v42, 0.0 }
 0x59a   :  { %v2547_v62 = vadd.f32 %v2546_v60, %v2545_v59 }
 0x59c   :  { %v2526_v36 = vpop.xlane.xlu0 %2525 }
 0x59d   :  { %v2537_v48 = vmul.f32 %v2533_v44, %v2526_v36 }
 0x59f   :  { %v2541_v30 = vmul.f32 %v7593_v56, %v2537_v48 }
 0x5a1   :  { %v2548_v10 = vsel %vm2542_vm14, %v2541_v30, 0.0 }
 0x5a2   :  { %v2549_v18 = vadd.f32 %v2548_v10, %v2547_v62  ;;  %v3696_v62 = vmov 21  }
 0x5a3   :  { %3520 = vset.pattern.permute.xlu1 %v3696_v62  ;;  %3518 = vset.pattern.permute.xlu0 %v3696_v62 }
 0x5a4   :  { %v2550_v29 = vrot.slane %v2549_v18, 4  ;;  %v2557_v11 = vpop.permute.xlu1 %2556  ;;  %3519 = vset.pattern.permute.xlu2 %v3696_v62 }
 0x5a5   :  { %v2740_v52 = vadd.f32 %v2739_v58, %v2557_v11 }
 0x5a6   :  { %v2551_v51 = vadd.f32 %v2550_v29, %v2549_v18 }
 0x5a7   :  { %v2741_v35 = vmax.f32 %v2740_v52, 0.0 }
 0x5a8   :  { %v2552_v44 = vrot.slane %v2551_v51, 2 }
 0x5a9   :  { %v2742_v16 = vperm.slane %v2741_v35, 0 }
 0x5aa   :  { %v2553_v17 = vadd.f32 %v2552_v44, %v2551_v51 }
 0x5ab   :  { %2744 = vrot.lane.b32.xlu2 %v2742_v16, %s3695_s7 }
 0x5ac   :  { %v2554_v26 = vrot.slane %v2553_v17, 1 }
 0x5ae   :  { %v2555_v20 = vadd.f32 %v2554_v26, %v2553_v17 }
 0x5b0   :  { %v2559_v8 = vadd.f32 %v2557_v11, %v2555_v20 }
 0x5b2   :  { %v2560_v2 = vmax.f32 %v2559_v8, 0.0 }
 0x5b4   :  { %v2561_v46 = vperm.slane %v2560_v2, 0 }
 0x5b6   :  { %2563 = vrot.lane.b32.xlu0 %v2561_v46, %s3695_s7 }
 0x605   :  { %v2745_v22 = vpop.permute.xlu2 %2744 }
 0x606   :  { %v2747_v57 = vmul.f32 %v7562_v21, %v2745_v22  ;;  %v2749_v19 = vmul.f32 %v7576_v14, %v2745_v22  ;;  %v2750_v45 = vmul.f32 %v7593_v56, %v2745_v22  ;;  %v2748_v7 = vmul.f32 %v7569_v41, %v2745_v22 }
 0x608   :  { %2761 = vrot.lane.b32.xlu0 %v2750_v45, %s3686_s30  ;;  %2759 = vrot.lane.b32.xlu1 %v2749_v19, %s3686_s30 }
 0x609   :  { %2755 = vrot.lane.b32.xlu2 %v2747_v57, %s3686_s30 }
 0x610   :  { %2757 = vrot.lane.b32.xlu1 %v2748_v7, %s3686_s30 }
 0x628   :  { %v2564_v1 = vpop.permute.xlu0 %2563 }
 0x629   :  { %v2566_v5 = vmul.f32 %v7562_v21, %v2564_v1  ;;  %v2568_v28 = vmul.f32 %v7576_v14, %v2564_v1  ;;  %v2569_v32 = vmul.f32 %v7593_v56, %v2564_v1  ;;  %v2567_v49 = vmul.f32 %v7569_v41, %v2564_v1 }
 0x62b   :  { %2578 = vrot.lane.b32.xlu0 %v2568_v28, %s3686_s30  ;;  %2574 = vrot.lane.b32.xlu1 %v2566_v5, %s3686_s30 }
 0x62c   :  { %2580 = vrot.lane.b32.xlu2 %v2569_v32, %s3686_s30 }
 0x633   :  { %2576 = vrot.lane.b32.xlu0 %v2567_v49, %s3686_s30 }
 0x663   :  { %v2756_v63 = vpop.permute.xlu2 %2755 }
 0x664   :  { %v2767_v9 = vsel %vm2586_vm15, %v2756_v63, 0.0 }
 0x665   :  { %2768 = vadd.xlane.f32.xlu0 %v2767_v9 }
 0x67a   :  { %v2762_v31 = vpop.permute.xlu0 %2761  ;;  %v2760_v55 = vpop.permute.xlu1 %2759 }
 0x67b   :  { %v2776_v54 = vsel %vm2586_vm15, %v2762_v31, 0.0  ;;  %v2773_v40 = vsel %vm2586_vm15, %v2760_v55, 0.0 }
 0x67c   :  { %2777 = vadd.xlane.f32.xlu1 %v2776_v54  ;;  %2774 = vadd.xlane.f32.xlu2 %v2773_v40 }
 0x682   :  { %v2758_v61 = vpop.permute.xlu1 %2757 }
 0x683   :  { %v2770_v42 = vsel %vm2586_vm15, %v2758_v61, 0.0 }
 0x684   :  { %2771 = vadd.xlane.f32.xlu2 %v2770_v42 }
 0x686   :  { %v2581_v53 = vpop.permute.xlu2 %2580 }
 0x687   :  { %v2596_v27 = vsel %vm2586_vm15, %v2581_v53, 0.0 }
 0x688   :  { %2597 = vadd.xlane.f32.xlu0 %v2596_v27 }
 0x69d   :  { %v2579_v36 = vpop.permute.xlu0 %2578  ;;  %v2575_v37 = vpop.permute.xlu1 %2574 }
 0x69e   :  { %v2593_v60 = vsel %vm2586_vm15, %v2579_v36, 0.0  ;;  %v2587_v48 = vsel %vm2586_vm15, %v2575_v37, 0.0 }
 0x69f   :  { %2594 = vadd.xlane.f32.xlu1 %v2593_v60  ;;  %2588 = vadd.xlane.f32.xlu2 %v2587_v48 }
 0x6a5   :  { %v2577_v59 = vpop.permute.xlu0 %2576 }
 0x6a6   :  { %v2590_v30 = vsel %vm2586_vm15, %v2577_v59, 0.0 }
 0x6a7   :  { %2591 = vadd.xlane.f32.xlu1 %v2590_v30 }
 0x6d8   :  { %v2769_v6 = vpop.xlane.xlu0 %2768 }
 0x6d9   :  { %v2779_v10 = vadd.f32 %v7562_v21, %v2769_v6 }
 0x6db   :  { %v3369_v18 = vmul.f32 -1.442695, %v2779_v10 }
 0x6dd   :  { %3561 = vpow2.f32 %v3369_v18 }
 0x6e3   :  { %v3562_v58 = vpop.eup %3561 }
 0x6e4   :  { %v2795_v29 = vadd.f32 1.0, %v3562_v58 }
 0x6e6   :  { %3563 = vrcp.f32 %v2795_v29  ;;  %v2810_v26 = vand.u32 2147483648, %v2795_v29  ;;  %v2808_v8 = vand.u32 2147483647, %v2795_v29  ;;  %vm2804_vm12 = vweird.f32 %v2795_v29 }
 0x6e8   :  { %v2811_v57 = vor.u32 1.1754944e-38, %v2810_v26  ;;  %vm2809_vm9 = vcmp.eq.f32.partialorder %v2808_v8, 8.507059e+37 }
 0x6ec   :  { %v3564_v11 = vpop.eup %3563 }
 0x6ed   :  { %v2800_v52 = vmul.f32 %v3564_v11, %v2795_v29  ;;  %vm2805_vm6 = vweird.f32 %v3564_v11 }
 0x6ee   :  { %vm2806_vm1 = vmor %vm2804_vm12, %vm2805_vm6 }
 0x6ef   :  { %v2778_v51 = vpop.xlane.xlu1 %2777  ;;  %v2775_v35 = vpop.xlane.xlu2 %2774  ;;  %v2801_v44 = vsub.f32 1.0, %v2800_v52 }
 0x6f0   :  { %v2782_v16 = vadd.f32 %v7593_v56, %v2778_v51  ;;  %v2781_v17 = vadd.f32 %v7576_v14, %v2775_v35 }
 0x6f1   :  { %v2802_v20 = vmul.f32 %v3564_v11, %v2801_v44 }
 0x6f2   :  { %v3372_v2 = vmul.f32 -1.442695, %v2782_v16  ;;  %v3371_v46 = vmul.f32 -1.442695, %v2781_v17 }
 0x6f3   :  { %v2803_v22 = vadd.f32 %v3564_v11, %v2802_v20 }
 0x6f4   :  { %3565 = vpow2.f32 %v3372_v2 }
 0x6f5   :  { %3567 = vpow2.f32 %v3371_v46  ;;  %v2807_v19 = vsel %vm2806_vm1, %v3564_v11, %v2803_v22 }
 0x6f6   :  { %v2812_v45 = vsel %vm2809_vm9, %v2811_v57, %v2807_v19 }
 0x6f7   :  { %2861 = vperm.xlu1 %3520, %v2812_v45   ;;  %v2772_v7 = vpop.xlane.xlu2 %2771 }
 0x6f8   :  { %v2780_v1 = vadd.f32 %v7569_v41, %v2772_v7 }
 0x6fa   :  { %v3566_v5 = vpop.eup %3565  ;;  %v3370_v28 = vmul.f32 -1.442695, %v2780_v1 }
 0x6fb   :  { %v3568_v32 = vpop.eup %3567  ;;  %v2798_v49 = vadd.f32 1.0, %v3566_v5  ;;  %v2598_v63 = vpop.xlane.xlu0 %2597 }
 0x6fc   :  { %v2797_v9 = vadd.f32 1.0, %v3568_v32  ;;  %3569 = vpow2.f32 %v3370_v28  ;;  %v2602_v31 = vadd.f32 %v7593_v56, %v2598_v63 }
 0x6fd   :  { %3571 = vrcp.f32 %v2798_v49  ;;  %v2855_v48 = vand.u32 2147483648, %v2798_v49  ;;  %v2853_v6 = vand.u32 2147483647, %v2798_v49  ;;  %vm2849_vm5 = vweird.f32 %v2798_v49 }
 0x6fe   :  { %3573 = vrcp.f32 %v2797_v9  ;;  %v3368_v55 = vmul.f32 -1.442695, %v2602_v31  ;;  %v2840_v62 = vand.u32 2147483648, %v2797_v9  ;;  %v2838_v18 = vand.u32 2147483647, %v2797_v9 }
 0x6ff   :  { %v2856_v11 = vor.u32 1.1754944e-38, %v2855_v48  ;;  %vm2834_vm2 = vweird.f32 %v2797_v9  ;;  %vm2854_vm7 = vcmp.eq.f32.partialorder %v2853_v6, 8.507059e+37 }
 0x700   :  { %3575 = vpow2.f32 %v3368_v55  ;;  %v2841_v35 = vor.u32 1.1754944e-38, %v2840_v62  ;;  %vm2839_vm0 = vcmp.eq.f32.partialorder %v2838_v18, 8.507059e+37 }
 0x702   :  { %v3570_v54 = vpop.eup %3569 }
 0x703   :  { %v3572_v40 = vpop.eup %3571  ;;  %v2796_v61 = vadd.f32 1.0, %v3570_v54 }
 0x704   :  { %v3574_v42 = vpop.eup %3573  ;;  %v2845_v53 = vmul.f32 %v3572_v40, %v2798_v49  ;;  %vm2850_vm11 = vweird.f32 %v3572_v40 }
 0x705   :  { %3577 = vrcp.f32 %v2796_v61  ;;  %v2830_v27 = vmul.f32 %v3574_v42, %v2797_v9  ;;  %vm2835_vm4 = vweird.f32 %v3574_v42  ;;  %vm2851_vm10 = vmor %vm2849_vm5, %vm2850_vm11  ;;  %v2825_v2 = vand.u32 2147483648, %v2796_v61 }
 0x706   :  { %v3576_v36 = vpop.eup %3575  ;;  %v2846_v37 = vsub.f32 1.0, %v2845_v53  ;;  %vm2836_vm3 = vmor %vm2834_vm2, %vm2835_vm4  ;;  %v2823_v22 = vand.u32 2147483647, %v2796_v61  ;;  %vm2819_vm13 = vweird.f32 %v2796_v61 }
 0x707   :  { %v7626_v60 = vadd.f32 1.0, %v3576_v36  ;;  %v2831_v59 = vsub.f32 1.0, %v2830_v27  ;;  %v2826_v32 = vor.u32 1.1754944e-38, %v2825_v2 }
 0x708   :  { %v2847_v30 = vmul.f32 %v3572_v40, %v2846_v37  ;;  %vm2824_vm15 = vcmp.eq.f32.partialorder %v2823_v22, 8.507059e+37 }
 0x709   :  { %3579 = vrcp.f32 %v7626_v60  ;;  %v2832_v10 = vmul.f32 %v3574_v42, %v2831_v59  ;;  %vm2669_vm12 = vweird.f32 %v7626_v60 }
 0x70a   :  { %v2848_v58 = vadd.f32 %v3572_v40, %v2847_v30 }
 0x70b   :  { %v3578_v29 = vpop.eup %3577  ;;  %v2833_v52 = vadd.f32 %v3574_v42, %v2832_v10 }
 0x70c   :  { %v2852_v51 = vsel %vm2851_vm10, %v3572_v40, %v2848_v58  ;;  %v2815_v44 = vmul.f32 %v3578_v29, %v2796_v61  ;;  %vm2820_vm8 = vweird.f32 %v3578_v29  ;;  %v2675_v40 = vand.u32 2147483648, %v7626_v60 }
 0x70d   :  { %v2857_v16 = vsel %vm2854_vm7, %v2856_v11, %v2852_v51  ;;  %v2837_v17 = vsel %vm2836_vm3, %v3574_v42, %v2833_v52  ;;  %vm2821_vm14 = vmor %vm2819_vm13, %vm2820_vm8  ;;  %v2673_v61 = vand.u32 2147483647, %v7626_v60 }
 0x70e   :  { %2876 = vperm.xlu2 %3519, %v2857_v16   ;;  %v2842_v26 = vsel %vm2839_vm0, %v2841_v35, %v2837_v17  ;;  %v2816_v20 = vsub.f32 1.0, %v2815_v44  ;;  %v2676_v36 = vor.u32 1.1754944e-38, %v2675_v40 }
 0x70f   :  { %v3580_v8 = vpop.eup %3579  ;;  %2871 = vperm.xlu0 %3518, %v2842_v26   ;;  %vm2674_vm9 = vcmp.eq.f32.partialorder %v2673_v61, 8.507059e+37  ;;  %v3697_v61 = vmov 19  }
 0x710   :  { %v2817_v46 = vmul.f32 %v3578_v29, %v2816_v20  ;;  %v2665_v57 = vmul.f32 %v3580_v8, %v7626_v60  ;;  %vm2670_vm6 = vweird.f32 %v3580_v8 }
 0x711   :  { %vm2671_vm1 = vmor %vm2669_vm12, %vm2670_vm6  ;;  %vm9046_vm6 = vcmask 261120  }
 0x712   :  { %v2595_v19 = vpop.xlane.xlu1 %2594  ;;  %v2589_v45 = vpop.xlane.xlu2 %2588  ;;  %v2818_v7 = vadd.f32 %v3578_v29, %v2817_v46  ;;  %v2666_v1 = vsub.f32 1.0, %v2665_v57  ;;  %vm9047_vm12 = vmmov %vm9046_vm6 }
 0x713   :  { %v2601_v5 = vadd.f32 %v7576_v14, %v2595_v19  ;;  %v2599_v28 = vadd.f32 %v7562_v21, %v2589_v45 }
 0x714   :  { %v2822_v49 = vsel %vm2821_vm14, %v3578_v29, %v2818_v7  ;;  %v2667_v63 = vmul.f32 %v3580_v8, %v2666_v1 }
 0x715   :  { %v3367_v9 = vmul.f32 -1.442695, %v2601_v5  ;;  %v3365_v31 = vmul.f32 -1.442695, %v2599_v28  ;;  %v2827_v55 = vsel %vm2824_vm15, %v2826_v32, %v2822_v49 }
 0x716   :  { %2866 = vperm.xlu2 %3519, %v2827_v55   ;;  %v2668_v54 = vadd.f32 %v3580_v8, %v2667_v63 }
 0x717   :  { %3581 = vpow2.f32 %v3367_v9 }
 0x718   :  { %3583 = vpow2.f32 %v3365_v31  ;;  %v2672_v53 = vsel %vm2671_vm1, %v3580_v8, %v2668_v54  ;;  %vm9048_vm1 = vmmov %vm9046_vm6 }
 0x719   :  { %v2677_v59 = vsel %vm2674_vm9, %v2676_v36, %v2672_v53  ;;  %vm9049_vm9 = vmmov %vm9048_vm1 }
 0x71a   :  { %v2592_v42 = vpop.xlane.xlu1 %2591 }
 0x71b   :  { %v2600_v27 = vadd.f32 %v7569_v41, %v2592_v42 }
 0x71d   :  { %v3582_v37 = vpop.eup %3581  ;;  %v3366_v48 = vmul.f32 -1.442695, %v2600_v27 }
 0x71e   :  { %v3584_v30 = vpop.eup %3583  ;;  %v2617_v6 = vadd.f32 1.0, %v3582_v37  ;;  %2696 = vperm.xlu2 %3519, %v2677_v59  }
 0x71f   :  { %v2615_v62 = vadd.f32 1.0, %v3584_v30  ;;  %3585 = vpow2.f32 %v3366_v48 }
 0x720   :  { %3587 = vrcp.f32 %v2617_v6  ;;  %v2660_v51 = vand.u32 2147483648, %v2617_v6  ;;  %v2658_v44 = vand.u32 2147483647, %v2617_v6  ;;  %vm2654_vm4 = vweird.f32 %v2617_v6 }
 0x721   :  { %3589 = vrcp.f32 %v2615_v62  ;;  %vm2624_vm7 = vweird.f32 %v2615_v62  ;;  %v2630_v7 = vand.u32 2147483648, %v2615_v62  ;;  %v2628_v28 = vand.u32 2147483647, %v2615_v62 }
 0x722   :  { %v2661_v8 = vor.u32 1.1754944e-38, %v2660_v51  ;;  %vm2659_vm10 = vcmp.eq.f32.partialorder %v2658_v44, 8.507059e+37 }
 0x723   :  { %v2631_v9 = vor.u32 1.1754944e-38, %v2630_v7  ;;  %vm2629_vm15 = vcmp.eq.f32.partialorder %v2628_v28, 8.507059e+37 }
 0x725   :  { %v3586_v10 = vpop.eup %3585 }
 0x726   :  { %v3588_v18 = vpop.eup %3587  ;;  %v2616_v60 = vadd.f32 1.0, %v3586_v10  ;;  %3521 = vset.pattern.permute.xlu2 %v3697_v61 }
 0x727   :  { %v3590_v58 = vpop.eup %3589  ;;  %v2650_v29 = vmul.f32 %v3588_v18, %v2617_v6  ;;  %vm2655_vm11 = vweird.f32 %v3588_v18  ;;  %2909 = vperm.xlu2 %3521, %v7576_v14  }
 0x728   :  { %3591 = vrcp.f32 %v2616_v60  ;;  %v2620_v52 = vmul.f32 %v3590_v58, %v2615_v62  ;;  %vm2656_vm5 = vmor %vm2654_vm4, %vm2655_vm11  ;;  %vm2625_vm2 = vweird.f32 %v3590_v58  ;;  %v2645_v45 = vand.u32 2147483648, %v2616_v60 }
 0x729   :  { %v2651_v11 = vsub.f32 1.0, %v2650_v29  ;;  %v2643_v5 = vand.u32 2147483647, %v2616_v60  ;;  %vm2626_vm0 = vmor %vm2624_vm7, %vm2625_vm2  ;;  %vm2639_vm8 = vweird.f32 %v2616_v60 }
 0x72a   :  { %v2621_v16 = vsub.f32 1.0, %v2620_v52  ;;  %v2646_v63 = vor.u32 1.1754944e-38, %v2645_v45  ;;  %vm9050_vm11 = vmmov %vm9048_vm1 }
 0x72b   :  { %v2652_v35 = vmul.f32 %v3588_v18, %v2651_v11  ;;  %vm2644_vm14 = vcmp.eq.f32.partialorder %v2643_v5, 8.507059e+37  ;;  %vm9051_vm4 = vmmov %vm9048_vm1 }
 0x72c   :  { %v2622_v26 = vmul.f32 %v3590_v58, %v2621_v16  ;;  %vm9054_vm2 = vmmov %vm9048_vm1 }
 0x72d   :  { %v2653_v17 = vadd.f32 %v3588_v18, %v2652_v35  ;;  %vm9055_vm7 = vmmov %vm9048_vm1 }
 0x72e   :  { %v3592_v20 = vpop.eup %3591  ;;  %v2623_v19 = vadd.f32 %v3590_v58, %v2622_v26 }
 0x72f   :  { %v2657_v2 = vsel %vm2656_vm5, %v3588_v18, %v2653_v17  ;;  %v2635_v46 = vmul.f32 %v3592_v20, %v2616_v60  ;;  %vm2640_vm3 = vweird.f32 %v3592_v20  ;;  %2905 = vperm.xlu2 %3521, %v7569_v41   ;;  %vm9052_vm5 = vmmov %vm9048_vm1 }
 0x730   :  { %v2662_v22 = vsel %vm2659_vm10, %v2661_v8, %v2657_v2  ;;  %v2627_v49 = vsel %vm2626_vm0, %v3590_v58, %v2623_v19  ;;  %vm2641_vm13 = vmor %vm2639_vm8, %vm2640_vm3 }
 0x731   :  { %2691 = vperm.xlu1 %3520, %v2662_v22   ;;  %v2636_v57 = vsub.f32 1.0, %v2635_v46  ;;  %v2632_v54 = vsel %vm2629_vm15, %v2631_v9, %v2627_v49  ;;  %vm9053_vm10 = vmmov %vm9048_vm1 }
 0x732   :  { %vm9056_vm3 = vmmov %vm9048_vm1 }
 0x733   :  { %v2637_v1 = vmul.f32 %v3592_v20, %v2636_v57  ;;  %vm9057_vm0 = vmmov %vm9048_vm1 }
 0x734   :  { %vm9058_vm8 = vmmov %vm9057_vm0 }
 0x735   :  { %v2638_v32 = vadd.f32 %v3592_v20, %v2637_v1  ;;  %vm9061_vm15 = vmmov %vm9057_vm0 }
 0x737   :  { %v2642_v31 = vsel %vm2641_vm13, %v3592_v20, %v2638_v32  ;;  %vm9059_vm13 = vmmov %vm9057_vm0 }
 0x738   :  { %v2647_v55 = vsel %vm2644_vm14, %v2646_v63, %v2642_v31  ;;  %vm9060_vm14 = vmmov %vm9057_vm0 }
 0x739   :  { %2686 = vperm.xlu0 %3518, %v2647_v55   ;;  %2681 = vperm.xlu1 %3520, %v2632_v54  }
 0x741   :  { %3523 = vset.pattern.permute.xlu0 %v3697_v61  ;;  %3522 = vset.pattern.permute.xlu1 %v3697_v61 }
 0x742   :  { %2901 = vperm.xlu0 %3523, %v7562_v21   ;;  %2913 = vperm.xlu1 %3522, %v7593_v56  }
 0x768   :  { %v2877_v40 = vpop.permute.xlu2 %2876 }
 0x769   :  { %v2885_v27 = vmul.f32 %v2877_v40, %v7491_v34  ;;  %v2886_v36 = vmul.f32 %v2877_v40, %v7494_v4  ;;  %v2862_v59 = vpop.permute.xlu1 %2861 }
 0x76a   :  { %v2879_v14 = vmul.f32 %v2862_v59, %v7463_v47  ;;  %v2880_v10 = vmul.f32 %v2862_v59, %v7466_v50  ;;  %v3418_v47 = vld [vmem:[%s7927_s2 + $0x28] sm:$0xff] }
 0x770   :  { %v2867_v42 = vpop.permute.xlu2 %2866 }
 0x771   :  { %v2881_v30 = vmul.f32 %v2867_v42, %v7473_v39  ;;  %v2882_v21 = vmul.f32 %v2867_v42, %v7476_v24 }
 0x773   :  { %v2894_v34 = vpack.c.bf16 %v2881_v30, %v2879_v14  ;;  %v2895_v18 = vpack.c.bf16 %v2882_v21, %v2880_v10 }
 0x778   :  { %v2697_v50 = vpop.permute.xlu2 %2696 }
 0x779   :  { %v2705_v24 = vmul.f32 %v2697_v50, %v7552_v13 }
 0x781   :  { %v2872_v53 = vpop.permute.xlu0 %2871 }
 0x782   :  { %v2883_v37 = vmul.f32 %v2872_v53, %v7483_v15  ;;  %v2884_v48 = vmul.f32 %v2872_v53, %v7486_v0  ;;  %v3417_v15 = vld [vmem:[%s7927_s2 + $0x20] sm:$0xff]  ;;  %v2706_v0 = vmul.f32 %v2697_v50, %v7555_v38 }
 0x784   :  { %v2898_v6 = vpack.c.bf16 %v2885_v27, %v2883_v37  ;;  %v2899_v62 = vpack.c.bf16 %v2886_v36, %v2884_v48 }
 0x786   :  { %2976 = vmatpush.bf16.msra.mxu2 %v2898_v6  ;;  %2995 = vmatpush.bf16.msra.mxu3 %v2899_v62 }
 0x78a   :  { %2977 = vmatpush.bf16.msra.mxu2 %v2894_v34  ;;  %2996 = vmatpush.bf16.msra.mxu3 %v2895_v18 }
 0x78d   :  { %3389 = vmatmul.msk.bf16.vlgmr.msra.gmra.mxu2 %vm9046_vm6, %v3417_v15  ;;  %3391 = vmatmul.msk.bf16.vlgmr.msra.gmra.mxu3 %vm9047_vm12, %v3417_v15 }
 0x79d   :  { %3390 = vmatmul.msk.bf16.gmra.mxu2 %vm9048_vm1, %v3418_v47  ;;  %3392 = vmatmul.msk.bf16.gmra.mxu3 %vm9049_vm9, %v3418_v47 }
 0x7a3   :  { %v2692_v39 = vpop.permute.xlu1 %2691 }
 0x7a4   :  { %v2703_v4 = vmul.f32 %v2692_v39, %v7544_v3  ;;  %v2704_v41 = vmul.f32 %v2692_v39, %v7547_v25  ;;  %v7670_v3 = vpop.permute.xlu2 %2909 }
 0x7a6   :  { %v2896_v60 = vpack.c.bf16 %v2705_v24, %v2703_v4  ;;  %v2897_v58 = vpack.c.bf16 %v2706_v0, %v2704_v41 }
 0x7a8   :  { %2938 = vmatpush.bf16.msra.mxu0 %v2896_v60  ;;  %2957 = vmatpush.bf16.msra.mxu1 %v2897_v58 }
 0x7ab   :  { %v2687_v29 = vpop.permute.xlu0 %2686  ;;  %v2682_v11 = vpop.permute.xlu1 %2681 }
 0x7ac   :  { %v2701_v52 = vmul.f32 %v2687_v29, %v7534_v12  ;;  %v2702_v51 = vmul.f32 %v2687_v29, %v7537_v33  ;;  %v2699_v35 = vmul.f32 %v2682_v11, %v7525_v23  ;;  %v2700_v13 = vmul.f32 %v2682_v11, %v7528_v43  ;;  %v7680_v16 = vpop.permute.xlu2 %2905 }
 0x7ae   :  { %v2892_v44 = vpack.c.bf16 %v2701_v52, %v2699_v35  ;;  %v2893_v38 = vpack.c.bf16 %v2702_v51, %v2700_v13 }
 0x7b0   :  { %2939 = vmatpush.bf16.msra.mxu0 %v2892_v44  ;;  %2958 = vmatpush.bf16.msra.mxu1 %v2893_v38 }
 0x7b3   :  { %3385 = vmatmul.msk.bf16.vlgmr.msra.gmra.mxu0 %vm9050_vm11, %v3417_v15  ;;  %3387 = vmatmul.msk.bf16.vlgmr.msra.gmra.mxu1 %vm9051_vm4, %v3417_v15 }
 0x7b4   :  { %v7672_v25 = vpop.permute.xlu0 %2901  ;;  %v7713_v53 = vpop.permute.xlu1 %2913 }
 0x7c3   :  { %3386 = vmatmul.msk.bf16.gmra.mxu0 %vm9052_vm5, %v3418_v47  ;;  %3388 = vmatmul.msk.bf16.gmra.mxu1 %vm9053_vm10, %v3418_v47 }
 0x810   :  { %v2979_v12 = vpop.f32.mrf.mxu2  ;;  %v2998_v33 = vpop.f32.mrf.mxu3 }
 0x811   :  { %v7675_v23 = vadd.f32 %v2979_v12, %v7672_v25  ;;  %v7678_v43 = vadd.f32 %v2998_v33, %v7672_v25 }
 0x813   :  { %v3010_v17 = vmul.f32 %v7675_v23, %v7675_v23  ;;  %v3011_v2 = vmul.f32 %v7678_v43, %v7678_v43 }
 0x815   :  { %v3026_v57 = vmul.f32 %v3010_v17, %v7675_v23  ;;  %v3027_v45 = vmul.f32 %v3011_v2, %v7678_v43 }
 0x817   :  { %v3042_v28 = vmul.f32 0.044715, %v3026_v57  ;;  %v3043_v9 = vmul.f32 0.044715, %v3027_v45 }
 0x818   :  { %v2981_v26 = vpop.f32.mrf.mxu2  ;;  %v3000_v20 = vpop.f32.mrf.mxu3 }
 0x819   :  { %v7685_v8 = vadd.f32 %v2981_v26, %v7680_v16  ;;  %v7690_v46 = vadd.f32 %v3000_v20, %v7680_v16  ;;  %v3058_v40 = vadd.f32 %v3042_v28, %v7675_v23  ;;  %v3059_v36 = vadd.f32 %v3043_v9, %v7678_v43 }
 0x81b   :  { %v3014_v22 = vmul.f32 %v7685_v8, %v7685_v8  ;;  %v3015_v19 = vmul.f32 %v7690_v46, %v7690_v46  ;;  %v3074_v6 = vmul.f32 0.7978846, %v3058_v40  ;;  %v3075_v15 = vmul.f32 0.7978846, %v3059_v36 }
 0x81d   :  { %v3030_v5 = vmul.f32 %v3014_v22, %v7685_v8  ;;  %v3031_v63 = vmul.f32 %v3015_v19, %v7690_v46  ;;  %3593 = vtanh.f32 %v3074_v6 }
 0x81e   :  { %3595 = vtanh.f32 %v3075_v15 }
 0x81f   :  { %v3046_v54 = vmul.f32 0.044715, %v3030_v5  ;;  %v3047_v27 = vmul.f32 0.044715, %v3031_v63 }
 0x820   :  { %v2984_v7 = vpop.f32.mrf.mxu2  ;;  %v3003_v1 = vpop.f32.mrf.mxu3 }
 0x821   :  { %v7700_v32 = vadd.f32 %v2984_v7, %v7670_v3  ;;  %v7703_v49 = vadd.f32 %v3003_v1, %v7670_v3  ;;  %v3062_v21 = vadd.f32 %v3046_v54, %v7685_v8  ;;  %v3063_v18 = vadd.f32 %v3047_v27, %v7690_v46 }
 0x823   :  { %v3018_v31 = vmul.f32 %v7700_v32, %v7700_v32  ;;  %v3019_v55 = vmul.f32 %v7703_v49, %v7703_v49  ;;  %v3078_v41 = vmul.f32 0.7978846, %v3062_v21  ;;  %v3079_v60 = vmul.f32 0.7978846, %v3063_v18  ;;  %v3594_v13 = vpop.eup %3593 }
 0x824   :  { %v3596_v12 = vpop.eup %3595  ;;  %v3106_v63 = vadd.f32 1.0, %v3594_v13 }
 0x825   :  { %v3034_v61 = vmul.f32 %v3018_v31, %v7700_v32  ;;  %v3035_v42 = vmul.f32 %v3019_v55, %v7703_v49  ;;  %v3107_v9 = vadd.f32 1.0, %v3596_v12 }
 0x826   :  { %v3122_v21 = vmul.f32 0.5, %v3106_v63 }
 0x827   :  { %v3050_v37 = vmul.f32 0.044715, %v3034_v61  ;;  %v3051_v48 = vmul.f32 0.044715, %v3035_v42  ;;  %v3123_v6 = vmul.f32 0.5, %v3107_v9 }
 0x828   :  { %v2986_v59 = vpop.f32.mrf.mxu2  ;;  %v3005_v30 = vpop.f32.mrf.mxu3 }
 0x829   :  { %v3066_v62 = vadd.f32 %v3050_v37, %v7700_v32  ;;  %v3067_v14 = vadd.f32 %v3051_v48, %v7703_v49  ;;  %v2987_v10 = vadd.f32 %v2986_v59, %v7713_v53  ;;  %v7721_v34 = vadd.f32 %v3005_v30, %v7713_v53 }
 0x82b   :  { %v3082_v47 = vmul.f32 0.7978846, %v3066_v62  ;;  %v3022_v50 = vmul.f32 %v2987_v10, %v2987_v10  ;;  %v3023_v39 = vmul.f32 %v7721_v34, %v7721_v34  ;;  %v3083_v24 = vmul.f32 0.7978846, %v3067_v14 }
 0x82d   :  { %v3038_v0 = vmul.f32 %v3022_v50, %v2987_v10  ;;  %v3039_v4 = vmul.f32 %v3023_v39, %v7721_v34  ;;  %3597 = vtanh.f32 %v3082_v47 }
 0x82e   :  { %3599 = vtanh.f32 %v3083_v24 }
 0x82f   :  { %v3054_v58 = vmul.f32 0.044715, %v3038_v0  ;;  %v3055_v29 = vmul.f32 0.044715, %v3039_v4  ;;  %3601 = vtanh.f32 %v3078_v41 }
 0x830   :  { %v2941_v11 = vpop.f32.mrf.mxu0  ;;  %v2960_v52 = vpop.f32.mrf.mxu1  ;;  %3603 = vtanh.f32 %v3079_v60 }
 0x831   :  { %v3070_v51 = vadd.f32 %v3054_v58, %v2987_v10  ;;  %v3071_v35 = vadd.f32 %v3055_v29, %v7721_v34  ;;  %v7732_v7 = vadd.f32 %v2941_v11, %v7672_v25  ;;  %v7738_v61 = vadd.f32 %v2960_v52, %v7672_v25 }
 0x832   :  { %v3138_v52 = vmul.f32 %v3122_v21, %v7675_v23 }
 0x833   :  { %v3086_v44 = vmul.f32 0.7978846, %v3070_v51  ;;  %v3087_v38 = vmul.f32 0.7978846, %v3071_v35  ;;  %v3598_v33 = vpop.eup %3597  ;;  %v3009_v18 = vmul.f32 %v7738_v61, %v7738_v61 }
 0x834   :  { %v3600_v17 = vpop.eup %3599  ;;  %v3114_v2 = vadd.f32 1.0, %v3598_v33 }
 0x835   :  { %3605 = vtanh.f32 %v3086_v44  ;;  %v3602_v26 = vpop.eup %3601  ;;  %v3115_v19 = vadd.f32 1.0, %v3600_v17  ;;  %v3025_v11 = vmul.f32 %v3009_v18, %v7738_v61  ;;  %v3420_v18 = vld [vmem:[%s7927_s2 + $0x38] sm:$0xff] }
 0x836   :  { %3607 = vtanh.f32 %v3087_v38  ;;  %v3604_v20 = vpop.eup %3603  ;;  %v3110_v5 = vadd.f32 1.0, %v3602_v26  ;;  %v3130_v54 = vmul.f32 0.5, %v3114_v2 }
 0x837   :  { %v3111_v31 = vadd.f32 1.0, %v3604_v20  ;;  %v3131_v27 = vmul.f32 0.5, %v3115_v19  ;;  %v3041_v26 = vmul.f32 0.044715, %v3025_v11 }
 0x838   :  { %v2943_v22 = vpop.f32.mrf.mxu0  ;;  %v2962_v57 = vpop.f32.mrf.mxu1  ;;  %v3126_v59 = vmul.f32 0.5, %v3110_v5  ;;  %v3146_v25 = vmul.f32 %v3130_v54, %v7700_v32 }
 0x839   :  { %v7729_v45 = vadd.f32 %v2943_v22, %v7680_v16  ;;  %v7735_v1 = vadd.f32 %v2962_v57, %v7680_v16  ;;  %v3008_v16 = vmul.f32 %v7732_v7, %v7732_v7  ;;  %v3127_v62 = vmul.f32 0.5, %v3111_v31 }
 0x83a   :  { %v3147_v39 = vmul.f32 %v3131_v27, %v7703_v49  ;;  %v3142_v60 = vmul.f32 %v3126_v59, %v7685_v8  ;;  %v3139_v8 = vmul.f32 %v3123_v6, %v7678_v43 }
 0x83b   :  { %v3606_v28 = vpop.eup %3605  ;;  %v3012_v42 = vmul.f32 %v7729_v45, %v7729_v45  ;;  %v3013_v48 = vmul.f32 %v7735_v1, %v7735_v1  ;;  %v3024_v32 = vmul.f32 %v3008_v16, %v7732_v7  ;;  %v3143_v29 = vmul.f32 %v3127_v62, %v7690_v46  ;;  %v7774_v46 = vld [vmem:[%s7927_s2 + $0x30] sm:$0xff] }
 0x83c   :  { %v3608_v55 = vpop.eup %3607  ;;  %v3118_v40 = vadd.f32 1.0, %v3606_v28  ;;  %v3159_v38 = vpack.c.bf16 %v3142_v60, %v3138_v52 }
 0x83d   :  { %v3119_v36 = vadd.f32 1.0, %v3608_v55  ;;  %v3028_v15 = vmul.f32 %v3012_v42, %v7729_v45  ;;  %v3040_v13 = vmul.f32 0.044715, %v3024_v32  ;;  %v3160_v17 = vpack.c.bf16 %v3143_v29, %v3139_v8 }
 0x83e   :  { %v3134_v37 = vmul.f32 0.5, %v3118_v40  ;;  %v3057_v55 = vadd.f32 %v3041_v26, %v7738_v61 }
 0x83f   :  { %v3135_v30 = vmul.f32 0.5, %v3119_v36  ;;  %v3056_v28 = vadd.f32 %v3040_v13, %v7732_v7  ;;  %v3641_v13 = vld [vmem:[%s7926_s3 + $0x8] sm:$0xff] }
 0x840   :  { %v3150_v14 = vmul.f32 %v3134_v37, %v2987_v10  ;;  %v2946_v47 = vpop.f32.mrf.mxu0  ;;  %v2965_v50 = vpop.f32.mrf.mxu1  ;;  %v3029_v10 = vmul.f32 %v3013_v48, %v7735_v1  ;;  %v3073_v48 = vmul.f32 0.7978846, %v3057_v55 }
 0x841   :  { %v3151_v24 = vmul.f32 %v3135_v30, %v7721_v34  ;;  %v7753_v0 = vadd.f32 %v2946_v47, %v7670_v3  ;;  %v7756_v4 = vadd.f32 %v2965_v50, %v7670_v3  ;;  %v3044_v3 = vmul.f32 0.044715, %v3028_v15 }
 0x842   :  { %v3163_v41 = vpack.c.bf16 %v3150_v14, %v3146_v25  ;;  %v3045_v44 = vmul.f32 0.044715, %v3029_v10  ;;  %v3072_v36 = vmul.f32 0.7978846, %v3056_v28  ;;  %v3698_v10 = vmov 20  }
 0x843   :  { %v3016_v58 = vmul.f32 %v7753_v0, %v7753_v0  ;;  %v3017_v49 = vmul.f32 %v7756_v4, %v7756_v4  ;;  %v3164_v34 = vpack.c.bf16 %v3151_v24, %v3147_v39  ;;  %v3060_v23 = vadd.f32 %v3044_v3, %v7729_v45  ;;  %3524 = vset.pattern.permute.xlu1 %v3698_v10 }
 0x844   :  { %3225 = vmatpush.bf16.msrb.mxu2 %v3163_v41  ;;  %v3061_v5 = vadd.f32 %v3045_v44, %v7735_v1  ;;  %3526 = vset.pattern.permute.xlu0 %v3698_v10 }
 0x845   :  { %v3032_v51 = vmul.f32 %v3016_v58, %v7753_v0  ;;  %v3033_v35 = vmul.f32 %v3017_v49, %v7756_v4  ;;  %3244 = vmatpush.bf16.msrb.mxu3 %v3164_v34  ;;  %v3640_v58 = vld [vmem:[%s7926_s3] sm:$0xff]  ;;  %3286 = vperm.xlu0 %3526, %v7593_v56  }
 0x846   :  { %v3077_v27 = vmul.f32 0.7978846, %v3061_v5  ;;  %3274 = vperm.xlu1 %3524, %v3640_v58   ;;  %3525 = vset.pattern.permute.xlu2 %v3698_v10  ;;  %v3642_v5 = vld [vmem:[%s7926_s3 + $0x10] sm:$0xff]  ;;  %v3650_v10 = vld [vmem:[%s7925_s0 + $0x78] sm:$0xff] }
 0x847   :  { %v3048_v12 = vmul.f32 0.044715, %v3032_v51  ;;  %v3049_v33 = vmul.f32 0.044715, %v3033_v35  ;;  %3278 = vperm.xlu2 %3525, %v3641_v13  }
 0x848   :  { %3226 = vmatpush.bf16.msrb.mxu2 %v3159_v38  ;;  %v2948_v20 = vpop.f32.mrf.mxu0  ;;  %v2967_v2 = vpop.f32.mrf.mxu1 }
 0x849   :  { %v3064_v22 = vadd.f32 %v3048_v12, %v7753_v0  ;;  %v3065_v43 = vadd.f32 %v3049_v33, %v7756_v4  ;;  %3245 = vmatpush.bf16.msrb.mxu3 %v3160_v17  ;;  %v7780_v57 = vadd.f32 %v2948_v20, %v7713_v53  ;;  %v7783_v19 = vadd.f32 %v2967_v2, %v7713_v53 }
 0x84a   :  { %v3076_v53 = vmul.f32 0.7978846, %v3060_v23 }
 0x84b   :  { %v3080_v63 = vmul.f32 0.7978846, %v3064_v22  ;;  %v3020_v9 = vmul.f32 %v7780_v57, %v7780_v57  ;;  %v3021_v31 = vmul.f32 %v7783_v19, %v7783_v19  ;;  %3409 = vmatmul.msk.bf16.vlgmr.msrb.gmra.mxu2 %vm9054_vm2, %v7774_v46  ;;  %v3081_v54 = vmul.f32 0.7978846, %v3065_v43 }
 0x84c   :  { %3411 = vmatmul.msk.bf16.vlgmr.msrb.gmra.mxu3 %vm9055_vm7, %v7774_v46 }
 0x84d   :  { %v3036_v40 = vmul.f32 %v3020_v9, %v7780_v57  ;;  %v3037_v42 = vmul.f32 %v3021_v31, %v7783_v19  ;;  %3609 = vtanh.f32 %v3080_v63  ;;  %v3644_v63 = vld [vmem:[%s7925_s0 + $0x18] sm:$0xff] }
 0x84e   :  { %3611 = vtanh.f32 %v3081_v54  ;;  %3282 = vperm.xlu1 %3524, %v3642_v5  }
 0x84f   :  { %v3052_v37 = vmul.f32 0.044715, %v3036_v40  ;;  %v3053_v16 = vmul.f32 0.044715, %v3037_v42  ;;  %3613 = vtanh.f32 %v3076_v53  ;;  %v3645_v53 = vld [vmem:[%s7925_s0 + $0x30] sm:$0xff] }
 0x850   :  { %3615 = vtanh.f32 %v3077_v27  ;;  %v3646_v27 = vld [vmem:[%s7925_s0 + $0x38] sm:$0xff] }
 0x851   :  { %v3068_v59 = vadd.f32 %v3052_v37, %v7780_v57  ;;  %v3069_v30 = vadd.f32 %v3053_v16, %v7783_v19  ;;  %3617 = vtanh.f32 %v3072_v36 }
 0x852   :  { %3619 = vtanh.f32 %v3073_v48 }
 0x853   :  { %v3084_v21 = vmul.f32 0.7978846, %v3068_v59  ;;  %v3085_v6 = vmul.f32 0.7978846, %v3069_v30  ;;  %v3610_v62 = vpop.eup %3609  ;;  %v3647_v30 = vld [vmem:[%s7925_s0 + $0x50] sm:$0xff] }
 0x854   :  { %v3612_v25 = vpop.eup %3611  ;;  %v3112_v47 = vadd.f32 1.0, %v3610_v62  ;;  %v3648_v62 = vld [vmem:[%s7925_s0 + $0x58] sm:$0xff] }
 0x855   :  { %3621 = vtanh.f32 %v3084_v21  ;;  %v3614_v14 = vpop.eup %3613  ;;  %v3113_v39 = vadd.f32 1.0, %v3612_v25 }
 0x856   :  { %3623 = vtanh.f32 %v3085_v6  ;;  %v3616_v15 = vpop.eup %3615  ;;  %v3108_v32 = vadd.f32 1.0, %v3614_v14  ;;  %v3128_v34 = vmul.f32 0.5, %v3112_v47 }
 0x857   :  { %v3618_v50 = vpop.eup %3617  ;;  %v3109_v60 = vadd.f32 1.0, %v3616_v15  ;;  %v3129_v3 = vmul.f32 0.5, %v3113_v39 }
 0x858   :  { %v3620_v24 = vpop.eup %3619  ;;  %v3104_v11 = vadd.f32 1.0, %v3618_v50  ;;  %v3124_v8 = vmul.f32 0.5, %v3108_v32  ;;  %v3144_v12 = vmul.f32 %v3128_v34, %v7753_v0  ;;  %v3649_v50 = vld [vmem:[%s7925_s0 + $0x70] sm:$0xff] }
 0x859   :  { %v3105_v51 = vadd.f32 1.0, %v3620_v24  ;;  %v3125_v38 = vmul.f32 0.5, %v3109_v60  ;;  %v3145_v56 = vmul.f32 %v3129_v3, %v7756_v4  ;;  %v3651_v60 = vld [vmem:[%s7925_s0] sm:$0xff] }
 0x85a   :  { %v3120_v17 = vmul.f32 0.5, %v3104_v11  ;;  %v3140_v2 = vmul.f32 %v3124_v8, %v7729_v45  ;;  %v3653_v8 = vld [vmem:[%s7925_s0 + $0x20] sm:$0xff] }
 0x85b   :  { %v3622_v41 = vpop.eup %3621  ;;  %3410 = vmatmul.msk.bf16.gmra.mxu2 %vm9056_vm3, %v3420_v18  ;;  %v3121_v23 = vmul.f32 0.5, %v3105_v51  ;;  %v3141_v43 = vmul.f32 %v3125_v38, %v7735_v1  ;;  %v3654_v38 = vld [vmem:[%s7925_s0 + $0x28] sm:$0xff] }
 0x85c   :  { %v3624_v49 = vpop.eup %3623  ;;  %v3116_v29 = vadd.f32 1.0, %v3622_v41  ;;  %3412 = vmatmul.msk.bf16.gmra.mxu3 %vm9057_vm0, %v3420_v18  ;;  %v3136_v0 = vmul.f32 %v3120_v17, %v7732_v7  ;;  %v3643_v7 = vld [vmem:[%s7925_s0 + $0x10] sm:$0xff] }
 0x85d   :  { %v3117_v52 = vadd.f32 1.0, %v3624_v49  ;;  %v3137_v4 = vmul.f32 %v3121_v23, %v7738_v61 }
 0x85e   :  { %v3132_v35 = vmul.f32 0.5, %v3116_v29  ;;  %v3652_v29 = vld [vmem:[%s7925_s0 + $0x8] sm:$0xff] }
 0x85f   :  { %v3133_v44 = vmul.f32 0.5, %v3117_v52 }
 0x860   :  { %v3148_v33 = vmul.f32 %v3132_v35, %v7780_v57  ;;  %v3157_v57 = vpack.c.bf16 %v3140_v2, %v3136_v0  ;;  %v3656_v2 = vld [vmem:[%s7925_s0 + $0x48] sm:$0xff] }
 0x861   :  { %v3149_v26 = vmul.f32 %v3133_v44, %v7783_v19  ;;  %v3158_v19 = vpack.c.bf16 %v3141_v43, %v3137_v4  ;;  %v3657_v4 = vld [vmem:[%s7925_s0 + $0x60] sm:$0xff] }
 0x862   :  { %v3161_v20 = vpack.c.bf16 %v3148_v33, %v3144_v12 }
 0x863   :  { %v3162_v22 = vpack.c.bf16 %v3149_v26, %v3145_v56  ;;  %v3655_v26 = vld [vmem:[%s7925_s0 + $0x40] sm:$0xff] }
 0x864   :  { %3187 = vmatpush.bf16.msrb.mxu0 %v3161_v20 }
 0x865   :  { %3206 = vmatpush.bf16.msrb.mxu1 %v3162_v22 }
 0x868   :  { %3188 = vmatpush.bf16.msrb.mxu0 %v3157_v57 }
 0x869   :  { %3207 = vmatpush.bf16.msrb.mxu1 %v3158_v19 }
 0x86b   :  { %3405 = vmatmul.msk.bf16.vlgmr.msrb.gmra.mxu0 %vm9058_vm8, %v7774_v46 }
 0x86c   :  { %3407 = vmatmul.msk.bf16.vlgmr.msrb.gmra.mxu1 %vm9059_vm13, %v7774_v46 }
 0x87b   :  { %3406 = vmatmul.msk.bf16.gmra.mxu0 %vm9060_vm14, %v3420_v18 }
 0x87c   :  { %3408 = vmatmul.msk.bf16.gmra.mxu1 %vm9061_vm15, %v3420_v18 }
 0x8a1   :  { %v3279_v54 = vpop.permute.xlu2 %3278 }
 0x8b7   :  { %v3287_v47 = vpop.permute.xlu0 %3286 }
 0x8b8   :  { %v3275_v1 = vpop.permute.xlu1 %3274 }
 0x8c0   :  { %v3283_v59 = vpop.permute.xlu1 %3282 }
 0x8ce   :  { %v3228_v45 = vpop.f32.mrf.mxu2 }
 0x8cf   :  { %v3259_v61 = vadd.f32 %v3643_v7, %v3228_v45  ;;  %v3247_v28 = vpop.f32.mrf.mxu3  ;;  %v3658_v45 = vld [vmem:[%s7925_s0 + $0x68] sm:$0xff] }
 0x8d0   :  { %v3260_v9 = vadd.f32 %v3644_v63, %v3247_v28 }
 0x8d1   :  { %v3291_v31 = vadd.f32 %v3275_v1, %v3259_v61 }
 0x8d2   :  { %v3292_v55 = vadd.f32 %v3275_v1, %v3260_v9 }
 0x8d3   :  { %3307 = vst [vmem:[%s7929_s4 + $0x10] sm:$0xff] %v3291_v31 }
 0x8d4   :  { %3308 = vst [vmem:[%s7929_s4 + $0x18] sm:$0xff] %v3292_v55 }
 0x8d6   :  { %v3230_v46 = vpop.f32.mrf.mxu2 }
 0x8d7   :  { %v3263_v40 = vadd.f32 %v3645_v53, %v3230_v46  ;;  %v3249_v42 = vpop.f32.mrf.mxu3 }
 0x8d8   :  { %v3264_v36 = vadd.f32 %v3646_v27, %v3249_v42 }
 0x8d9   :  { %v3295_v37 = vadd.f32 %v3279_v54, %v3263_v40 }
 0x8da   :  { %v3296_v16 = vadd.f32 %v3279_v54, %v3264_v36 }
 0x8db   :  { %3311 = vst [vmem:[%s7929_s4 + $0x30] sm:$0xff] %v3295_v37 }
 0x8dc   :  { %3312 = vst [vmem:[%s7929_s4 + $0x38] sm:$0xff] %v3296_v16 }
 0x8de   :  { %v3233_v48 = vpop.f32.mrf.mxu2 }
 0x8df   :  { %v3267_v21 = vadd.f32 %v3647_v30, %v3233_v48  ;;  %v3252_v6 = vpop.f32.mrf.mxu3 }
 0x8e0   :  { %v3268_v25 = vadd.f32 %v3648_v62, %v3252_v6 }
 0x8e1   :  { %v3299_v14 = vadd.f32 %v3283_v59, %v3267_v21 }
 0x8e2   :  { %v3300_v18 = vadd.f32 %v3283_v59, %v3268_v25 }
 0x8e3   :  { %3315 = vst [vmem:[%s7929_s4 + $0x50] sm:$0xff] %v3299_v14 }
 0x8e4   :  { %3316 = vst [vmem:[%s7929_s4 + $0x58] sm:$0xff] %v3300_v18 }
 0x8e6   :  { %v3235_v15 = vpop.f32.mrf.mxu2 }
 0x8e7   :  { %v3271_v39 = vadd.f32 %v3649_v50, %v3235_v15  ;;  %v3254_v24 = vpop.f32.mrf.mxu3 }
 0x8e8   :  { %v3190_v32 = vpop.f32.mrf.mxu0  ;;  %v3272_v41 = vadd.f32 %v3650_v10, %v3254_v24 }
 0x8e9   :  { %v3257_v58 = vadd.f32 %v3651_v60, %v3190_v32  ;;  %v3209_v49 = vpop.f32.mrf.mxu1  ;;  %v3303_v34 = vadd.f32 %v3287_v47, %v3271_v39 }
 0x8ea   :  { %v3258_v11 = vadd.f32 %v3652_v29, %v3209_v49  ;;  %v3304_v3 = vadd.f32 %v3287_v47, %v3272_v41 }
 0x8eb   :  { %v3289_v52 = vadd.f32 %v3275_v1, %v3257_v58  ;;  %3319 = vst [vmem:[%s7929_s4 + $0x70] sm:$0xff] %v3303_v34 }
 0x8ec   :  { %v3290_v51 = vadd.f32 %v3275_v1, %v3258_v11  ;;  %3320 = vst [vmem:[%s7929_s4 + $0x78] sm:$0xff] %v3304_v3 }
 0x8ed   :  { %3305 = vst [vmem:[%s7929_s4] sm:$0xff] %v3289_v52 }
 0x8ee   :  { %3306 = vst [vmem:[%s7929_s4 + $0x8] sm:$0xff] %v3290_v51 }
 0x8f0   :  { %v3192_v35 = vpop.f32.mrf.mxu0 }
 0x8f1   :  { %v3261_v13 = vadd.f32 %v3653_v8, %v3192_v35  ;;  %v3211_v44 = vpop.f32.mrf.mxu1 }
 0x8f2   :  { %v3262_v12 = vadd.f32 %v3654_v38, %v3211_v44 }
 0x8f3   :  { %v3293_v33 = vadd.f32 %v3279_v54, %v3261_v13 }
 0x8f4   :  { %v3294_v17 = vadd.f32 %v3279_v54, %v3262_v12 }
 0x8f5   :  { %3309 = vst [vmem:[%s7929_s4 + $0x20] sm:$0xff] %v3293_v33 }
 0x8f6   :  { %3310 = vst [vmem:[%s7929_s4 + $0x28] sm:$0xff] %v3294_v17 }
 0x8f8   :  { %v3195_v56 = vpop.f32.mrf.mxu0 }
 0x8f9   :  { %v3265_v23 = vadd.f32 %v3655_v26, %v3195_v56  ;;  %v3214_v20 = vpop.f32.mrf.mxu1 }
 0x8fa   :  { %v3266_v22 = vadd.f32 %v3656_v2, %v3214_v20 }
 0x8fb   :  { %v3297_v43 = vadd.f32 %v3283_v59, %v3265_v23 }
 0x8fc   :  { %v3298_v5 = vadd.f32 %v3283_v59, %v3266_v22 }
 0x8fd   :  { %3313 = vst [vmem:[%s7929_s4 + $0x40] sm:$0xff] %v3297_v43 }
 0x8fe   :  { %3314 = vst [vmem:[%s7929_s4 + $0x48] sm:$0xff] %v3298_v5 }
 0x900   :  { %v3197_v0 = vpop.f32.mrf.mxu0 }
 0x901   :  { %v3269_v57 = vadd.f32 %v3657_v4, %v3197_v0  ;;  %v3216_v19 = vpop.f32.mrf.mxu1 }
 0x902   :  { %v3270_v1 = vadd.f32 %v3658_v45, %v3216_v19 }
 0x903   :  { %v3301_v7 = vadd.f32 %v3287_v47, %v3269_v57 }
 0x904   :  { %v3302_v61 = vadd.f32 %v3287_v47, %v3270_v1 }
 0x905   :  { %3317 = vst [vmem:[%s7929_s4 + $0x60] sm:$0xff] %v3301_v7 }
 0x906   :  { %3318 = vst [vmem:[%s7929_s4 + $0x68] sm:$0xff] %v3302_v61 }

</bundles_post_ra>
